<compile_context>
chip_gen: v7x
topology: tpu7x:2x2x1
jax: 0.10.0
libtpu: 0.0.40
codegen_flags: <defaults>
</compile_context>

<pallas_src>
import functools
import math

import jax
import jax.numpy as jnp
from jax.experimental import pallas as pl
from jax.experimental.pallas import tpu as pltpu

NHEAD = 8          # fixed by the reference module
LN_EPS = 1e-5      # nn.LayerNorm default
N_TILE = 16        # batch-column tile of the fused encoder kernel (grid axis)
V_TILE = 256       # vocab tile of the fused cross-attn / output-head kernel


def _const_spec(shape):
    """Whole-array block, identical for every grid step (weights, small inputs)."""
    return pl.BlockSpec(shape, lambda *_: (0,) * len(shape))


# --------------------- kernel 1: fused TransformerEncoderLayer ---------------------

def _encoder_layer_kernel(x_ref, w_in_ref, b_in_ref, bd_ref, wo_ref, bo_ref,
                          g1_ref, be1_ref, w1_ref, b1_ref, w2_ref, b2_ref,
                          g2_ref, be2_ref, o_ref, *, eps):
    s, nt, e = x_ref.shape                       # (seq=2, batch-tile, 128)
    x2d = x_ref[...].astype(jnp.float32).reshape(s * nt, e)

    # Fused QKV projection (1/sqrt(dh) pre-folded into the Q columns).
    qkv = jnp.dot(x2d.astype(jnp.bfloat16), w_in_ref[...],
                  preferred_element_type=jnp.float32) + b_in_ref[...]
    q, k, v = qkv[:, :e], qkv[:, e:2 * e], qkv[:, 2 * e:]

    bd = bd_ref[...]                             # (E,E) block-diag ones: per-head
                                                 # segment-sum broadcast over 16 lanes
    def seg_sum(z):
        return jnp.dot(z.astype(jnp.bfloat16), bd, preferred_element_type=jnp.float32)

    def row(t, i):                               # rows of sequence position i
        return t[i * nt:(i + 1) * nt, :]

    # Self-attention over the tiny sequence axis, all heads at once, fully
    # lane-dense: no per-head (2,16)x(16,2) matmuls, no head split/merge copies.
    outs = []
    for i in range(s):
        qi = row(q, i)
        sc = [seg_sum(qi * row(k, j)) for j in range(s)]   # per-head scores, broadcast
        m = sc[0]
        for t in sc[1:]:
            m = jnp.maximum(m, t)
        ex = [jnp.exp(t - m) for t in sc]
        den = ex[0]
        for t in ex[1:]:
            den = den + t
        r = pl.reciprocal(den, approx=True)      # internal only, never emitted
        oi = (ex[0] * r) * row(v, 0)
        for j in range(1, s):
            oi = oi + (ex[j] * r) * row(v, j)
        outs.append(oi)
    attn = jnp.concatenate(outs, axis=0) if s > 1 else outs[0]   # (s*nt, E), heads merged

    sa = jnp.dot(attn.astype(jnp.bfloat16), wo_ref[...],
                 preferred_element_type=jnp.float32) + bo_ref[...]

    h = x2d + sa                                                 # add & LayerNorm 1
    mu = jnp.mean(h, axis=-1, keepdims=True)
    var = jnp.mean((h - mu) ** 2, axis=-1, keepdims=True)
    h = (h - mu) * jax.lax.rsqrt(var + eps) * g1_ref[...] + be1_ref[...]

    f = jnp.dot(h.astype(jnp.bfloat16), w1_ref[...],             # FFN (ReLU)
                preferred_element_type=jnp.float32) + b1_ref[...]
    f = jnp.maximum(f, 0.0)
    f = jnp.dot(f.astype(jnp.bfloat16), w2_ref[...],
                preferred_element_type=jnp.float32) + b2_ref[...]

    h2 = h + f                                                   # add & LayerNorm 2
    mu2 = jnp.mean(h2, axis=-1, keepdims=True)
    var2 = jnp.mean((h2 - mu2) ** 2, axis=-1, keepdims=True)
    y = (h2 - mu2) * jax.lax.rsqrt(var2 + eps) * g2_ref[...] + be2_ref[...]
    o_ref[...] = y.reshape(s, nt, e).astype(o_ref.dtype)


def encoder_layer(x, p):
    """nn.TransformerEncoderLayer, self-attention over axis 0, batched over axis 1."""
    s, n, e = x.shape
    n_pad = ((n + N_TILE - 1) // N_TILE) * N_TILE
    if n_pad != n:
        x = jnp.pad(x, ((0, 0), (0, n_pad - n), (0, 0)))
    y = pl.pallas_call(
        functools.partial(_encoder_layer_kernel, eps=LN_EPS),
        grid=(n_pad // N_TILE,),
        in_specs=[pl.BlockSpec((s, N_TILE, e), lambda i: (0, i, 0)),
                  _const_spec(p["w_in"].shape), _const_spec(p["b_in"].shape),
                  _const_spec(p["bd"].shape),
                  _const_spec(p["wo"].shape), _const_spec(p["bo"].shape),
                  _const_spec(p["ln1_g"].shape), _const_spec(p["ln1_b"].shape),
                  _const_spec(p["w1"].shape), _const_spec(p["b1"].shape),
                  _const_spec(p["w2"].shape), _const_spec(p["b2"].shape),
                  _const_spec(p["ln2_g"].shape), _const_spec(p["ln2_b"].shape)],
        out_specs=pl.BlockSpec((s, N_TILE, e), lambda i: (0, i, 0)),
        out_shape=jax.ShapeDtypeStruct((s, n_pad, e), jnp.bfloat16),
        compiler_params=pltpu.CompilerParams(dimension_semantics=("parallel",)),
    )(x, p["w_in"], p["b_in"], p["bd"], p["wo"], p["bo"],
      p["ln1_g"], p["ln1_b"], p["w1"], p["b1"], p["w2"], p["b2"],
      p["ln2_g"], p["ln2_b"])
    return y[:, :n]


# ------------- kernel 2: fused cross-MultiheadAttention + output Linear -------------

def _cross_attn_head_kernel(q_ref, c_ref, wq_ref, bq_ref, wkv_ref, bkv_ref,
                            wo_ref, bo_ref, wout_ref, bout_ref,
                            logits_ref, pw_ref, ctx_ref, *, nhead):
    b, lq, lk = pw_ref.shape
    e = q_ref.shape[-1]
    dh = e // nhead

    @pl.when(pl.program_id(0) == 0)
    def _():
        qp = jnp.dot(q_ref[...].astype(jnp.bfloat16), wq_ref[...],
                     preferred_element_type=jnp.float32) + bq_ref[...]
        kv = jnp.dot(c_ref[...].astype(jnp.bfloat16), wkv_ref[...],
                     preferred_element_type=jnp.float32) + bkv_ref[...]
        k, v = kv[:, :e], kv[:, e:]

        def split_heads(t, length):
            # (b*length, E) -> (nhead*b, length, dh) via static lane slices;
            # no minor-dim transposes.
            return jnp.concatenate(
                [t[:, h * dh:(h + 1) * dh].reshape(b, length, dh)
                 for h in range(nhead)], axis=0)

        qh = split_heads(qp, lq).astype(jnp.bfloat16)
        kh = split_heads(k, lk).astype(jnp.bfloat16)
        vh = split_heads(v, lk).astype(jnp.bfloat16)

        s = jnp.einsum("bqd,bkd->bqk", qh, kh, preferred_element_type=jnp.float32)
        s = s - jnp.max(s, axis=-1, keepdims=True)
        ex = jnp.exp(s)
        p = ex / jnp.sum(ex, axis=-1, keepdims=True)   # exact: probs are emitted

        o = jnp.einsum("bqk,bkd->bqd", p.astype(jnp.bfloat16), vh,
                       preferred_element_type=jnp.float32)
        a2d = jnp.concatenate(                          # in-kernel head merge, lane-dense
            [o[h * b:(h + 1) * b].reshape(b * lq, dh) for h in range(nhead)], axis=1)

        ctx = jnp.dot(a2d.astype(jnp.bfloat16), wo_ref[...],
                      preferred_element_type=jnp.float32) + bo_ref[...]
        ctx_ref[...] = ctx.astype(jnp.bfloat16)

        pm = p[0:b]                                     # mean over heads (exact, f32)
        for h in range(1, nhead):
            pm = pm + p[h * b:(h + 1) * b]
        pw_ref[...] = pm * (1.0 / nhead)

    # Vocab projection, tiled over V (runs every grid step on the resident ctx).
    logits_ref[...] = jnp.dot(ctx_ref[...], wout_ref[...],
                              preferred_element_type=jnp.float32) + bout_ref[...]


def cross_attn_output_head(q_enc, c_enc, attn_p, out_w, out_b):
    """nn.MultiheadAttention(query, key=value) fused with the final vocab Linear."""
    b, lq, e = q_enc.shape
    lk = c_enc.shape[1]
    vocab = out_w.shape[1]
    v_tile = V_TILE if vocab % V_TILE == 0 else vocab
    q2d = q_enc.reshape(b * lq, e)
    c2d = c_enc.reshape(b * lk, e)
    logits2d, pw = pl.pallas_call(
        functools.partial(_cross_attn_head_kernel, nhead=NHEAD),
        grid=(vocab // v_tile,),
        in_specs=[_const_spec((b * lq, e)), _const_spec((b * lk, e)),
                  _const_spec(attn_p["wq"].shape), _const_spec(attn_p["bq"].shape),
                  _const_spec(attn_p["wkv"].shape), _const_spec(attn_p["bkv"].shape),
                  _const_spec(attn_p["wo"].shape), _const_spec(attn_p["bo"].shape),
                  pl.BlockSpec((e, v_tile), lambda j: (0, j)),
                  pl.BlockSpec((1, v_tile), lambda j: (0, j))],
        out_specs=(pl.BlockSpec((b * lq, v_tile), lambda j: (0, j)),
                   pl.BlockSpec((b, lq, lk), lambda j: (0, 0, 0))),
        out_shape=(jax.ShapeDtypeStruct((b * lq, vocab), jnp.float32),
                   jax.ShapeDtypeStruct((b, lq, lk), jnp.float32)),
        scratch_shapes=[pltpu.VMEM((b * lq, e), jnp.bfloat16)],
        compiler_params=pltpu.CompilerParams(dimension_semantics=("arbitrary",)),
    )(q2d, c2d, attn_p["wq"], attn_p["bq"], attn_p["wkv"], attn_p["bkv"],
      attn_p["wo"], attn_p["bo"], out_w, out_b)
    return logits2d, pw


# ----------------------------- model glue (one jit) -----------------------------

def simple_qa_forward(params, question, context):
    """Faithful SimpleQASystem.forward (eval mode): returns (logits, attn_weights)."""
    # TODO(synk): nn.Embedding lookup is a tiny gather; kept as an XLA take.
    emb = params["emb"]
    q_emb = jnp.take(emb, question, axis=0)    # (B, Sq, E) bf16
    c_emb = jnp.take(emb, context, axis=0)     # (B, Sc, E) bf16
    bsz, sq, _ = q_emb.shape
    sc = c_emb.shape[1]

    # batch_first=False => the encoder self-attends over axis 0 (= B) and is
    # batched over axis 1 (= S); question and context only differ in that batch
    # axis, so both go through ONE fused encoder call.
    x = jnp.concatenate([q_emb, c_emb], axis=1)        # (B, Sq+Sc, E)
    enc = encoder_layer(x, params["encoder"])          # (B, Sq+Sc, E) bf16
    q_enc = enc[:, :sq]
    c_enc = enc[:, sq:sq + sc]

    logits2d, attn_weights = cross_attn_output_head(
        q_enc, c_enc, params["attn"], params["out_w"], params["out_b"])
    vocab = params["out_w"].shape[1]
    logits = logits2d.reshape(bsz, sq, vocab)          # rows already (batch, seq)
    return logits, attn_weights


# --------------------------------- parameters ---------------------------------

def init_params(key, vocab_size, embedding_dim, dim_ff):
    e = embedding_dim
    dh = e // NHEAD
    q_scale = 1.0 / math.sqrt(dh)
    ks = iter(jax.random.split(key, 24))

    def dense(fan_in, fan_out, w_scale=0.02):
        w = jax.random.normal(next(ks), (fan_in, fan_out), jnp.float32) * w_scale
        b = jax.random.normal(next(ks), (1, fan_out), jnp.float32) * 0.01
        return w, b

    emb = (jax.random.normal(next(ks), (vocab_size, e), jnp.float32) * 0.02
           ).astype(jnp.bfloat16)

    # Encoder: packed Wq|Wk|Wv with the softmax scale folded into the Q columns.
    w_in, b_in = dense(e, 3 * e)
    w_in = w_in.at[:, :e].multiply(q_scale)
    b_in = b_in.at[:, :e].multiply(q_scale)
    wo_e, bo_e = dense(e, e)
    w1, b1 = dense(e, dim_ff)
    w2, b2 = dense(dim_ff, e)
    bd = jnp.kron(jnp.eye(NHEAD, dtype=jnp.float32),
                  jnp.ones((dh, dh), jnp.float32)).astype(jnp.bfloat16)
    encoder = dict(
        w_in=w_in.astype(jnp.bfloat16), b_in=b_in, bd=bd,
        wo=wo_e.astype(jnp.bfloat16), bo=bo_e,
        ln1_g=jnp.ones((1, e), jnp.float32), ln1_b=jnp.zeros((1, e), jnp.float32),
        w1=w1.astype(jnp.bfloat16), b1=b1,
        w2=w2.astype(jnp.bfloat16), b2=b2,
        ln2_g=jnp.ones((1, e), jnp.float32), ln2_b=jnp.zeros((1, e), jnp.float32),
    )

    # Cross-attention: Wq (scale folded) and packed Wk|Wv.
    wq, bq = dense(e, e)
    wq = wq * q_scale
    bq = bq * q_scale
    wkv, bkv = dense(e, 2 * e)
    wo_a, bo_a = dense(e, e)
    attn = dict(wq=wq.astype(jnp.bfloat16), bq=bq,
                wkv=wkv.astype(jnp.bfloat16), bkv=bkv,
                wo=wo_a.astype(jnp.bfloat16), bo=bo_a)

    out_w, out_b = dense(e, vocab_size)
    return dict(emb=emb, encoder=encoder, attn=attn,
                out_w=out_w.astype(jnp.bfloat16), out_b=out_b)


# ------------------------------------ main ------------------------------------

if __name__ == "__main__":
    vocab_size = 512            # multiple of V_TILE -> lane-dense, V-tiled logits
    embedding_dim = 128         # nhead=8 -> head dim 16
    dim_ff = 4 * embedding_dim
    B, Sq, Sc = 2, 8, 16

    key = jax.random.PRNGKey(0)
    pkey, qkey, ckey = jax.random.split(key, 3)

    params = init_params(pkey, vocab_size, embedding_dim, dim_ff)
    question = jax.random.randint(qkey, (B, Sq), 0, vocab_size, jnp.int32)
    context = jax.random.randint(ckey, (B, Sc), 0, vocab_size, jnp.int32)

    fwd = jax.jit(simple_qa_forward)            # one jit for the whole forward
    logits, attn_weights = fwd(params, question, context)
    logits, attn_weights = jax.block_until_ready((logits, attn_weights))

    assert logits.shape == (B, Sq, vocab_size)
    assert attn_weights.shape == (B, Sq, Sc)
    assert bool(jnp.all(jnp.isfinite(logits)))
    assert bool(jnp.all(jnp.isfinite(attn_weights)))
    # emitted probabilities use exact softmax normalization -> rows sum to 1
    assert bool(jnp.allclose(attn_weights.sum(-1), 1.0, atol=1e-2))
    print("KERNEL_OK")
</pallas_src>

<mosaic_0001>
module attributes {stable_mosaic.version = 11 : i64} {
  func.func @_encoder_layer_kernel(%arg0: i32, %arg1: memref<2x16x128xbf16, #tpu.memory_space<vmem>>, %arg2: memref<128x384xbf16, #tpu.memory_space<vmem>>, %arg3: memref<1x384xf32, #tpu.memory_space<vmem>>, %arg4: memref<128x128xbf16, #tpu.memory_space<vmem>>, %arg5: memref<128x128xbf16, #tpu.memory_space<vmem>>, %arg6: memref<1x128xf32, #tpu.memory_space<vmem>>, %arg7: memref<1x128xf32, #tpu.memory_space<vmem>>, %arg8: memref<1x128xf32, #tpu.memory_space<vmem>>, %arg9: memref<128x512xbf16, #tpu.memory_space<vmem>>, %arg10: memref<1x512xf32, #tpu.memory_space<vmem>>, %arg11: memref<512x128xbf16, #tpu.memory_space<vmem>>, %arg12: memref<1x128xf32, #tpu.memory_space<vmem>>, %arg13: memref<1x128xf32, #tpu.memory_space<vmem>>, %arg14: memref<1x128xf32, #tpu.memory_space<vmem>>, %arg15: memref<2x16x128xbf16, #tpu.memory_space<vmem>>) attributes {dimension_semantics = [#tpu.dimension_semantics<parallel>], iteration_bounds = array<i64: 2>, scalar_prefetch = 0 : i64, scratch_operands = 0 : i64, tpu.core_type = #tpu.core_type<tc>, window_params = [{transform_indices = @transform_0, window_bounds = array<i64: 2, 16, 128>}, {pipeline_mode = #tpu.pipeline_mode<synchronous>, transform_indices = @transform_1, window_bounds = array<i64: 128, 384>}, {pipeline_mode = #tpu.pipeline_mode<synchronous>, transform_indices = @transform_2, window_bounds = array<i64: 1, 384>}, {pipeline_mode = #tpu.pipeline_mode<synchronous>, transform_indices = @transform_3, window_bounds = array<i64: 128, 128>}, {pipeline_mode = #tpu.pipeline_mode<synchronous>, transform_indices = @transform_4, window_bounds = array<i64: 128, 128>}, {pipeline_mode = #tpu.pipeline_mode<synchronous>, transform_indices = @transform_5, window_bounds = array<i64: 1, 128>}, {pipeline_mode = #tpu.pipeline_mode<synchronous>, transform_indices = @transform_6, window_bounds = array<i64: 1, 128>}, {pipeline_mode = #tpu.pipeline_mode<synchronous>, transform_indices = @transform_7, window_bounds = array<i64: 1, 128>}, {pipeline_mode = #tpu.pipeline_mode<synchronous>, transform_indices = @transform_8, window_bounds = array<i64: 128, 512>}, {pipeline_mode = #tpu.pipeline_mode<synchronous>, transform_indices = @transform_9, window_bounds = array<i64: 1, 512>}, {pipeline_mode = #tpu.pipeline_mode<synchronous>, transform_indices = @transform_10, window_bounds = array<i64: 512, 128>}, {pipeline_mode = #tpu.pipeline_mode<synchronous>, transform_indices = @transform_11, window_bounds = array<i64: 1, 128>}, {pipeline_mode = #tpu.pipeline_mode<synchronous>, transform_indices = @transform_12, window_bounds = array<i64: 1, 128>}, {pipeline_mode = #tpu.pipeline_mode<synchronous>, transform_indices = @transform_13, window_bounds = array<i64: 1, 128>}, {transform_indices = @transform_14, window_bounds = array<i64: 2, 16, 128>}]} {
    %c0 = arith.constant 0 : index
    %c0_0 = arith.constant 0 : index
    %c0_1 = arith.constant 0 : index
    %0 = vector.load %arg1[%c0, %c0_0, %c0_1] : memref<2x16x128xbf16, #tpu.memory_space<vmem>>, vector<2x16x128xbf16>
    %1 = arith.extf %0 : vector<2x16x128xbf16> to vector<2x16x128xf32>
    %2 = vector.shape_cast %1 : vector<2x16x128xf32> to vector<32x128xf32>
    %3 = arith.truncf %2 : vector<32x128xf32> to vector<32x128xbf16>
    %c0_2 = arith.constant 0 : index
    %c0_3 = arith.constant 0 : index
    %4 = vector.load %arg2[%c0_2, %c0_3] : memref<128x384xbf16, #tpu.memory_space<vmem>>, vector<128x384xbf16>
    %cst = arith.constant dense<0.000000e+00> : vector<32x384xf32>
    %5 = tpu.matmul %3, %4, %cst {dimension_numbers = #tpu.dot_dimension_numbers<[1], [0], [0], [1], [0, 0, 1, 1], [], []>} : vector<32x128xbf16>, vector<128x384xbf16>, vector<32x384xf32> -> vector<32x384xf32>
    %c0_4 = arith.constant 0 : index
    %c0_5 = arith.constant 0 : index
    %6 = vector.load %arg3[%c0_4, %c0_5] : memref<1x384xf32, #tpu.memory_space<vmem>>, vector<1x384xf32>
    %7 = vector.broadcast %6 : vector<1x384xf32> to vector<32x384xf32>
    %8 = arith.addf %5, %7 : vector<32x384xf32>
    %9 = vector.extract_strided_slice %8 {offsets = [0, 0], sizes = [32, 128], strides = [1, 1]} : vector<32x384xf32> to vector<32x128xf32>
    %10 = vector.extract_strided_slice %8 {offsets = [0, 128], sizes = [32, 128], strides = [1, 1]} : vector<32x384xf32> to vector<32x128xf32>
    %11 = vector.extract_strided_slice %8 {offsets = [0, 256], sizes = [32, 128], strides = [1, 1]} : vector<32x384xf32> to vector<32x128xf32>
    %c0_6 = arith.constant 0 : index
    %c0_7 = arith.constant 0 : index
    %12 = vector.load %arg4[%c0_6, %c0_7] : memref<128x128xbf16, #tpu.memory_space<vmem>>, vector<128x128xbf16>
    %13 = vector.extract_strided_slice %9 {offsets = [0, 0], sizes = [16, 128], strides = [1, 1]} : vector<32x128xf32> to vector<16x128xf32>
    %14 = vector.extract_strided_slice %10 {offsets = [0, 0], sizes = [16, 128], strides = [1, 1]} : vector<32x128xf32> to vector<16x128xf32>
    %15 = arith.mulf %13, %14 : vector<16x128xf32>
    %16 = arith.truncf %15 : vector<16x128xf32> to vector<16x128xbf16>
    %cst_8 = arith.constant dense<0.000000e+00> : vector<16x128xf32>
    %17 = tpu.matmul %16, %12, %cst_8 {dimension_numbers = #tpu.dot_dimension_numbers<[1], [0], [0], [1], [0, 0, 1, 1], [], []>} : vector<16x128xbf16>, vector<128x128xbf16>, vector<16x128xf32> -> vector<16x128xf32>
    %18 = vector.extract_strided_slice %10 {offsets = [16, 0], sizes = [16, 128], strides = [1, 1]} : vector<32x128xf32> to vector<16x128xf32>
    %19 = arith.mulf %13, %18 : vector<16x128xf32>
    %20 = arith.truncf %19 : vector<16x128xf32> to vector<16x128xbf16>
    %cst_9 = arith.constant dense<0.000000e+00> : vector<16x128xf32>
    %21 = tpu.matmul %20, %12, %cst_9 {dimension_numbers = #tpu.dot_dimension_numbers<[1], [0], [0], [1], [0, 0, 1, 1], [], []>} : vector<16x128xbf16>, vector<128x128xbf16>, vector<16x128xf32> -> vector<16x128xf32>
    %22 = arith.maximumf %17, %21 : vector<16x128xf32>
    %23 = arith.subf %17, %22 : vector<16x128xf32>
    %24 = math.exp %23 : vector<16x128xf32>
    %25 = arith.subf %21, %22 : vector<16x128xf32>
    %26 = math.exp %25 : vector<16x128xf32>
    %27 = arith.addf %24, %26 : vector<16x128xf32>
    %28 = tpu.reciprocal %27 {approx = true} : vector<16x128xf32> -> vector<16x128xf32>
    %29 = arith.mulf %24, %28 : vector<16x128xf32>
    %30 = vector.extract_strided_slice %11 {offsets = [0, 0], sizes = [16, 128], strides = [1, 1]} : vector<32x128xf32> to vector<16x128xf32>
    %31 = arith.mulf %29, %30 : vector<16x128xf32>
    %32 = arith.mulf %26, %28 : vector<16x128xf32>
    %33 = vector.extract_strided_slice %11 {offsets = [16, 0], sizes = [16, 128], strides = [1, 1]} : vector<32x128xf32> to vector<16x128xf32>
    %34 = arith.mulf %32, %33 : vector<16x128xf32>
    %35 = arith.addf %31, %34 : vector<16x128xf32>
    %36 = vector.extract_strided_slice %9 {offsets = [16, 0], sizes = [16, 128], strides = [1, 1]} : vector<32x128xf32> to vector<16x128xf32>
    %37 = vector.extract_strided_slice %10 {offsets = [0, 0], sizes = [16, 128], strides = [1, 1]} : vector<32x128xf32> to vector<16x128xf32>
    %38 = arith.mulf %36, %37 : vector<16x128xf32>
    %39 = arith.truncf %38 : vector<16x128xf32> to vector<16x128xbf16>
    %cst_10 = arith.constant dense<0.000000e+00> : vector<16x128xf32>
    %40 = tpu.matmul %39, %12, %cst_10 {dimension_numbers = #tpu.dot_dimension_numbers<[1], [0], [0], [1], [0, 0, 1, 1], [], []>} : vector<16x128xbf16>, vector<128x128xbf16>, vector<16x128xf32> -> vector<16x128xf32>
    %41 = vector.extract_strided_slice %10 {offsets = [16, 0], sizes = [16, 128], strides = [1, 1]} : vector<32x128xf32> to vector<16x128xf32>
    %42 = arith.mulf %36, %41 : vector<16x128xf32>
    %43 = arith.truncf %42 : vector<16x128xf32> to vector<16x128xbf16>
    %cst_11 = arith.constant dense<0.000000e+00> : vector<16x128xf32>
    %44 = tpu.matmul %43, %12, %cst_11 {dimension_numbers = #tpu.dot_dimension_numbers<[1], [0], [0], [1], [0, 0, 1, 1], [], []>} : vector<16x128xbf16>, vector<128x128xbf16>, vector<16x128xf32> -> vector<16x128xf32>
    %45 = arith.maximumf %40, %44 : vector<16x128xf32>
    %46 = arith.subf %40, %45 : vector<16x128xf32>
    %47 = math.exp %46 : vector<16x128xf32>
    %48 = arith.subf %44, %45 : vector<16x128xf32>
    %49 = math.exp %48 : vector<16x128xf32>
    %50 = arith.addf %47, %49 : vector<16x128xf32>
    %51 = tpu.reciprocal %50 {approx = true} : vector<16x128xf32> -> vector<16x128xf32>
    %52 = arith.mulf %47, %51 : vector<16x128xf32>
    %53 = vector.extract_strided_slice %11 {offsets = [0, 0], sizes = [16, 128], strides = [1, 1]} : vector<32x128xf32> to vector<16x128xf32>
    %54 = arith.mulf %52, %53 : vector<16x128xf32>
    %55 = arith.mulf %49, %51 : vector<16x128xf32>
    %56 = vector.extract_strided_slice %11 {offsets = [16, 0], sizes = [16, 128], strides = [1, 1]} : vector<32x128xf32> to vector<16x128xf32>
    %57 = arith.mulf %55, %56 : vector<16x128xf32>
    %58 = arith.addf %54, %57 : vector<16x128xf32>
    %59 = tpu.concatenate %35, %58 in 0 : vector<16x128xf32>, vector<16x128xf32> -> vector<32x128xf32>
    %60 = arith.truncf %59 : vector<32x128xf32> to vector<32x128xbf16>
    %c0_12 = arith.constant 0 : index
    %c0_13 = arith.constant 0 : index
    %61 = vector.load %arg5[%c0_12, %c0_13] : memref<128x128xbf16, #tpu.memory_space<vmem>>, vector<128x128xbf16>
    %cst_14 = arith.constant dense<0.000000e+00> : vector<32x128xf32>
    %62 = tpu.matmul %60, %61, %cst_14 {dimension_numbers = #tpu.dot_dimension_numbers<[1], [0], [0], [1], [0, 0, 1, 1], [], []>} : vector<32x128xbf16>, vector<128x128xbf16>, vector<32x128xf32> -> vector<32x128xf32>
    %c0_15 = arith.constant 0 : index
    %c0_16 = arith.constant 0 : index
    %63 = vector.load %arg6[%c0_15, %c0_16] : memref<1x128xf32, #tpu.memory_space<vmem>>, vector<1x128xf32>
    %64 = vector.broadcast %63 : vector<1x128xf32> to vector<32x128xf32>
    %65 = arith.addf %62, %64 : vector<32x128xf32>
    %66 = arith.addf %2, %65 : vector<32x128xf32>
    %cst_17 = arith.constant dense<0.000000e+00> : vector<32xf32>
    %67 = vector.multi_reduction <add>, %66, %cst_17 [1] : vector<32x128xf32> to vector<32xf32>
    %68 = vector.shape_cast %67 : vector<32xf32> to vector<32x1xf32>
    %cst_18 = arith.constant 1.280000e+02 : f32
    %69 = vector.broadcast %cst_18 : f32 to vector<32x1xf32>
    %70 = arith.divf %68, %69 : vector<32x1xf32>
    %71 = vector.broadcast %70 : vector<32x1xf32> to vector<32x128xf32>
    %72 = arith.subf %66, %71 : vector<32x128xf32>
    %73 = arith.mulf %72, %72 : vector<32x128xf32>
    %cst_19 = arith.constant dense<0.000000e+00> : vector<32xf32>
    %74 = vector.multi_reduction <add>, %73, %cst_19 [1] : vector<32x128xf32> to vector<32xf32>
    %75 = vector.shape_cast %74 : vector<32xf32> to vector<32x1xf32>
    %cst_20 = arith.constant 1.280000e+02 : f32
    %76 = vector.broadcast %cst_20 : f32 to vector<32x1xf32>
    %77 = arith.divf %75, %76 : vector<32x1xf32>
    %78 = vector.broadcast %70 : vector<32x1xf32> to vector<32x128xf32>
    %79 = arith.subf %66, %78 : vector<32x128xf32>
    %cst_21 = arith.constant 9.99999974E-6 : f32
    %80 = vector.broadcast %cst_21 : f32 to vector<32x1xf32>
    %81 = arith.addf %77, %80 : vector<32x1xf32>
    %82 = math.rsqrt %81 : vector<32x1xf32>
    %83 = vector.broadcast %82 : vector<32x1xf32> to vector<32x128xf32>
    %84 = arith.mulf %79, %83 : vector<32x128xf32>
    %c0_22 = arith.constant 0 : index
    %c0_23 = arith.constant 0 : index
    %85 = vector.load %arg7[%c0_22, %c0_23] : memref<1x128xf32, #tpu.memory_space<vmem>>, vector<1x128xf32>
    %86 = vector.broadcast %85 : vector<1x128xf32> to vector<32x128xf32>
    %87 = arith.mulf %84, %86 : vector<32x128xf32>
    %c0_24 = arith.constant 0 : index
    %c0_25 = arith.constant 0 : index
    %88 = vector.load %arg8[%c0_24, %c0_25] : memref<1x128xf32, #tpu.memory_space<vmem>>, vector<1x128xf32>
    %89 = vector.broadcast %88 : vector<1x128xf32> to vector<32x128xf32>
    %90 = arith.addf %87, %89 : vector<32x128xf32>
    %91 = arith.truncf %90 : vector<32x128xf32> to vector<32x128xbf16>
    %c0_26 = arith.constant 0 : index
    %c0_27 = arith.constant 0 : index
    %92 = vector.load %arg9[%c0_26, %c0_27] : memref<128x512xbf16, #tpu.memory_space<vmem>>, vector<128x512xbf16>
    %cst_28 = arith.constant dense<0.000000e+00> : vector<32x512xf32>
    %93 = tpu.matmul %91, %92, %cst_28 {dimension_numbers = #tpu.dot_dimension_numbers<[1], [0], [0], [1], [0, 0, 1, 1], [], []>} : vector<32x128xbf16>, vector<128x512xbf16>, vector<32x512xf32> -> vector<32x512xf32>
    %c0_29 = arith.constant 0 : index
    %c0_30 = arith.constant 0 : index
    %94 = vector.load %arg10[%c0_29, %c0_30] : memref<1x512xf32, #tpu.memory_space<vmem>>, vector<1x512xf32>
    %95 = vector.broadcast %94 : vector<1x512xf32> to vector<32x512xf32>
    %96 = arith.addf %93, %95 : vector<32x512xf32>
    %cst_31 = arith.constant 0.000000e+00 : f32
    %97 = vector.broadcast %cst_31 : f32 to vector<32x512xf32>
    %98 = arith.maximumf %96, %97 : vector<32x512xf32>
    %99 = arith.truncf %98 : vector<32x512xf32> to vector<32x512xbf16>
    %c0_32 = arith.constant 0 : index
    %c0_33 = arith.constant 0 : index
    %100 = vector.load %arg11[%c0_32, %c0_33] : memref<512x128xbf16, #tpu.memory_space<vmem>>, vector<512x128xbf16>
    %cst_34 = arith.constant dense<0.000000e+00> : vector<32x128xf32>
    %101 = tpu.matmul %99, %100, %cst_34 {dimension_numbers = #tpu.dot_dimension_numbers<[1], [0], [0], [1], [0, 0, 1, 1], [], []>} : vector<32x512xbf16>, vector<512x128xbf16>, vector<32x128xf32> -> vector<32x128xf32>
    %c0_35 = arith.constant 0 : index
    %c0_36 = arith.constant 0 : index
    %102 = vector.load %arg12[%c0_35, %c0_36] : memref<1x128xf32, #tpu.memory_space<vmem>>, vector<1x128xf32>
    %103 = vector.broadcast %102 : vector<1x128xf32> to vector<32x128xf32>
    %104 = arith.addf %101, %103 : vector<32x128xf32>
    %105 = arith.addf %90, %104 : vector<32x128xf32>
    %cst_37 = arith.constant dense<0.000000e+00> : vector<32xf32>
    %106 = vector.multi_reduction <add>, %105, %cst_37 [1] : vector<32x128xf32> to vector<32xf32>
    %107 = vector.shape_cast %106 : vector<32xf32> to vector<32x1xf32>
    %cst_38 = arith.constant 1.280000e+02 : f32
    %108 = vector.broadcast %cst_38 : f32 to vector<32x1xf32>
    %109 = arith.divf %107, %108 : vector<32x1xf32>
    %110 = vector.broadcast %109 : vector<32x1xf32> to vector<32x128xf32>
    %111 = arith.subf %105, %110 : vector<32x128xf32>
    %112 = arith.mulf %111, %111 : vector<32x128xf32>
    %cst_39 = arith.constant dense<0.000000e+00> : vector<32xf32>
    %113 = vector.multi_reduction <add>, %112, %cst_39 [1] : vector<32x128xf32> to vector<32xf32>
    %114 = vector.shape_cast %113 : vector<32xf32> to vector<32x1xf32>
    %cst_40 = arith.constant 1.280000e+02 : f32
    %115 = vector.broadcast %cst_40 : f32 to vector<32x1xf32>
    %116 = arith.divf %114, %115 : vector<32x1xf32>
    %117 = vector.broadcast %109 : vector<32x1xf32> to vector<32x128xf32>
    %118 = arith.subf %105, %117 : vector<32x128xf32>
    %cst_41 = arith.constant 9.99999974E-6 : f32
    %119 = vector.broadcast %cst_41 : f32 to vector<32x1xf32>
    %120 = arith.addf %116, %119 : vector<32x1xf32>
    %121 = math.rsqrt %120 : vector<32x1xf32>
    %122 = vector.broadcast %121 : vector<32x1xf32> to vector<32x128xf32>
    %123 = arith.mulf %118, %122 : vector<32x128xf32>
    %c0_42 = arith.constant 0 : index
    %c0_43 = arith.constant 0 : index
    %124 = vector.load %arg13[%c0_42, %c0_43] : memref<1x128xf32, #tpu.memory_space<vmem>>, vector<1x128xf32>
    %125 = vector.broadcast %124 : vector<1x128xf32> to vector<32x128xf32>
    %126 = arith.mulf %123, %125 : vector<32x128xf32>
    %c0_44 = arith.constant 0 : index
    %c0_45 = arith.constant 0 : index
    %127 = vector.load %arg14[%c0_44, %c0_45] : memref<1x128xf32, #tpu.memory_space<vmem>>, vector<1x128xf32>
    %128 = vector.broadcast %127 : vector<1x128xf32> to vector<32x128xf32>
    %129 = arith.addf %126, %128 : vector<32x128xf32>
    %130 = vector.shape_cast %129 : vector<32x128xf32> to vector<2x16x128xf32>
    %131 = arith.truncf %130 : vector<2x16x128xf32> to vector<2x16x128xbf16>
    %c0_46 = arith.constant 0 : index
    %c0_47 = arith.constant 0 : index
    %c0_48 = arith.constant 0 : index
    %132 = vector.load %arg15[%c0_46, %c0_47, %c0_48] : memref<2x16x128xbf16, #tpu.memory_space<vmem>>, vector<2x16x128xbf16>
    tpu.vector_store %arg15[%c0_46, %c0_47, %c0_48], %131 {strides = array<i32>} : memref<2x16x128xbf16, #tpu.memory_space<vmem>>, vector<2x16x128xbf16>,
    return
  }
  func.func @transform_0(%arg0: i32) -> (i32, i32, i32) {
    %c0_i32 = arith.constant 0 : i32
    %c0_i32_0 = arith.constant 0 : i32
    %c0_i32_1 = arith.constant 0 : i32
    return %c0_i32, %arg0, %c0_i32_0 : i32, i32, i32
  }
  func.func @transform_1(%arg0: i32) -> (i32, i32) {
    %c0_i32 = arith.constant 0 : i32
    %c0_i32_0 = arith.constant 0 : i32
    %c0_i32_1 = arith.constant 0 : i32
    return %c0_i32, %c0_i32_0 : i32, i32
  }
  func.func @transform_2(%arg0: i32) -> (i32, i32) {
    %c0_i32 = arith.constant 0 : i32
    %c0_i32_0 = arith.constant 0 : i32
    %c0_i32_1 = arith.constant 0 : i32
    return %c0_i32, %c0_i32_0 : i32, i32
  }
  func.func @transform_3(%arg0: i32) -> (i32, i32) {
    %c0_i32 = arith.constant 0 : i32
    %c0_i32_0 = arith.constant 0 : i32
    %c0_i32_1 = arith.constant 0 : i32
    return %c0_i32, %c0_i32_0 : i32, i32
  }
  func.func @transform_4(%arg0: i32) -> (i32, i32) {
    %c0_i32 = arith.constant 0 : i32
    %c0_i32_0 = arith.constant 0 : i32
    %c0_i32_1 = arith.constant 0 : i32
    return %c0_i32, %c0_i32_0 : i32, i32
  }
  func.func @transform_5(%arg0: i32) -> (i32, i32) {
    %c0_i32 = arith.constant 0 : i32
    %c0_i32_0 = arith.constant 0 : i32
    %c0_i32_1 = arith.constant 0 : i32
    return %c0_i32, %c0_i32_0 : i32, i32
  }
  func.func @transform_6(%arg0: i32) -> (i32, i32) {
    %c0_i32 = arith.constant 0 : i32
    %c0_i32_0 = arith.constant 0 : i32
    %c0_i32_1 = arith.constant 0 : i32
    return %c0_i32, %c0_i32_0 : i32, i32
  }
  func.func @transform_7(%arg0: i32) -> (i32, i32) {
    %c0_i32 = arith.constant 0 : i32
    %c0_i32_0 = arith.constant 0 : i32
    %c0_i32_1 = arith.constant 0 : i32
    return %c0_i32, %c0_i32_0 : i32, i32
  }
  func.func @transform_8(%arg0: i32) -> (i32, i32) {
    %c0_i32 = arith.constant 0 : i32
    %c0_i32_0 = arith.constant 0 : i32
    %c0_i32_1 = arith.constant 0 : i32
    return %c0_i32, %c0_i32_0 : i32, i32
  }
  func.func @transform_9(%arg0: i32) -> (i32, i32) {
    %c0_i32 = arith.constant 0 : i32
    %c0_i32_0 = arith.constant 0 : i32
    %c0_i32_1 = arith.constant 0 : i32
    return %c0_i32, %c0_i32_0 : i32, i32
  }
  func.func @transform_10(%arg0: i32) -> (i32, i32) {
    %c0_i32 = arith.constant 0 : i32
    %c0_i32_0 = arith.constant 0 : i32
    %c0_i32_1 = arith.constant 0 : i32
    return %c0_i32, %c0_i32_0 : i32, i32
  }
  func.func @transform_11(%arg0: i32) -> (i32, i32) {
    %c0_i32 = arith.constant 0 : i32
    %c0_i32_0 = arith.constant 0 : i32
    %c0_i32_1 = arith.constant 0 : i32
    return %c0_i32, %c0_i32_0 : i32, i32
  }
  func.func @transform_12(%arg0: i32) -> (i32, i32) {
    %c0_i32 = arith.constant 0 : i32
    %c0_i32_0 = arith.constant 0 : i32
    %c0_i32_1 = arith.constant 0 : i32
    return %c0_i32, %c0_i32_0 : i32, i32
  }
  func.func @transform_13(%arg0: i32) -> (i32, i32) {
    %c0_i32 = arith.constant 0 : i32
    %c0_i32_0 = arith.constant 0 : i32
    %c0_i32_1 = arith.constant 0 : i32
    return %c0_i32, %c0_i32_0 : i32, i32
  }
  func.func @transform_14(%arg0: i32) -> (i32, i32, i32) {
    %c0_i32 = arith.constant 0 : i32
    %c0_i32_0 = arith.constant 0 : i32
    %c0_i32_1 = arith.constant 0 : i32
    return %c0_i32, %arg0, %c0_i32_0 : i32, i32, i32
  }
}

module attributes {stable_mosaic.version = 11 : i64} {
  func.func @_cross_attn_head_kernel(%arg0: i32, %arg1: memref<16x128xbf16, #tpu.memory_space<vmem>>, %arg2: memref<32x128xbf16, #tpu.memory_space<vmem>>, %arg3: memref<128x128xbf16, #tpu.memory_space<vmem>>, %arg4: memref<1x128xf32, #tpu.memory_space<vmem>>, %arg5: memref<128x256xbf16, #tpu.memory_space<vmem>>, %arg6: memref<1x256xf32, #tpu.memory_space<vmem>>, %arg7: memref<128x128xbf16, #tpu.memory_space<vmem>>, %arg8: memref<1x128xf32, #tpu.memory_space<vmem>>, %arg9: memref<128x256xbf16, #tpu.memory_space<vmem>>, %arg10: memref<1x256xf32, #tpu.memory_space<vmem>>, %arg11: memref<16x256xf32, #tpu.memory_space<vmem>>, %arg12: memref<2x8x16xf32, #tpu.memory_space<vmem>>, %arg13: memref<16x128xbf16, #tpu.memory_space<vmem>>) attributes {dimension_semantics = [#tpu.dimension_semantics<arbitrary>], iteration_bounds = array<i64: 2>, scalar_prefetch = 0 : i64, scratch_operands = 1 : i64, tpu.core_type = #tpu.core_type<tc>, window_params = [{pipeline_mode = #tpu.pipeline_mode<synchronous>, transform_indices = @transform_0, window_bounds = array<i64: 16, 128>}, {pipeline_mode = #tpu.pipeline_mode<synchronous>, transform_indices = @transform_1, window_bounds = array<i64: 32, 128>}, {pipeline_mode = #tpu.pipeline_mode<synchronous>, transform_indices = @transform_2, window_bounds = array<i64: 128, 128>}, {pipeline_mode = #tpu.pipeline_mode<synchronous>, transform_indices = @transform_3, window_bounds = array<i64: 1, 128>}, {pipeline_mode = #tpu.pipeline_mode<synchronous>, transform_indices = @transform_4, window_bounds = array<i64: 128, 256>}, {pipeline_mode = #tpu.pipeline_mode<synchronous>, transform_indices = @transform_5, window_bounds = array<i64: 1, 256>}, {pipeline_mode = #tpu.pipeline_mode<synchronous>, transform_indices = @transform_6, window_bounds = array<i64: 128, 128>}, {pipeline_mode = #tpu.pipeline_mode<synchronous>, transform_indices = @transform_7, window_bounds = array<i64: 1, 128>}, {transform_indices = @transform_8, window_bounds = array<i64: 128, 256>}, {transform_indices = @transform_9, window_bounds = array<i64: 1, 256>}, {transform_indices = @transform_10, window_bounds = array<i64: 16, 256>}, {pipeline_mode = #tpu.pipeline_mode<synchronous>, transform_indices = @transform_11, window_bounds = array<i64: 2, 8, 16>}]} {
    %c0_i32 = arith.constant 0 : i32
    %0 = arith.cmpi eq, %arg0, %c0_i32 : i32
    %1 = arith.extui %0 : i1 to i32
    %c0_i32_0 = arith.constant 0 : i32
    %2 = arith.cmpi ne, %1, %c0_i32_0 : i32
    scf.if %2 {
      %c0_8 = arith.constant 0 : index
      %c0_9 = arith.constant 0 : index
      %10 = vector.load %arg1[%c0_8, %c0_9] : memref<16x128xbf16, #tpu.memory_space<vmem>>, vector<16x128xbf16>
      %c0_10 = arith.constant 0 : index
      %c0_11 = arith.constant 0 : index
      %11 = vector.load %arg3[%c0_10, %c0_11] : memref<128x128xbf16, #tpu.memory_space<vmem>>, vector<128x128xbf16>
      %cst_12 = arith.constant dense<0.000000e+00> : vector<16x128xf32>
      %12 = tpu.matmul %10, %11, %cst_12 {dimension_numbers = #tpu.dot_dimension_numbers<[1], [0], [0], [1], [0, 0, 1, 1], [], []>} : vector<16x128xbf16>, vector<128x128xbf16>, vector<16x128xf32> -> vector<16x128xf32>
      %c0_13 = arith.constant 0 : index
      %c0_14 = arith.constant 0 : index
      %13 = vector.load %arg4[%c0_13, %c0_14] : memref<1x128xf32, #tpu.memory_space<vmem>>, vector<1x128xf32>
      %14 = vector.broadcast %13 : vector<1x128xf32> to vector<16x128xf32>
      %15 = arith.addf %12, %14 : vector<16x128xf32>
      %c0_15 = arith.constant 0 : index
      %c0_16 = arith.constant 0 : index
      %16 = vector.load %arg2[%c0_15, %c0_16] : memref<32x128xbf16, #tpu.memory_space<vmem>>, vector<32x128xbf16>
      %c0_17 = arith.constant 0 : index
      %c0_18 = arith.constant 0 : index
      %17 = vector.load %arg5[%c0_17, %c0_18] : memref<128x256xbf16, #tpu.memory_space<vmem>>, vector<128x256xbf16>
      %cst_19 = arith.constant dense<0.000000e+00> : vector<32x256xf32>
      %18 = tpu.matmul %16, %17, %cst_19 {dimension_numbers = #tpu.dot_dimension_numbers<[1], [0], [0], [1], [0, 0, 1, 1], [], []>} : vector<32x128xbf16>, vector<128x256xbf16>, vector<32x256xf32> -> vector<32x256xf32>
      %c0_20 = arith.constant 0 : index
      %c0_21 = arith.constant 0 : index
      %19 = vector.load %arg6[%c0_20, %c0_21] : memref<1x256xf32, #tpu.memory_space<vmem>>, vector<1x256xf32>
      %20 = vector.broadcast %19 : vector<1x256xf32> to vector<32x256xf32>
      %21 = arith.addf %18, %20 : vector<32x256xf32>
      %22 = vector.extract_strided_slice %21 {offsets = [0, 0], sizes = [32, 128], strides = [1, 1]} : vector<32x256xf32> to vector<32x128xf32>
      %23 = vector.extract_strided_slice %21 {offsets = [0, 128], sizes = [32, 128], strides = [1, 1]} : vector<32x256xf32> to vector<32x128xf32>
      %24 = vector.extract_strided_slice %15 {offsets = [0, 0], sizes = [16, 16], strides = [1, 1]} : vector<16x128xf32> to vector<16x16xf32>
      %25 = vector.shape_cast %24 : vector<16x16xf32> to vector<2x8x16xf32>
      %26 = vector.extract_strided_slice %15 {offsets = [0, 16], sizes = [16, 16], strides = [1, 1]} : vector<16x128xf32> to vector<16x16xf32>
      %27 = vector.shape_cast %26 : vector<16x16xf32> to vector<2x8x16xf32>
      %28 = vector.extract_strided_slice %15 {offsets = [0, 32], sizes = [16, 16], strides = [1, 1]} : vector<16x128xf32> to vector<16x16xf32>
      %29 = vector.shape_cast %28 : vector<16x16xf32> to vector<2x8x16xf32>
      %30 = vector.extract_strided_slice %15 {offsets = [0, 48], sizes = [16, 16], strides = [1, 1]} : vector<16x128xf32> to vector<16x16xf32>
      %31 = vector.shape_cast %30 : vector<16x16xf32> to vector<2x8x16xf32>
      %32 = vector.extract_strided_slice %15 {offsets = [0, 64], sizes = [16, 16], strides = [1, 1]} : vector<16x128xf32> to vector<16x16xf32>
      %33 = vector.shape_cast %32 : vector<16x16xf32> to vector<2x8x16xf32>
      %34 = vector.extract_strided_slice %15 {offsets = [0, 80], sizes = [16, 16], strides = [1, 1]} : vector<16x128xf32> to vector<16x16xf32>
      %35 = vector.shape_cast %34 : vector<16x16xf32> to vector<2x8x16xf32>
      %36 = vector.extract_strided_slice %15 {offsets = [0, 96], sizes = [16, 16], strides = [1, 1]} : vector<16x128xf32> to vector<16x16xf32>
      %37 = vector.shape_cast %36 : vector<16x16xf32> to vector<2x8x16xf32>
      %38 = vector.extract_strided_slice %15 {offsets = [0, 112], sizes = [16, 16], strides = [1, 1]} : vector<16x128xf32> to vector<16x16xf32>
      %39 = vector.shape_cast %38 : vector<16x16xf32> to vector<2x8x16xf32>
      %40 = tpu.concatenate %25, %27, %29, %31, %33, %35, %37, %39 in 0 : vector<2x8x16xf32>, vector<2x8x16xf32>, vector<2x8x16xf32>, vector<2x8x16xf32>, vector<2x8x16xf32>, vector<2x8x16xf32>, vector<2x8x16xf32>, vector<2x8x16xf32> -> vector<16x8x16xf32>
      %41 = arith.truncf %40 : vector<16x8x16xf32> to vector<16x8x16xbf16>
      %42 = vector.extract_strided_slice %22 {offsets = [0, 0], sizes = [32, 16], strides = [1, 1]} : vector<32x128xf32> to vector<32x16xf32>
      %43 = vector.shape_cast %42 : vector<32x16xf32> to vector<2x16x16xf32>
      %44 = vector.extract_strided_slice %22 {offsets = [0, 16], sizes = [32, 16], strides = [1, 1]} : vector<32x128xf32> to vector<32x16xf32>
      %45 = vector.shape_cast %44 : vector<32x16xf32> to vector<2x16x16xf32>
      %46 = vector.extract_strided_slice %22 {offsets = [0, 32], sizes = [32, 16], strides = [1, 1]} : vector<32x128xf32> to vector<32x16xf32>
      %47 = vector.shape_cast %46 : vector<32x16xf32> to vector<2x16x16xf32>
      %48 = vector.extract_strided_slice %22 {offsets = [0, 48], sizes = [32, 16], strides = [1, 1]} : vector<32x128xf32> to vector<32x16xf32>
      %49 = vector.shape_cast %48 : vector<32x16xf32> to vector<2x16x16xf32>
      %50 = vector.extract_strided_slice %22 {offsets = [0, 64], sizes = [32, 16], strides = [1, 1]} : vector<32x128xf32> to vector<32x16xf32>
      %51 = vector.shape_cast %50 : vector<32x16xf32> to vector<2x16x16xf32>
      %52 = vector.extract_strided_slice %22 {offsets = [0, 80], sizes = [32, 16], strides = [1, 1]} : vector<32x128xf32> to vector<32x16xf32>
      %53 = vector.shape_cast %52 : vector<32x16xf32> to vector<2x16x16xf32>
      %54 = vector.extract_strided_slice %22 {offsets = [0, 96], sizes = [32, 16], strides = [1, 1]} : vector<32x128xf32> to vector<32x16xf32>
      %55 = vector.shape_cast %54 : vector<32x16xf32> to vector<2x16x16xf32>
      %56 = vector.extract_strided_slice %22 {offsets = [0, 112], sizes = [32, 16], strides = [1, 1]} : vector<32x128xf32> to vector<32x16xf32>
      %57 = vector.shape_cast %56 : vector<32x16xf32> to vector<2x16x16xf32>
      %58 = tpu.concatenate %43, %45, %47, %49, %51, %53, %55, %57 in 0 : vector<2x16x16xf32>, vector<2x16x16xf32>, vector<2x16x16xf32>, vector<2x16x16xf32>, vector<2x16x16xf32>, vector<2x16x16xf32>, vector<2x16x16xf32>, vector<2x16x16xf32> -> vector<16x16x16xf32>
      %59 = arith.truncf %58 : vector<16x16x16xf32> to vector<16x16x16xbf16>
      %60 = vector.extract_strided_slice %23 {offsets = [0, 0], sizes = [32, 16], strides = [1, 1]} : vector<32x128xf32> to vector<32x16xf32>
      %61 = vector.shape_cast %60 : vector<32x16xf32> to vector<2x16x16xf32>
      %62 = vector.extract_strided_slice %23 {offsets = [0, 16], sizes = [32, 16], strides = [1, 1]} : vector<32x128xf32> to vector<32x16xf32>
      %63 = vector.shape_cast %62 : vector<32x16xf32> to vector<2x16x16xf32>
      %64 = vector.extract_strided_slice %23 {offsets = [0, 32], sizes = [32, 16], strides = [1, 1]} : vector<32x128xf32> to vector<32x16xf32>
      %65 = vector.shape_cast %64 : vector<32x16xf32> to vector<2x16x16xf32>
      %66 = vector.extract_strided_slice %23 {offsets = [0, 48], sizes = [32, 16], strides = [1, 1]} : vector<32x128xf32> to vector<32x16xf32>
      %67 = vector.shape_cast %66 : vector<32x16xf32> to vector<2x16x16xf32>
      %68 = vector.extract_strided_slice %23 {offsets = [0, 64], sizes = [32, 16], strides = [1, 1]} : vector<32x128xf32> to vector<32x16xf32>
      %69 = vector.shape_cast %68 : vector<32x16xf32> to vector<2x16x16xf32>
      %70 = vector.extract_strided_slice %23 {offsets = [0, 80], sizes = [32, 16], strides = [1, 1]} : vector<32x128xf32> to vector<32x16xf32>
      %71 = vector.shape_cast %70 : vector<32x16xf32> to vector<2x16x16xf32>
      %72 = vector.extract_strided_slice %23 {offsets = [0, 96], sizes = [32, 16], strides = [1, 1]} : vector<32x128xf32> to vector<32x16xf32>
      %73 = vector.shape_cast %72 : vector<32x16xf32> to vector<2x16x16xf32>
      %74 = vector.extract_strided_slice %23 {offsets = [0, 112], sizes = [32, 16], strides = [1, 1]} : vector<32x128xf32> to vector<32x16xf32>
      %75 = vector.shape_cast %74 : vector<32x16xf32> to vector<2x16x16xf32>
      %76 = tpu.concatenate %61, %63, %65, %67, %69, %71, %73, %75 in 0 : vector<2x16x16xf32>, vector<2x16x16xf32>, vector<2x16x16xf32>, vector<2x16x16xf32>, vector<2x16x16xf32>, vector<2x16x16xf32>, vector<2x16x16xf32>, vector<2x16x16xf32> -> vector<16x16x16xf32>
      %77 = arith.truncf %76 : vector<16x16x16xf32> to vector<16x16x16xbf16>
      "tpu.trace_start"() <{level = 10 : i32, message = "bqd,bkd->bqk"}> : () -> ()
      %cst_22 = arith.constant dense<0.000000e+00> : vector<16x8x16xf32>
      %78 = tpu.matmul %41, %59, %cst_22 {dimension_numbers = #tpu.dot_dimension_numbers<[2], [2], [1], [1], [0, 0, 0, 1, 1, 1], [0], [0]>} : vector<16x8x16xbf16>, vector<16x16x16xbf16>, vector<16x8x16xf32> -> vector<16x8x16xf32>
      "tpu.trace_stop"() : () -> ()
      %cst_23 = arith.constant dense<0xFF800000> : vector<16x8xf32>
      %79 = vector.multi_reduction <maximumf>, %78, %cst_23 [2] : vector<16x8x16xf32> to vector<16x8xf32>
      %80 = vector.shape_cast %79 : vector<16x8xf32> to vector<16x8x1xf32>
      %81 = vector.broadcast %80 : vector<16x8x1xf32> to vector<16x8x16xf32>
      %82 = arith.subf %78, %81 : vector<16x8x16xf32>
      %83 = math.exp %82 : vector<16x8x16xf32>
      %cst_24 = arith.constant dense<0.000000e+00> : vector<16x8xf32>
      %84 = vector.multi_reduction <add>, %83, %cst_24 [2] : vector<16x8x16xf32> to vector<16x8xf32>
      %85 = vector.shape_cast %84 : vector<16x8xf32> to vector<16x8x1xf32>
      %86 = vector.broadcast %85 : vector<16x8x1xf32> to vector<16x8x16xf32>
      %87 = arith.divf %83, %86 : vector<16x8x16xf32>
      %88 = arith.truncf %87 : vector<16x8x16xf32> to vector<16x8x16xbf16>
      "tpu.trace_start"() <{level = 10 : i32, message = "bqk,bkd->bqd"}> : () -> ()
      %cst_25 = arith.constant dense<0.000000e+00> : vector<16x8x16xf32>
      %89 = tpu.matmul %88, %77, %cst_25 {dimension_numbers = #tpu.dot_dimension_numbers<[2], [1], [1], [2], [0, 0, 0, 1, 1, 2], [0], [0]>} : vector<16x8x16xbf16>, vector<16x16x16xbf16>, vector<16x8x16xf32> -> vector<16x8x16xf32>
      "tpu.trace_stop"() : () -> ()
      %90 = vector.extract_strided_slice %89 {offsets = [0, 0, 0], sizes = [2, 8, 16], strides = [1, 1, 1]} : vector<16x8x16xf32> to vector<2x8x16xf32>
      %91 = vector.shape_cast %90 : vector<2x8x16xf32> to vector<16x16xf32>
      %92 = vector.extract_strided_slice %89 {offsets = [2, 0, 0], sizes = [2, 8, 16], strides = [1, 1, 1]} : vector<16x8x16xf32> to vector<2x8x16xf32>
      %93 = vector.shape_cast %92 : vector<2x8x16xf32> to vector<16x16xf32>
      %94 = vector.extract_strided_slice %89 {offsets = [4, 0, 0], sizes = [2, 8, 16], strides = [1, 1, 1]} : vector<16x8x16xf32> to vector<2x8x16xf32>
      %95 = vector.shape_cast %94 : vector<2x8x16xf32> to vector<16x16xf32>
      %96 = vector.extract_strided_slice %89 {offsets = [6, 0, 0], sizes = [2, 8, 16], strides = [1, 1, 1]} : vector<16x8x16xf32> to vector<2x8x16xf32>
      %97 = vector.shape_cast %96 : vector<2x8x16xf32> to vector<16x16xf32>
      %98 = vector.extract_strided_slice %89 {offsets = [8, 0, 0], sizes = [2, 8, 16], strides = [1, 1, 1]} : vector<16x8x16xf32> to vector<2x8x16xf32>
      %99 = vector.shape_cast %98 : vector<2x8x16xf32> to vector<16x16xf32>
      %100 = vector.extract_strided_slice %89 {offsets = [10, 0, 0], sizes = [2, 8, 16], strides = [1, 1, 1]} : vector<16x8x16xf32> to vector<2x8x16xf32>
      %101 = vector.shape_cast %100 : vector<2x8x16xf32> to vector<16x16xf32>
      %102 = vector.extract_strided_slice %89 {offsets = [12, 0, 0], sizes = [2, 8, 16], strides = [1, 1, 1]} : vector<16x8x16xf32> to vector<2x8x16xf32>
      %103 = vector.shape_cast %102 : vector<2x8x16xf32> to vector<16x16xf32>
      %104 = vector.extract_strided_slice %89 {offsets = [14, 0, 0], sizes = [2, 8, 16], strides = [1, 1, 1]} : vector<16x8x16xf32> to vector<2x8x16xf32>
      %105 = vector.shape_cast %104 : vector<2x8x16xf32> to vector<16x16xf32>
      %106 = tpu.concatenate %91, %93, %95, %97, %99, %101, %103, %105 in 1 : vector<16x16xf32>, vector<16x16xf32>, vector<16x16xf32>, vector<16x16xf32>, vector<16x16xf32>, vector<16x16xf32>, vector<16x16xf32>, vector<16x16xf32> -> vector<16x128xf32>
      %107 = arith.truncf %106 : vector<16x128xf32> to vector<16x128xbf16>
      %c0_26 = arith.constant 0 : index
      %c0_27 = arith.constant 0 : index
      %108 = vector.load %arg7[%c0_26, %c0_27] : memref<128x128xbf16, #tpu.memory_space<vmem>>, vector<128x128xbf16>
      %cst_28 = arith.constant dense<0.000000e+00> : vector<16x128xf32>
      %109 = tpu.matmul %107, %108, %cst_28 {dimension_numbers = #tpu.dot_dimension_numbers<[1], [0], [0], [1], [0, 0, 1, 1], [], []>} : vector<16x128xbf16>, vector<128x128xbf16>, vector<16x128xf32> -> vector<16x128xf32>
      %c0_29 = arith.constant 0 : index
      %c0_30 = arith.constant 0 : index
      %110 = vector.load %arg8[%c0_29, %c0_30] : memref<1x128xf32, #tpu.memory_space<vmem>>, vector<1x128xf32>
      %111 = vector.broadcast %110 : vector<1x128xf32> to vector<16x128xf32>
      %112 = arith.addf %109, %111 : vector<16x128xf32>
      %113 = arith.truncf %112 : vector<16x128xf32> to vector<16x128xbf16>
      %c0_31 = arith.constant 0 : index
      %c0_32 = arith.constant 0 : index
      %114 = vector.load %arg13[%c0_31, %c0_32] : memref<16x128xbf16, #tpu.memory_space<vmem>>, vector<16x128xbf16>
      tpu.vector_store %arg13[%c0_31, %c0_32], %113 {strides = array<i32>} : memref<16x128xbf16, #tpu.memory_space<vmem>>, vector<16x128xbf16>,
      %115 = vector.extract_strided_slice %87 {offsets = [0, 0, 0], sizes = [2, 8, 16], strides = [1, 1, 1]} : vector<16x8x16xf32> to vector<2x8x16xf32>
      %116 = vector.extract_strided_slice %87 {offsets = [2, 0, 0], sizes = [2, 8, 16], strides = [1, 1, 1]} : vector<16x8x16xf32> to vector<2x8x16xf32>
      %117 = arith.addf %115, %116 : vector<2x8x16xf32>
      %118 = vector.extract_strided_slice %87 {offsets = [4, 0, 0], sizes = [2, 8, 16], strides = [1, 1, 1]} : vector<16x8x16xf32> to vector<2x8x16xf32>
      %119 = arith.addf %117, %118 : vector<2x8x16xf32>
      %120 = vector.extract_strided_slice %87 {offsets = [6, 0, 0], sizes = [2, 8, 16], strides = [1, 1, 1]} : vector<16x8x16xf32> to vector<2x8x16xf32>
      %121 = arith.addf %119, %120 : vector<2x8x16xf32>
      %122 = vector.extract_strided_slice %87 {offsets = [8, 0, 0], sizes = [2, 8, 16], strides = [1, 1, 1]} : vector<16x8x16xf32> to vector<2x8x16xf32>
      %123 = arith.addf %121, %122 : vector<2x8x16xf32>
      %124 = vector.extract_strided_slice %87 {offsets = [10, 0, 0], sizes = [2, 8, 16], strides = [1, 1, 1]} : vector<16x8x16xf32> to vector<2x8x16xf32>
      %125 = arith.addf %123, %124 : vector<2x8x16xf32>
      %126 = vector.extract_strided_slice %87 {offsets = [12, 0, 0], sizes = [2, 8, 16], strides = [1, 1, 1]} : vector<16x8x16xf32> to vector<2x8x16xf32>
      %127 = arith.addf %125, %126 : vector<2x8x16xf32>
      %128 = vector.extract_strided_slice %87 {offsets = [14, 0, 0], sizes = [2, 8, 16], strides = [1, 1, 1]} : vector<16x8x16xf32> to vector<2x8x16xf32>
      %129 = arith.addf %127, %128 : vector<2x8x16xf32>
      %cst_33 = arith.constant 1.250000e-01 : f32
      %130 = vector.broadcast %cst_33 : f32 to vector<2x8x16xf32>
      %131 = arith.mulf %129, %130 : vector<2x8x16xf32>
      %c0_34 = arith.constant 0 : index
      %c0_35 = arith.constant 0 : index
      %c0_36 = arith.constant 0 : index
      %132 = vector.load %arg12[%c0_34, %c0_35, %c0_36] : memref<2x8x16xf32, #tpu.memory_space<vmem>>, vector<2x8x16xf32>
      tpu.vector_store %arg12[%c0_34, %c0_35, %c0_36], %131 {strides = array<i32>} : memref<2x8x16xf32, #tpu.memory_space<vmem>>, vector<2x8x16xf32>,
    } else {
    }
    %c0 = arith.constant 0 : index
    %c0_1 = arith.constant 0 : index
    %3 = vector.load %arg13[%c0, %c0_1] : memref<16x128xbf16, #tpu.memory_space<vmem>>, vector<16x128xbf16>
    %c0_2 = arith.constant 0 : index
    %c0_3 = arith.constant 0 : index
    %4 = vector.load %arg9[%c0_2, %c0_3] : memref<128x256xbf16, #tpu.memory_space<vmem>>, vector<128x256xbf16>
    %cst = arith.constant dense<0.000000e+00> : vector<16x256xf32>
    %5 = tpu.matmul %3, %4, %cst {dimension_numbers = #tpu.dot_dimension_numbers<[1], [0], [0], [1], [0, 0, 1, 1], [], []>} : vector<16x128xbf16>, vector<128x256xbf16>, vector<16x256xf32> -> vector<16x256xf32>
    %c0_4 = arith.constant 0 : index
    %c0_5 = arith.constant 0 : index
    %6 = vector.load %arg10[%c0_4, %c0_5] : memref<1x256xf32, #tpu.memory_space<vmem>>, vector<1x256xf32>
    %7 = vector.broadcast %6 : vector<1x256xf32> to vector<16x256xf32>
    %8 = arith.addf %5, %7 : vector<16x256xf32>
    %c0_6 = arith.constant 0 : index
    %c0_7 = arith.constant 0 : index
    %9 = vector.load %arg11[%c0_6, %c0_7] : memref<16x256xf32, #tpu.memory_space<vmem>>, vector<16x256xf32>
    tpu.vector_store %arg11[%c0_6, %c0_7], %8 {strides = array<i32>} : memref<16x256xf32, #tpu.memory_space<vmem>>, vector<16x256xf32>,
    return
  }
  func.func @transform_0(%arg0: i32) -> (i32, i32) {
    %c0_i32 = arith.constant 0 : i32
    %c0_i32_0 = arith.constant 0 : i32
    %c0_i32_1 = arith.constant 0 : i32
    return %c0_i32, %c0_i32_0 : i32, i32
  }
  func.func @transform_1(%arg0: i32) -> (i32, i32) {
    %c0_i32 = arith.constant 0 : i32
    %c0_i32_0 = arith.constant 0 : i32
    %c0_i32_1 = arith.constant 0 : i32
    return %c0_i32, %c0_i32_0 : i32, i32
  }
  func.func @transform_2(%arg0: i32) -> (i32, i32) {
    %c0_i32 = arith.constant 0 : i32
    %c0_i32_0 = arith.constant 0 : i32
    %c0_i32_1 = arith.constant 0 : i32
    return %c0_i32, %c0_i32_0 : i32, i32
  }
  func.func @transform_3(%arg0: i32) -> (i32, i32) {
    %c0_i32 = arith.constant 0 : i32
    %c0_i32_0 = arith.constant 0 : i32
    %c0_i32_1 = arith.constant 0 : i32
    return %c0_i32, %c0_i32_0 : i32, i32
  }
  func.func @transform_4(%arg0: i32) -> (i32, i32) {
    %c0_i32 = arith.constant 0 : i32
    %c0_i32_0 = arith.constant 0 : i32
    %c0_i32_1 = arith.constant 0 : i32
    return %c0_i32, %c0_i32_0 : i32, i32
  }
  func.func @transform_5(%arg0: i32) -> (i32, i32) {
    %c0_i32 = arith.constant 0 : i32
    %c0_i32_0 = arith.constant 0 : i32
    %c0_i32_1 = arith.constant 0 : i32
    return %c0_i32, %c0_i32_0 : i32, i32
  }
  func.func @transform_6(%arg0: i32) -> (i32, i32) {
    %c0_i32 = arith.constant 0 : i32
    %c0_i32_0 = arith.constant 0 : i32
    %c0_i32_1 = arith.constant 0 : i32
    return %c0_i32, %c0_i32_0 : i32, i32
  }
  func.func @transform_7(%arg0: i32) -> (i32, i32) {
    %c0_i32 = arith.constant 0 : i32
    %c0_i32_0 = arith.constant 0 : i32
    %c0_i32_1 = arith.constant 0 : i32
    return %c0_i32, %c0_i32_0 : i32, i32
  }
  func.func @transform_8(%arg0: i32) -> (i32, i32) {
    %c0_i32 = arith.constant 0 : i32
    %c0_i32_0 = arith.constant 0 : i32
    return %c0_i32, %arg0 : i32, i32
  }
  func.func @transform_9(%arg0: i32) -> (i32, i32) {
    %c0_i32 = arith.constant 0 : i32
    %c0_i32_0 = arith.constant 0 : i32
    return %c0_i32, %arg0 : i32, i32
  }
  func.func @transform_10(%arg0: i32) -> (i32, i32) {
    %c0_i32 = arith.constant 0 : i32
    %c0_i32_0 = arith.constant 0 : i32
    return %c0_i32, %arg0 : i32, i32
  }
  func.func @transform_11(%arg0: i32) -> (i32, i32, i32) {
    %c0_i32 = arith.constant 0 : i32
    %c0_i32_0 = arith.constant 0 : i32
    %c0_i32_1 = arith.constant 0 : i32
    %c0_i32_2 = arith.constant 0 : i32
    return %c0_i32, %c0_i32_0, %c0_i32_1 : i32, i32, i32
  }
}

</mosaic_0001>

<bundles_post_ra>
// kernel: simple_qa_forward.2
= control target key start
LH: loop header
LB: loop body
LE: loop exit
PB: predicated region body
PF: predicated region fallthrough
CT: control target
= control target key end

     0   :  { %s3614_s0 = inlined_call_operand.vmem [shape: bf16[2,32,128], index: 0, kind: input, shape index: {}]   ;;  %s3615_s1 = inlined_call_operand.hbm [shape: bf16[128,384], index: 1, kind: input, shape index: {}]   ;;  %s3616_s2 = inlined_call_operand.vmem [shape: f32[1,384], index: 2, kind: input, shape index: {}]   ;;  %s3617_s3 = inlined_call_operand.vmem [shape: bf16[128,128], index: 3, kind: input, shape index: {}]   ;;  %s3618_s4 = inlined_call_operand.vmem [shape: bf16[128,128], index: 4, kind: input, shape index: {}]   ;;  %s3619_s5 = inlined_call_operand.vmem [shape: f32[1,128], index: 5, kind: input, shape index: {}]   ;;  %s3620_s6 = inlined_call_operand.vmem [shape: f32[1,128], index: 6, kind: input, shape index: {}]   ;;  %s3621_s7 = inlined_call_operand.vmem [shape: f32[1,128], index: 7, kind: input, shape index: {}]   ;;  %s3622_s8 = inlined_call_operand.vmem [shape: bf16[128,512], index: 8, kind: input, shape index: {}]   ;;  %s3623_s9 = inlined_call_operand.vmem [shape: f32[1,512], index: 9, kind: input, shape index: {}]   ;;  %s3624_s10 = inlined_call_operand.hbm [shape: bf16[512,128], index: 10, kind: input, shape index: {}]   ;;  %s3625_s11 = inlined_call_operand.vmem [shape: f32[1,128], index: 11, kind: input, shape index: {}]   ;;  %s3626_s12 = inlined_call_operand.vmem [shape: f32[1,128], index: 12, kind: input, shape index: {}]   ;;  %s3627_s13 = inlined_call_operand.vmem [shape: f32[1,128], index: 13, kind: input, shape index: {}]   ;;  %s3628_s14 = inlined_call_operand.vmem [shape: bf16[2,32,128], index: 14, kind: output, shape index: {}]  }
   0x1   :  { %3634 = sst [smem:[#allocation13_spill]] %s3625_s11 }
   0x2   :  { %3635 = sst [smem:[#allocation14_spill]] %s3626_s12 }
   0x3   :  { %3636 = sst [smem:[#allocation15_spill]] %s3627_s13 }
   0x4   :  { %3637 = sst [smem:[#allocation16_spill]] %s3628_s14 }
   0x5   :  { %19 = vsyncpa [#allocation4], 0 }
   0x6   :  { %20 = vsyncpa [#allocation6], 0  ;;  %s3059_s29 = smov 0   ;;  %s3061_s30 = smov 0  }
   0x7   :  { %s3063_s15 = smov 0  }
   0x8 LB: > { %s3075_s16 = sadd.s32 4294967295, %s2973_s15   ;;  %s3078_s17 = sadd.s32 1, %s2973_s15   ;;  %s2973_s15 = sphi %s3063_s15, %s3657_s15   ;;  %s2969_s30 = sphi %s3061_s30, %s3660_s30   ;;  %s2965_s29 = sphi %s3059_s29, %s3659_s29  }
   0x9   : > { %3638 = sst [smem:[#allocation10_spill]] %s3078_s17  ;;  %s30_s18 = ssub.s32 %s2973_s15, %s3078_s17 }
   0xa   : > { %s33_s19 = sadd.s32 1, %s2969_s30  ;;  %p31_p0 = scmp.eq.s32.totalorder %s30_s18, 0 }
   0xb   : > { %p40_p1 = scmp.ne.s32.totalorder %s2969_s30, %s2965_s29  ;;  %p41_p2 = scmp.eq.s32.totalorder %s2973_s15, 0 }
   0xc   : > { %p343_p3 = scmp.eq.s32.totalorder %s3075_s16, 1  ;;  %p2265_p6 = scmp.ge.s32.totalorder %s2973_s15, 1 }
   0xd   : > { %s3088_s20 = scalar_select %p31_p0, %s2969_s30, %s33_s19  }
   0xe   : > { %p3090_p4 = por %p41_p2, %p40_p1  ;;  %p3094_p5 = por %p343_p3, %p40_p1 }
   0xf   : > { %3639 = sst [smem:[#allocation11_spill]] %s3088_s20  ;;  %p356_p7 = scmp.lt.s32.totalorder %s2973_s15, 3 }
  0x10   : > { %s3640_s21 = scalar_select %p3090_p4, 1, 0 }
  0x11   : > { %s3641_s22 = scalar_select %p3094_p5, 1, 0 }
  0x12   : > { %p3632_p8 = scmp.eq.s32.totalorder %s3075_s16, 0  ;;  %p3101_p9 = pnand %p2265_p6, %p356_p7 }
  0x13   : > { %3642 = sst [smem:[#allocation12_spill]] %s3641_s22  ;;  %s2975_s24 = smov [#allocation3]  }
  0x14   : > { %s3643_s23 = scalar_select %p3101_p9, 1, 0 }
  0x15   : > { %s368_s25 = sshll.u32 %s2975_s24, 4  ;;  %p2671_p10 = pneg %p3101_p9  ;;  %s369_s25 = int_to_ptr.vmem [resolvable:$true] %s368_s25 }
  0x16   : > { %s2976_s27 = smov [#allocation5]   ;;  %s2887_s20 = scalar_lea.hbm %s3615_s1, 3072 }
  0x17   : > { %p3109_p11 = pnand %p3632_p8, %p2671_p10  ;;  %s405_s28 = sshll.u32 %s2976_s27, 4  ;;  %s3113_s28 = int_to_ptr.vmem [resolvable:$true] %s405_s28 }
  0x18   : > { %p2888_p12 = scmp.ne.s32.totalorder %s3615_s1, %s2887_s20  ;;  %p2894_p2 = scmp.lt.u32.totalorder %s2887_s20, %s3615_s1 }
  0x19   : > { %p2889_p13 = pneg %p3109_p11 }
  0x1b   : > { %p2890_p0 = pnand %p2889_p13, %p2888_p12 }
  0x1d   : > { %p2891_p1 = pneg %p2890_p0 }
  0x1f   : > { %p2896_p3 = pnand %p2894_p2, %p2891_p1 }
  0x21   : > { %2899 = shalt.err (!%p2896_p3)
}
  0x22   : > { %s2900_s27 = scalar_lea.vmem %s369_s25, 3072  ;;  %p2908_p8 = scmp.lt.s32.totalorder %s369_s25, %s369_s25 }
  0x23   : > { %p2901_p6 = scmp.ne.s32.totalorder %s369_s25, %s2900_s27  ;;  %p2909_p5 = scmp.lt.s32.totalorder %s2900_s27, %s2900_s27 }
  0x25   : > { %p2903_p7 = pnand %p2901_p6, %p2889_p13  ;;  %p2910_p9 = por %p2909_p5, %p2908_p8 }
  0x27   : > { %p2904_p10 = pneg %p2903_p7 }
  0x29   : > { %p2911_p4 = pnand %p2910_p9, %p2904_p10 }
  0x2b   : > { %2914 = shalt.err (!%p2911_p4)
}
  0x2c   : > { %s2977_s17 = smov 192   ;;  %s2978_s18 = smov 12  }
  0x2d   : > { %2674 = dma.hbm_to_vmem [thread:$0]  (!%p3109_p11), %s3615_s1, 3072, %s369_s25, [#allocation4], %s2977_s17, %s2977_s17, %s2978_s18  }
  0x2e   : > { %s2915_s24 = scalar_lea.hbm %s3624_s10, 4096 }
  0x2f   : > { %p2916_p12 = scmp.ne.s32.totalorder %s3624_s10, %s2915_s24  ;;  %p2922_p8 = scmp.lt.u32.totalorder %s2915_s24, %s3624_s10 }
  0x31   : > { %p2918_p4 = pnand %p2916_p12, %p2889_p13 }
  0x33   : > { %p2919_p5 = pneg %p2918_p4 }
  0x35   : > { %p2924_p9 = pnand %p2922_p8, %p2919_p5 }
  0x37   : > { %2927 = shalt.err (!%p2924_p9)
}
  0x38   : > { %s2928_s25 = scalar_lea.vmem %s3113_s28, 4096  ;;  %p2936_p3 = scmp.lt.s32.totalorder %s3113_s28, %s3113_s28 }
  0x39   : > { %p2929_p0 = scmp.ne.s32.totalorder %s3113_s28, %s2928_s25  ;;  %p2937_p6 = scmp.lt.s32.totalorder %s2928_s25, %s2928_s25 }
  0x3b   : > { %p2931_p1 = pnand %p2929_p0, %p2889_p13  ;;  %p2938_p7 = por %p2937_p6, %p2936_p3 }
  0x3d   : > { %p2932_p2 = pneg %p2931_p1 }
  0x3f   : > { %p2939_p10 = pnand %p2938_p7, %p2932_p2 }
  0x41   : > { %2942 = shalt.err (!%p2939_p10)
}
  0x42   : > { %s2979_s11 = smov 64   ;;  %s2980_s12 = smov 4  }
  0x43   : > { %2677 = dma.hbm_to_vmem [thread:$0]  (!%p3109_p11), %s3624_s10, 4096, %s3113_s28, [#allocation6], %s2979_s11, %s2979_s11, %s2980_s12  }
  0x44   : > { %p2268_p12 = scmp.ge.s32.totalorder %s2973_s15, 2 }
  0x45   : > { %p3645_p13 = scmp.ne.s32.totalorder (!%p2268_p12), %s3640_s21, 0 }
  0x46   : > { %424 = sbr.rel (%p2268_p12) target bundleno = 84 (0x54), region = 68 }
  0x4d   : > { %427 = sbr.rel (!%p3645_p13) target bundleno = 84 (0x54), region = 72  ;;  %s429_s18 = sand.u32 (%p3645_p13), 1, %s2969_s30  }
  0x4e   : > { %s2398_s14 = sshll.u32 (%p3645_p13), %s2973_s15, 3  ;;  %s2269_s20 = sshll.u32 (%p3645_p13), %s429_s18, 4 }
  0x4f   : > { %s434_s24 = scalar_lea.vmem (%p3645_p13), %s3614_s0, %s2398_s14  ;;  %s431_s26 = scalar_lea.vmem (%p3645_p13), [#allocation2], %s2269_s20 }
  0x50   : > { %v450_v0 = vld [vmem:[%s434_s24] sm:$0xff] (%p3645_p13)   ;;  %v454_v1 = vld [vmem:[%s434_s24 + $0x10] sm:$0xff] (%p3645_p13)  }
  0x51   : > { %451 = vst [vmem:[%s431_s26] sm:$0xff] (%p3645_p13), %v450_v0   ;;  %455 = vst [vmem:[%s431_s26 + $0x8] sm:$0xff] (%p3645_p13), %v454_v1  }
  0x54 PF: > { %p3646_p11 = scmp.ne.s32.totalorder %s3643_s23, 0 }
  0x55   : > { %s494_s21 = sand.u32 (!%p3646_p11), 1, %s2965_s29   ;;  %p3647_p4 = scmp.eq.s32.totalorder (!%p3646_p11), %s3075_s16, 0 }
  0x56   : > { %491 = sbr.rel (%p3646_p11) target bundleno = 1975 (0x7b7), region = 113  ;;  %s3173_s28 = sshll.u32 (!%p3646_p11), %s494_s21, 4 }
  0x57   : > { %s496_s15 = scalar_lea.vmem (!%p3646_p11), [#allocation2], %s3173_s28 }
  0x5d   : > { %2956 = dma.done.wait (%p3647_p4), [#allocation4], 3072   ;;  %p3648_p5 = pmov %p3647_p4 }
  0x5e   : > { %p3649_p8 = pmov %p3647_p4 }
  0x5f   : > { %2958 = vsyncadd (%p3648_p5), [#allocation4], 4294964224 }
  0x60   : > { %2960 = dma.done.wait (%p3649_p8), [#allocation6], 4096   ;;  %p3650_p9 = pmov %p3647_p4 }
  0x61   : > { %v2981_v2 = vmov 0   ;;  %v2715_v3 = vld [vmem:[#allocation3 + $0x4] ss:$12 sps:$4 sm:$0xff]   ;;  %v2717_v4 = vld [vmem:[#allocation3] ss:$12 sps:$4 sm:$0xff]   ;;  %v2982_v28 = vmov 0.0   ;;  %v593_v38 = vlaneseq }
  0x62   : > { %2962 = vsyncadd (%p3650_p9), [#allocation6], 4294963200  ;;  %768 = vmatprep.mubr.bf16.mxu0 %v2981_v2  ;;  %736 = vmatprep.subr.bf16.mxu0 %v2715_v3  ;;  %v2718_v5 = vld [vmem:[#allocation3 + $0x1c] ss:$12 sps:$4 sm:$0xff]   ;;  %v2720_v6 = vld [vmem:[#allocation3 + $0x18] ss:$12 sps:$4 sm:$0xff]  }
  0x63   : > { %737 = vmatpush1.bf16.msra.mxu0 %v2717_v4  ;;  %v2721_v7 = vld [vmem:[#allocation3 + $0x34] ss:$12 sps:$4 sm:$0xff]   ;;  %v2723_v8 = vld [vmem:[#allocation3 + $0x30] ss:$12 sps:$4 sm:$0xff]   ;;  %v2724_v9 = vld [vmem:[#allocation3 + $0x4c] ss:$12 sps:$4 sm:$0xff]  }
  0x64   : > { %738 = vmatprep.subr.bf16.mxu0 %v2718_v5  ;;  %v2726_v10 = vld [vmem:[#allocation3 + $0x48] ss:$12 sps:$4 sm:$0xff]   ;;  %v2727_v12 = vld [vmem:[#allocation3 + $0x64] ss:$12 sps:$4 sm:$0xff]   ;;  %v2742_v14 = vld [vmem:[#allocation3 + $0x20] ss:$12 sps:$4 sm:$0xff]  }
  0x65   : > { %v3187_v11 = vld [vmem:[%s496_s15] sm:$0xff]   ;;  %v2730_v16 = vld [vmem:[#allocation3 + $0x7c] ss:$12 sps:$4 sm:$0xff]   ;;  %v2736_v22 = vld [vmem:[#allocation3 + $0xac] ss:$12 sps:$4 sm:$0xff]   ;;  %vm2983_vm0 = vmmov 0  }
  0x66   : > { %v2741_v13 = vld [vmem:[#allocation3 + $0x8] ss:$12 sps:$4 sm:$0xff]   ;;  %2543 = vmatprep.mubr.bf16.mxu1 %v3187_v11  ;;  %v2729_v15 = vld [vmem:[#allocation3 + $0x60] ss:$12 sps:$4 sm:$0xff]   ;;  %v2743_v17 = vld [vmem:[#allocation3 + $0x38] ss:$12 sps:$4 sm:$0xff]  }
  0x67   : > { %739 = vmatpush1.bf16.msra.mxu0 %v2720_v6  ;;  %2527 = vmatprep.subr.bf16.mxu1 %v2741_v13  ;;  %v2732_v18 = vld [vmem:[#allocation3 + $0x78] ss:$12 sps:$4 sm:$0xff]   ;;  %v2733_v19 = vld [vmem:[#allocation3 + $0x94] ss:$12 sps:$4 sm:$0xff]   ;;  %v2744_v20 = vld [vmem:[#allocation3 + $0x50] ss:$12 sps:$4 sm:$0xff]  }
  0x68   : > { %740 = vmatprep.subr.bf16.mxu0 %v2721_v7  ;;  %2528 = vmatpush3.bf16.msra.mxu1 %v2741_v13  ;;  %v2735_v21 = vld [vmem:[#allocation3 + $0x90] ss:$12 sps:$4 sm:$0xff]   ;;  %v2745_v23 = vld [vmem:[#allocation3 + $0x68] ss:$12 sps:$4 sm:$0xff]   ;;  %v2746_v25 = vld [vmem:[#allocation3 + $0x80] ss:$12 sps:$4 sm:$0xff]  }
  0x69   : > { %2529 = vmatprep.subr.bf16.mxu1 %v2742_v14  ;;  %v2738_v24 = vld [vmem:[#allocation3 + $0xa8] ss:$12 sps:$4 sm:$0xff]   ;;  %v2747_v26 = vld [vmem:[#allocation3 + $0x98] ss:$12 sps:$4 sm:$0xff]   ;;  %v2749_v30 = vld [vmem:[#allocation3 + $0xb0] ss:$12 sps:$4 sm:$0xff]  }
  0x6a   : > { %v3193_v27 = vld [vmem:[%s3617_s3] sm:$0xff]   ;;  %v3198_v29 = vld [vmem:[%s496_s15 + $0x8] sm:$0xff]   ;;  %v3212_v32 = vld [vmem:[%s3617_s3 + $0x10] sm:$0xff]   ;;  %v3276_v39 = vshrl.u32 %v593_v38, 7  ;;  %s3651_s13 = sld [smem:[#allocation13_spill]]  ;;  %s3652_s14 = sld [smem:[#allocation14_spill]] }
  0x6b   : > { %741 = vmatpush1.bf16.msra.mxu0 %v2723_v8  ;;  %v3204_v31 = vld [vmem:[%s3617_s3 + $0x8] sm:$0xff]   ;;  %v3220_v33 = vld [vmem:[%s3617_s3 + $0x18] sm:$0xff]   ;;  %v3229_v34 = vld [vmem:[%s3617_s3 + $0x20] sm:$0xff]   ;;  %s3653_s19 = sld [smem:[#allocation15_spill]]  ;;  %s545_s24 = scalar_lea.vmem [#allocation7], %s3173_s28 }
  0x6c   : > { %742 = vmatprep.subr.bf16.mxu0 %v2724_v9  ;;  %2530 = vmatpush3.bf16.msra.mxu1 %v2742_v14  ;;  %v3238_v35 = vld [vmem:[%s3617_s3 + $0x28] sm:$0xff]   ;;  %v3257_v36 = vld [vmem:[%s3617_s3 + $0x30] sm:$0xff]   ;;  %v3266_v37 = vld [vmem:[%s3617_s3 + $0x38] sm:$0xff]   ;;  %v595_v40 = vsub.s32 0, %v3276_v39  ;;  %v599_v42 = vsub.s32 1, %v3276_v39  ;;  %s3654_s28 = sld [smem:[#allocation12_spill]] }
  0x6d   : > { %2531 = vmatprep.subr.bf16.mxu1 %v2743_v17  ;;  %v3282_v41 = vld [vmem:[%s3616_s2] sm:$0x7] }
  0x6e   : > { %v596_v43 = vrot.slane %v3282_v41, %v595_v40  ;;  %v600_v44 = vrot.slane %v3282_v41, %v599_v42 }
  0x6f   : > { %743 = vmatpush1.bf16.msra.mxu0 %v2726_v10 }
  0x70   : > { %744 = vmatprep.subr.bf16.mxu0 %v2727_v12  ;;  %2532 = vmatpush3.bf16.msra.mxu1 %v2743_v17  ;;  %v2759_v17 = vld [vmem:[%s3618_s4 + $0x10] sm:$0xff]  }
  0x71   : > { %2533 = vmatprep.subr.bf16.mxu1 %v2744_v20 }
  0x72   : > { %p3655_p0 = scmp.ne.s32.totalorder %s3654_s28, 0 }
  0x73   : > { %745 = vmatpush1.bf16.msra.mxu0 %v2729_v15  ;;  %v2757_v15 = vld [vmem:[%s3618_s4] sm:$0xff]   ;;  %s2403_s26 = sshll.u32 (%p3655_p0), %s3075_s16, 3  ;;  %s3656_s29 = sld [smem:[#allocation16_spill]] (%p3655_p0) }
  0x74   : > { %746 = vmatprep.subr.bf16.mxu0 %v2730_v16  ;;  %2534 = vmatpush3.bf16.msra.mxu1 %v2744_v20  ;;  %v2758_v16 = vld [vmem:[%s3618_s4 + $0x8] sm:$0xff]  }
  0x75   : > { %2535 = vmatprep.subr.bf16.mxu1 %v2745_v23  ;;  %v2762_v20 = vld [vmem:[%s3618_s4 + $0x28] sm:$0xff]  }
  0x77   : > { %747 = vmatpush1.bf16.msra.mxu0 %v2732_v18  ;;  %v2760_v18 = vld [vmem:[%s3618_s4 + $0x18] sm:$0xff]  }
  0x78   : > { %748 = vmatprep.subr.bf16.mxu0 %v2733_v19  ;;  %2536 = vmatpush3.bf16.msra.mxu1 %v2745_v23  ;;  %v2761_v19 = vld [vmem:[%s3618_s4 + $0x20] sm:$0xff]  }
  0x79   : > { %2537 = vmatprep.subr.bf16.mxu1 %v2746_v25  ;;  %s2133_s23 = scalar_lea.vmem (%p3655_p0), %s3656_s29, %s2403_s26 }
  0x7b   : > { %749 = vmatpush1.bf16.msra.mxu0 %v2735_v21  ;;  %v2763_v21 = vld [vmem:[%s3618_s4 + $0x30] sm:$0xff]  }
  0x7c   : > { %750 = vmatprep.subr.bf16.mxu0 %v2736_v22  ;;  %2538 = vmatpush3.bf16.msra.mxu1 %v2746_v25  ;;  %v2764_v22 = vld [vmem:[%s3618_s4 + $0x38] sm:$0xff]  }
  0x7d   : > { %2539 = vmatprep.subr.bf16.mxu1 %v2747_v26 }
  0x7f   : > { %751 = vmatpush1.bf16.msra.mxu0 %v2738_v24 }
  0x80   : > { %2547 = vmatprep.subr.bf16.mxu0 %v2982_v28  ;;  %2540 = vmatpush3.bf16.msra.mxu1 %v2747_v26 }
  0x81   : > { %2541 = vmatprep.subr.bf16.mxu1 %v2749_v30 }
  0x82   : > { %769 = vmatmul.mubr.bf16.vlgmr.msra.gmra.mrb[0].mxu0 %v3187_v11 }
  0x83   : > { %778 = vmatprep.mubr.bf16.mxu0 %v2981_v2  ;;  %2548 = vmatpush3.bf16.msra.mxu0 %v3193_v27 }
  0x84   : > { %2549 = vmatprep.subr.bf16.mxu0 %v2982_v28  ;;  %2542 = vmatpush3.bf16.msra.mxu1 %v2749_v30 }
  0x85   : > { %2567 = vmatprep.subr.bf16.mxu1 %v2982_v28 }
  0x87   : > { %2550 = vmatpush3.bf16.msra.mxu0 %v3204_v31  ;;  %2544 = vmatmul.mubr.bf16.vlgmr.msra.gmra.mrb[0].mxu1 %v3198_v29 }
  0x88   : > { %2551 = vmatprep.subr.bf16.mxu0 %v2982_v28  ;;  %2568 = vmatpush3.bf16.msra.mxu1 %v3193_v27 }
  0x89   : > { %2569 = vmatprep.subr.bf16.mxu1 %v2982_v28  ;;  %2583 = vmatprep.mubr.msk.bf16.mxu1 %vm2983_vm0, %v2982_v28 }
  0x8a   : > { %779 = vmatmul.mubr.bf16.gmra.mrb[4].mxu0 %v3198_v29 }
  0x8b   : > { %2552 = vmatpush3.bf16.msra.mxu0 %v3212_v32  ;;  %2563 = vmatprep.mubr.msk.bf16.mxu0 %vm2983_vm0, %v2982_v28 }
  0x8c   : > { %2553 = vmatprep.subr.bf16.mxu0 %v2982_v28  ;;  %2570 = vmatpush3.bf16.msra.mxu1 %v3204_v31 }
  0x8d   : > { %2571 = vmatprep.subr.bf16.mxu1 %v2982_v28 }
  0x8f   : > { %2554 = vmatpush3.bf16.msra.mxu0 %v3220_v33 }
  0x90   : > { %2555 = vmatprep.subr.bf16.mxu0 %v2982_v28  ;;  %2572 = vmatpush3.bf16.msra.mxu1 %v3212_v32 }
  0x91   : > { %2573 = vmatprep.subr.bf16.mxu1 %v2982_v28 }
  0x93   : > { %2556 = vmatpush3.bf16.msra.mxu0 %v3229_v34 }
  0x94   : > { %2557 = vmatprep.subr.bf16.mxu0 %v2982_v28  ;;  %2574 = vmatpush3.bf16.msra.mxu1 %v3220_v33 }
  0x95   : > { %2575 = vmatprep.subr.bf16.mxu1 %v2982_v28 }
  0x97   : > { %2558 = vmatpush3.bf16.msra.mxu0 %v3238_v35 }
  0x98   : > { %2559 = vmatprep.subr.bf16.mxu0 %v2982_v28  ;;  %2576 = vmatpush3.bf16.msra.mxu1 %v3229_v34 }
  0x99   : > { %2577 = vmatprep.subr.bf16.mxu1 %v2982_v28 }
  0x9b   : > { %2560 = vmatpush3.bf16.msra.mxu0 %v3257_v36 }
  0x9c   : > { %2578 = vmatpush3.bf16.msra.mxu1 %v3238_v35  ;;  %2561 = vmatprep.subr.bf16.mxu0 %v2982_v28 }
  0x9d   : > { %2579 = vmatprep.subr.bf16.mxu1 %v2982_v28 }
  0x9f   : > { %2562 = vmatpush3.bf16.msra.mxu0 %v3266_v37 }
  0xa0   : > { %2580 = vmatpush3.bf16.msra.mxu1 %v3257_v36  ;;  %2587 = vmatprep.subr.bf16.mxu0 %v2982_v28 }
  0xa1   : > { %2581 = vmatprep.subr.bf16.mxu1 %v2982_v28 }
  0xa4   : > { %2582 = vmatpush3.bf16.msra.mxu1 %v3266_v37 }
  0xa5   : > { %2607 = vmatprep.subr.bf16.mxu1 %v2982_v28 }
 0x155   : > { %v770_v45 = vpop.f32.mrb[0].mxu0 }
 0x156   : > { %v771_v46 = vadd.f32 %v770_v45, %v596_v43  ;;  %v772_v47 = vpop.f32.mrb[1].mxu0 }
 0x157   : > { %v773_v48 = vadd.f32 %v772_v47, %v600_v44  ;;  %v774_v49 = vpop.f32.mrb[2].mxu0 }
 0x158   : > { %v775_v50 = vadd.f32 %v774_v49, %v596_v43  ;;  %v776_v51 = vpop.f32.mrb[3].mxu0 }
 0x159   : > { %v854_v52 = vmul.f32 %v773_v48, %v771_v46  ;;  %v777_v53 = vadd.f32 %v776_v51, %v600_v44 }
 0x15a   : > { %v3295_v4 = vpop.f32.mrb[0].mxu1 }
 0x15b   : > { %v855_v54 = vmul.f32 %v777_v53, %v775_v50  ;;  %v3297_v6 = vpop.f32.mrb[1].mxu1 }
 0x15c   : > { %v3299_v9 = vpop.f32.mrb[2].mxu1 }
 0x15d   : > { %v856_v55 = vpack.c.bf16 %v855_v54, %v854_v52  ;;  %v780_v56 = vpop.f32.mrb[4].mxu0  ;;  %v3302_v12 = vpop.f32.mrb[3].mxu1  ;;  %v603_v52 = vsub.s32 2, %v3276_v39 }
 0x15e   : > { %v781_v57 = vadd.f32 %v780_v56, %v596_v43  ;;  %v782_v58 = vpop.f32.mrb[5].mxu0 }
 0x15f   : > { %v783_v59 = vadd.f32 %v782_v58, %v600_v44  ;;  %v784_v60 = vpop.f32.mrb[6].mxu0  ;;  %2564 = vmatmul.mubr.bf16.vlgmr.msra.gmra.mrb[8].mxu0 %v856_v55 }
 0x160   : > { %v1018_v61 = vmul.f32 %v781_v57, %v773_v48  ;;  %v785_v62 = vadd.f32 %v784_v60, %v596_v43  ;;  %2588 = vmatpush3.bf16.msra.mxu0 %v3193_v27  ;;  %v786_v63 = vpop.f32.mrb[7].mxu0  ;;  %2603 = vmatprep.mubr.msk.bf16.mxu0 %vm2983_vm0, %v2982_v28 }
 0x161   : > { %v946_v0 = vmul.f32 %v783_v59, %v771_v46  ;;  %v1062_v1 = vmul.f32 %v783_v59, %v781_v57  ;;  %v787_v3 = vadd.f32 %v786_v63, %v600_v44  ;;  %2589 = vmatprep.subr.bf16.mxu0 %v2982_v28  ;;  %v604_v57 = vrot.slane %v3282_v41, %v603_v52 }
 0x162   : > { %v1019_v5 = vmul.f32 %v785_v62, %v777_v53 }
 0x163   : > { %v947_v7 = vmul.f32 %v787_v3, %v775_v50  ;;  %v1063_v8 = vmul.f32 %v787_v3, %v785_v62  ;;  %v832_v59 = vadd.f32 %v3295_v4, %v604_v57  ;;  %v824_v60 = vadd.f32 %v3297_v6, %v604_v57 }
 0x164   : > { %v1020_v10 = vpack.c.bf16 %v1019_v5, %v1018_v61  ;;  %2590 = vmatpush3.bf16.msra.mxu0 %v3204_v31  ;;  %v827_v3 = vadd.f32 %v3302_v12, %v604_v57 }
 0x165   : > { %v948_v13 = vpack.c.bf16 %v947_v7, %v946_v0  ;;  %v1064_v14 = vpack.c.bf16 %v1063_v8, %v1062_v1  ;;  %2591 = vmatprep.subr.bf16.mxu0 %v2982_v28  ;;  %v835_v1 = vadd.f32 %v3299_v9, %v604_v57 }
 0x167   : > { %2584 = vmatmul.mubr.bf16.vlgmr.msra.gmra.mrb[4].mxu1 %v948_v13 }
 0x168   : > { %2592 = vmatpush3.bf16.msra.mxu0 %v3212_v32  ;;  %2608 = vmatpush3.bf16.msra.mxu1 %v3193_v27 }
 0x169   : > { %2593 = vmatprep.subr.bf16.mxu0 %v2982_v28  ;;  %2609 = vmatprep.subr.bf16.mxu1 %v2982_v28 }
 0x16a   : > { %2623 = vmatprep.mubr.msk.bf16.mxu1 %vm2983_vm0, %v2982_v28 }
 0x16c   : > { %2594 = vmatpush3.bf16.msra.mxu0 %v3220_v33  ;;  %2610 = vmatpush3.bf16.msra.mxu1 %v3204_v31 }
 0x16d   : > { %2595 = vmatprep.subr.bf16.mxu0 %v2982_v28  ;;  %2611 = vmatprep.subr.bf16.mxu1 %v2982_v28 }
 0x170   : > { %2596 = vmatpush3.bf16.msra.mxu0 %v3229_v34  ;;  %2612 = vmatpush3.bf16.msra.mxu1 %v3212_v32 }
 0x171   : > { %2597 = vmatprep.subr.bf16.mxu0 %v2982_v28  ;;  %2613 = vmatprep.subr.bf16.mxu1 %v2982_v28 }
 0x174   : > { %2598 = vmatpush3.bf16.msra.mxu0 %v3238_v35  ;;  %2614 = vmatpush3.bf16.msra.mxu1 %v3220_v33 }
 0x175   : > { %2599 = vmatprep.subr.bf16.mxu0 %v2982_v28  ;;  %2615 = vmatprep.subr.bf16.mxu1 %v2982_v28 }
 0x178   : > { %2600 = vmatpush3.bf16.msra.mxu0 %v3257_v36  ;;  %2616 = vmatpush3.bf16.msra.mxu1 %v3229_v34 }
 0x179   : > { %2601 = vmatprep.subr.bf16.mxu0 %v2982_v28  ;;  %2617 = vmatprep.subr.bf16.mxu1 %v2982_v28 }
 0x17c   : > { %2602 = vmatpush3.bf16.msra.mxu0 %v3266_v37  ;;  %2618 = vmatpush3.bf16.msra.mxu1 %v3238_v35 }
 0x17d   : > { %2619 = vmatprep.subr.bf16.mxu1 %v2982_v28  ;;  %2627 = vmatprep.subr.bf16.mxu0 %v2757_v15 }
 0x17f   : > { %2604 = vmatmul.mubr.bf16.vlgmr.msra.gmra.mrb[12].mxu0 %v1020_v10 }
 0x180   : > { %2620 = vmatpush3.bf16.msra.mxu1 %v3257_v36  ;;  %2628 = vmatpush3.bf16.msra.mxu0 %v2757_v15 }
 0x181   : > { %2621 = vmatprep.subr.bf16.mxu1 %v2982_v28  ;;  %2629 = vmatprep.subr.bf16.mxu0 %v2758_v16 }
 0x184   : > { %2622 = vmatpush3.bf16.msra.mxu1 %v3266_v37  ;;  %2630 = vmatpush3.bf16.msra.mxu0 %v2758_v16 }
 0x185   : > { %2631 = vmatprep.subr.bf16.mxu0 %v2759_v17 }
 0x187   : > { %2624 = vmatmul.mubr.bf16.vlgmr.msra.gmra.mrb[8].mxu1 %v1064_v14 }
 0x188   : > { %1575 = vmatprep.mubr.bf16.mxu1 %v2981_v2  ;;  %2632 = vmatpush3.bf16.msra.mxu0 %v2759_v17 }
 0x189   : > { %2633 = vmatprep.subr.bf16.mxu0 %v2760_v18 }
 0x18c   : > { %2634 = vmatpush3.bf16.msra.mxu0 %v2760_v18 }
 0x18d   : > { %2635 = vmatprep.subr.bf16.mxu0 %v2761_v19 }
 0x190   : > { %2636 = vmatpush3.bf16.msra.mxu0 %v2761_v19 }
 0x191   : > { %2637 = vmatprep.subr.bf16.mxu0 %v2762_v20 }
 0x194   : > { %2638 = vmatpush3.bf16.msra.mxu0 %v2762_v20 }
 0x195   : > { %2639 = vmatprep.subr.bf16.mxu0 %v2763_v21 }
 0x198   : > { %2640 = vmatpush3.bf16.msra.mxu0 %v2763_v21 }
 0x199   : > { %2641 = vmatprep.subr.bf16.mxu0 %v2764_v22 }
 0x19c   : > { %2642 = vmatpush3.bf16.msra.mxu0 %v2764_v22 }
 0x232   : > { %v939_v23 = vpop.f32.mrb[8].mxu0 }
 0x233   : > { %v2565_v24 = vpop.f32.mrb[9].mxu0 }
 0x234   : > { %v942_v25 = vpop.f32.mrb[10].mxu0 }
 0x235   : > { %v2566_v26 = vpop.f32.mrb[11].mxu0 }
 0x23a   : > { %v983_v27 = vpop.f32.mrb[4].mxu1 }
 0x23b   : > { %v990_v28 = vmax.f32 %v939_v23, %v983_v27  ;;  %v2585_v30 = vpop.f32.mrb[5].mxu1 }
 0x23c   : > { %v986_v31 = vpop.f32.mrb[6].mxu1 }
 0x23d   : > { %v992_v32 = vsub.f32 %v939_v23, %v990_v28  ;;  %v998_v33 = vsub.f32 %v983_v27, %v990_v28  ;;  %v991_v34 = vmax.f32 %v942_v25, %v986_v31  ;;  %v2586_v35 = vpop.f32.mrb[7].mxu1 }
 0x23f   : > { %v994_v36 = vmul.f32 1.442695, %v992_v32  ;;  %v1000_v37 = vmul.f32 1.442695, %v998_v33  ;;  %v993_v38 = vsub.f32 %v942_v25, %v991_v34  ;;  %v999_v43 = vsub.f32 %v986_v31, %v991_v34 }
 0x241   : > { %2847 = vpow2.f32 %v994_v36  ;;  %v996_v44 = vmul.f32 1.442695, %v993_v38  ;;  %v1002_v45 = vmul.f32 1.442695, %v999_v43 }
 0x242   : > { %2849 = vpow2.f32 %v1000_v37 }
 0x243   : > { %2851 = vpow2.f32 %v996_v44 }
 0x244   : > { %2853 = vpow2.f32 %v1002_v45 }
 0x24b   : > { %v2848_v46 = vpop.eup %2847 }
 0x24c   : > { %v2850_v47 = vpop.eup %2849 }
 0x24d   : > { %v2852_v48 = vpop.eup %2851  ;;  %v1004_v49 = vadd.f32 %v2850_v47, %v2848_v46 }
 0x24e   : > { %v2854_v50 = vpop.eup %2853 }
 0x24f   : > { %2855 = vrcp.f32 %v1004_v49  ;;  %v1005_v51 = vadd.f32 %v2854_v50, %v2852_v48 }
 0x251   : > { %2857 = vrcp.f32 %v1005_v51  ;;  %v555_v51 = vunpack.c.l.bf16 %v3198_v29 }
 0x252   : > { %v1055_v53 = vpop.f32.mrb[12].mxu0 }
 0x253   : > { %v2605_v54 = vpop.f32.mrb[13].mxu0 }
 0x254   : > { %v1058_v55 = vpop.f32.mrb[14].mxu0  ;;  %v553_v54 = vunpack.c.l.bf16 %v3187_v11 }
 0x255   : > { %v2606_v56 = vpop.f32.mrb[15].mxu0 }
 0x259   : > { %v2856_v58 = vpop.eup %2855 }
 0x25a   : > { %v1099_v61 = vpop.f32.mrb[8].mxu1  ;;  %v1008_v62 = vmul.f32 %v2856_v58, %v2848_v46  ;;  %v1012_v63 = vmul.f32 %v2856_v58, %v2850_v47 }
 0x25b   : > { %v2858_v0 = vpop.eup %2857  ;;  %v1106_v5 = vmax.f32 %v1055_v53, %v1099_v61  ;;  %v2625_v7 = vpop.f32.mrb[9].mxu1 }
 0x25c   : > { %v1102_v8 = vpop.f32.mrb[10].mxu1  ;;  %v1009_v10 = vmul.f32 %v2858_v0, %v2852_v48  ;;  %v1010_v13 = vmul.f32 %v1008_v62, %v824_v60  ;;  %v1013_v14 = vmul.f32 %v2858_v0, %v2854_v50  ;;  %v1014_v41 = vmul.f32 %v1012_v63, %v832_v59  ;;  %v2311_v50 = vld [vmem:[%s3619_s5] ss:$0 sm:$0xff] }
 0x25d   : > { %v1108_v15 = vsub.f32 %v1055_v53, %v1106_v5  ;;  %v1114_v16 = vsub.f32 %v1099_v61, %v1106_v5  ;;  %v1107_v4 = vmax.f32 %v1058_v55, %v1102_v8  ;;  %v2626_v17 = vpop.f32.mrb[11].mxu1  ;;  %v556_v62 = vunpack.c.h.bf16 %v3198_v29  ;;  %v2765_v7 = vld [vmem:[%s3622_s8] ss:$16 sps:$4 sm:$0xff]   ;;  %v2768_v29 = vld [vmem:[%s3622_s8 + $0x8] ss:$16 sps:$4 sm:$0xff]  }
 0x25e   : > { %v1011_v6 = vmul.f32 %v1009_v10, %v827_v3  ;;  %v1015_v18 = vmul.f32 %v1013_v14, %v835_v1  ;;  %v1016_v19 = vadd.f32 %v1014_v41, %v1010_v13  ;;  %v2773_v10 = vld [vmem:[%s3622_s8 + $0x24] ss:$16 sps:$4 sm:$0xff]   ;;  %v2776_v13 = vld [vmem:[%s3622_s8 + $0x2c] ss:$16 sps:$4 sm:$0xff]   ;;  %v2771_v14 = vld [vmem:[%s3622_s8 + $0x20] ss:$16 sps:$4 sm:$0xff]  }
 0x25f   : > { %v1110_v20 = vmul.f32 1.442695, %v1108_v15  ;;  %v1116_v21 = vmul.f32 1.442695, %v1114_v16  ;;  %v1109_v22 = vsub.f32 %v1058_v55, %v1107_v4  ;;  %v1115_v9 = vsub.f32 %v1102_v8, %v1107_v4  ;;  %v2767_v8 = vld [vmem:[%s3622_s8 + $0x4] ss:$16 sps:$4 sm:$0xff]  }
 0x260   : > { %v1017_v23 = vadd.f32 %v1015_v18, %v1011_v6  ;;  %1543 = vmatprep.subr.bf16.mxu1 %v2767_v8  ;;  %v2774_v41 = vld [vmem:[%s3622_s8 + $0x28] ss:$16 sps:$4 sm:$0xff]  }
 0x261   : > { %2859 = vpow2.f32 %v1110_v20  ;;  %v1112_v12 = vmul.f32 1.442695, %v1109_v22  ;;  %v1118_v24 = vmul.f32 1.442695, %v1115_v9  ;;  %1544 = vmatpush1.bf16.msra.mxu1 %v2765_v7 }
 0x262   : > { %2861 = vpow2.f32 %v1116_v21  ;;  %v1134_v25 = vpack.c.bf16 %v1017_v23, %v1016_v19  ;;  %1545 = vmatprep.subr.bf16.mxu1 %v2773_v10 }
 0x263   : > { %2863 = vpow2.f32 %v1112_v12 }
 0x264   : > { %2865 = vpow2.f32 %v1118_v24  ;;  %2643 = vmatprep.mubr.bf16.mxu0 %v1134_v25 }
 0x265   : > { %1546 = vmatpush1.bf16.msra.mxu1 %v2771_v14 }
 0x26b   : > { %v2860_v26 = vpop.eup %2859 }
 0x26c   : > { %v2862_v27 = vpop.eup %2861 }
 0x26d   : > { %v2864_v28 = vpop.eup %2863  ;;  %v1120_v30 = vadd.f32 %v2862_v27, %v2860_v26 }
 0x26e   : > { %v2866_v31 = vpop.eup %2865 }
 0x26f   : > { %2867 = vrcp.f32 %v1120_v30  ;;  %v1121_v32 = vadd.f32 %v2866_v31, %v2864_v28  ;;  %v2777_v30 = vld [vmem:[%s3622_s8 + $0x40] ss:$16 sps:$4 sm:$0xff]  }
 0x271   : > { %2869 = vrcp.f32 %v1121_v32  ;;  %v2785_v32 = vld [vmem:[%s3622_s8 + $0x64] ss:$16 sps:$4 sm:$0xff]  }
 0x279   : > { %v2868_v33 = vpop.eup %2867 }
 0x27a   : > { %v1124_v34 = vmul.f32 %v2868_v33, %v2860_v26  ;;  %v1128_v35 = vmul.f32 %v2868_v33, %v2862_v27  ;;  %v2779_v27 = vld [vmem:[%s3622_s8 + $0x44] ss:$16 sps:$4 sm:$0xff]   ;;  %v2788_v33 = vld [vmem:[%s3622_s8 + $0x6c] ss:$16 sps:$4 sm:$0xff]  }
 0x27b   : > { %v2870_v36 = vpop.eup %2869  ;;  %1547 = vmatprep.subr.bf16.mxu1 %v2779_v27  ;;  %v3507_v27 = vld [vmem:[#allocation5 + $0xc8] sm:$0xff]  }
 0x27c   : > { %v1125_v37 = vmul.f32 %v2870_v36, %v2864_v28  ;;  %v1126_v38 = vmul.f32 %v1124_v34, %v824_v60  ;;  %v1129_v43 = vmul.f32 %v2870_v36, %v2866_v31  ;;  %v1130_v44 = vmul.f32 %v1128_v35, %v832_v59  ;;  %v2782_v28 = vld [vmem:[%s3622_s8 + $0x4c] ss:$16 sps:$4 sm:$0xff]   ;;  %v2780_v31 = vld [vmem:[%s3622_s8 + $0x48] ss:$16 sps:$4 sm:$0xff]   ;;  %1548 = vmatpush1.bf16.msra.mxu1 %v2777_v30  ;;  %v2783_v34 = vld [vmem:[%s3622_s8 + $0x60] ss:$16 sps:$4 sm:$0xff]  }
 0x27d   : > { %v2786_v35 = vld [vmem:[%s3622_s8 + $0x68] ss:$16 sps:$4 sm:$0xff]   ;;  %1549 = vmatprep.subr.bf16.mxu1 %v2785_v32  ;;  %v2791_v36 = vld [vmem:[%s3622_s8 + $0x84] ss:$16 sps:$4 sm:$0xff]  }
 0x27e   : > { %v1127_v45 = vmul.f32 %v1125_v37, %v827_v3  ;;  %v1131_v46 = vmul.f32 %v1129_v43, %v835_v1  ;;  %v1132_v47 = vadd.f32 %v1130_v44, %v1126_v38  ;;  %v554_v1 = vunpack.c.h.bf16 %v3187_v11  ;;  %v2770_v11 = vld [vmem:[%s3622_s8 + $0xc] ss:$16 sps:$4 sm:$0xff]   ;;  %v2789_v38 = vld [vmem:[%s3622_s8 + $0x80] ss:$16 sps:$4 sm:$0xff]   ;;  %v2792_v43 = vld [vmem:[%s3622_s8 + $0x88] ss:$16 sps:$4 sm:$0xff]  }
 0x27f   : > { %1596 = vmatprep.subr.bf16.mxu0 %v2770_v11  ;;  %v2794_v37 = vld [vmem:[%s3622_s8 + $0x8c] ss:$16 sps:$4 sm:$0xff]   ;;  %v2797_v44 = vld [vmem:[%s3622_s8 + $0xa4] ss:$16 sps:$4 sm:$0xff]  }
 0x280   : > { %v1133_v48 = vadd.f32 %v1131_v46, %v1127_v45  ;;  %1550 = vmatpush1.bf16.msra.mxu1 %v2783_v34  ;;  %v2800_v45 = vld [vmem:[%s3622_s8 + $0xac] ss:$16 sps:$4 sm:$0xff]   ;;  %v2795_v46 = vld [vmem:[%s3622_s8 + $0xa0] ss:$16 sps:$4 sm:$0xff]  }
 0x281   : > { %1551 = vmatprep.subr.bf16.mxu1 %v2791_v36  ;;  %v3514_v30 = vld [vmem:[#allocation5 + $0x88] sm:$0xff]   ;;  %v3517_v32 = vld [vmem:[#allocation5 + $0xd0] sm:$0xff]   ;;  %v2825_v36 = vld [vmem:[#allocation5 + $0x58] sm:$0xff]  }
 0x282   : > { %v1135_v49 = vpack.c.bf16 %v1133_v48, %v1132_v47  ;;  %v2798_v47 = vld [vmem:[%s3622_s8 + $0xa8] ss:$16 sps:$4 sm:$0xff]   ;;  %v2803_v48 = vld [vmem:[%s3622_s8 + $0xc4] ss:$16 sps:$4 sm:$0xff]  }
 0x284   : > { %2644 = vmatmul.mubr.bf16.vlgmr.msra.gmra.mrb[16].mxu0 %v1135_v49  ;;  %1552 = vmatpush1.bf16.msra.mxu1 %v2789_v38  ;;  %v2806_v49 = vld [vmem:[%s3622_s8 + $0xcc] ss:$16 sps:$4 sm:$0xff]  }
 0x285   : > { %1628 = vmatprep.mubr.bf16.mxu0 %v2981_v2  ;;  %1597 = vmatpush1.bf16.msra.mxu0 %v2768_v29  ;;  %v2826_v38 = vld [vmem:[#allocation5 + $0x18] sm:$0xff]  }
 0x286   : > { %1598 = vmatprep.subr.bf16.mxu0 %v2776_v13  ;;  %1553 = vmatprep.subr.bf16.mxu1 %v2797_v44  ;;  %v2320_v13 = vld [vmem:[%s3620_s6] ss:$0 sm:$0xff] }
 0x287   : > { %v2829_v44 = vld [vmem:[#allocation5 + $0x60] sm:$0xff]  }
 0x288   : > { %1554 = vmatpush1.bf16.msra.mxu1 %v2795_v46  ;;  %v2830_v46 = vld [vmem:[#allocation5 + $0x20] sm:$0xff]  }
 0x289   : > { %1599 = vmatpush1.bf16.msra.mxu0 %v2774_v41  ;;  %1555 = vmatprep.subr.bf16.mxu1 %v2803_v48  ;;  %v2833_v48 = vld [vmem:[#allocation5 + $0x68] sm:$0xff]  }
 0x28a   : > { %1600 = vmatprep.subr.bf16.mxu0 %v2782_v28 }
 0x28d   : > { %1601 = vmatpush1.bf16.msra.mxu0 %v2780_v31  ;;  %v2821_v31 = vld [vmem:[#allocation5 + $0x50] sm:$0xff]  }
 0x28e   : > { %1602 = vmatprep.subr.bf16.mxu0 %v2788_v33 }
 0x291   : > { %1603 = vmatpush1.bf16.msra.mxu0 %v2786_v35  ;;  %v3524_v35 = vld [vmem:[#allocation5 + $0x90] sm:$0xff]  }
 0x292   : > { %1604 = vmatprep.subr.bf16.mxu0 %v2794_v37  ;;  %v3527_v37 = vld [vmem:[#allocation5 + $0xd8] sm:$0xff]  }
 0x295   : > { %1605 = vmatpush1.bf16.msra.mxu0 %v2792_v43  ;;  %v3530_v43 = vld [vmem:[#allocation5 + $0x98] sm:$0xff]  }
 0x296   : > { %1606 = vmatprep.subr.bf16.mxu0 %v2800_v45  ;;  %v3533_v45 = vld [vmem:[#allocation5 + $0xe0] sm:$0xff]  }
 0x299   : > { %1607 = vmatpush1.bf16.msra.mxu0 %v2798_v47  ;;  %v3536_v47 = vld [vmem:[#allocation5 + $0xa0] sm:$0xff]  }
 0x29a   : > { %1608 = vmatprep.subr.bf16.mxu0 %v2806_v49  ;;  %v3539_v49 = vld [vmem:[#allocation5 + $0xe8] sm:$0xff]  }
 0x357   : > { %v2645_v53 = vpop.f32.mrb[16].mxu0 }
 0x358   : > { %v1250_v55 = vadd.f32 %v2645_v53, %v2311_v50  ;;  %v1241_v56 = vpop.f32.mrb[17].mxu0  ;;  %v2809_v53 = vld [vmem:[%s3622_s8 + $0xe4] ss:$16 sps:$4 sm:$0xff]  }
 0x359   : > { %v1242_v57 = vadd.f32 %v2311_v50, %v1241_v56  ;;  %v2646_v58 = vpop.f32.mrb[18].mxu0  ;;  %v2810_v56 = vld [vmem:[%s3622_s8 + $0xe8] ss:$16 sps:$4 sm:$0xff]  }
 0x35a   : > { %v1253_v59 = vadd.f32 %v2646_v58, %v2311_v50  ;;  %v1244_v60 = vpop.f32.mrb[19].mxu0  ;;  %v1258_v61 = vadd.f32 %v1250_v55, %v555_v51  ;;  %v2804_v51 = vld [vmem:[%s3622_s8 + $0xc8] ss:$16 sps:$4 sm:$0xff]   ;;  %v2807_v55 = vld [vmem:[%s3622_s8 + $0xe0] ss:$16 sps:$4 sm:$0xff]  }
 0x35b   : > { %v1245_v63 = vadd.f32 %v2311_v50, %v1244_v60  ;;  %v1256_v0 = vadd.f32 %v1242_v57, %v553_v54  ;;  %v2801_v50 = vld [vmem:[%s3622_s8 + $0xc0] ss:$16 sps:$4 sm:$0xff]   ;;  %v2812_v54 = vld [vmem:[%s3622_s8 + $0xec] ss:$16 sps:$4 sm:$0xff]   ;;  %1609 = vmatpush1.bf16.msra.mxu0 %v2804_v51 }
 0x35c   : > { %1264 = vadd.xlane.f32.xlu1 %v1258_v61  ;;  %v1259_v3 = vadd.f32 %v1253_v59, %v556_v62  ;;  %1556 = vmatpush1.bf16.msra.mxu1 %v2801_v50  ;;  %v2813_v57 = vld [vmem:[#allocation5 + $0x40] sm:$0xff]   ;;  %v2834_v50 = vld [vmem:[#allocation5 + $0x28] sm:$0xff]  }
 0x35d   : > { %1260 = vadd.xlane.f32.xlu0 %v1256_v0  ;;  %v1257_v5 = vadd.f32 %v1245_v63, %v554_v1  ;;  %1557 = vmatprep.subr.bf16.mxu1 %v2809_v53  ;;  %v3486_v58 = vld [vmem:[#allocation5 + $0xc0] sm:$0xff]   ;;  %v3543_v51 = vld [vmem:[#allocation5 + $0xa8] sm:$0xff]   ;;  %v2837_v53 = vld [vmem:[#allocation5 + $0x70] sm:$0xff]  }
 0x35e   : > { %1610 = vmatprep.subr.bf16.mxu0 %v2812_v54  ;;  %v2838_v54 = vld [vmem:[#allocation5 + $0x30] sm:$0xff]  }
 0x35f   : > { %1611 = vmatpush1.bf16.msra.mxu0 %v2810_v56  ;;  %v3548_v56 = vld [vmem:[#allocation5 + $0xb0] sm:$0xff]  }
 0x360   : > { %1266 = vadd.xlane.f32.xlu1 %v1259_v3  ;;  %1558 = vmatpush1.bf16.msra.mxu1 %v2807_v55  ;;  %v3546_v55 = vld [vmem:[#allocation5 + $0xf0] sm:$0xff]  }
 0x361   : > { %1262 = vadd.xlane.f32.xlu0 %v1257_v5  ;;  %2471 = vmatprep.subr.bf16.mxu1 %v2813_v57  ;;  %v2841_v57 = vld [vmem:[#allocation5 + $0x78] sm:$0xff]  }
 0x362   : > { %2499 = vmatprep.subr.bf16.mxu0 %v3486_v58 }
 0x3e9   : > { %v1265_v15 = vpop.xlane.xlu1 %1264 }
 0x3ea   : > { %v1261_v16 = vpop.xlane.xlu0 %1260  ;;  %v1271_v4 = vmul.f32 0.0078125, %v1265_v15 }
 0x3eb   : > { %v1269_v17 = vmul.f32 0.0078125, %v1261_v16 }
 0x3ec   : > { %v3400_v20 = vsub.f32 %v1258_v61, %v1271_v4  ;;  %v2321_v4 = vld [vmem:[%s3621_s7] ss:$0 sm:$0xff] }
 0x3ed   : > { %v3398_v6 = vsub.f32 %v1256_v0, %v1269_v17  ;;  %v1267_v18 = vpop.xlane.xlu1 %1266 }
 0x3ee   : > { %v1263_v19 = vpop.xlane.xlu0 %1262  ;;  %v1272_v21 = vmul.f32 0.0078125, %v1267_v18  ;;  %v1279_v24 = vmul.f32 %v3400_v20, %v3400_v20 }
 0x3ef   : > { %v1270_v22 = vmul.f32 0.0078125, %v1263_v19  ;;  %v1277_v9 = vmul.f32 %v3398_v6, %v3398_v6 }
 0x3f0   : > { %v3406_v12 = vsub.f32 %v1259_v3, %v1272_v21 }
 0x3f1   : > { %v3404_v23 = vsub.f32 %v1257_v5, %v1270_v22  ;;  %1281 = vadd.xlane.f32.xlu0 %v1277_v9 }
 0x3f2   : > { %v1280_v26 = vmul.f32 %v3406_v12, %v3406_v12 }
 0x3f3   : > { %v1278_v25 = vmul.f32 %v3404_v23, %v3404_v23 }
 0x3f5   : > { %1285 = vadd.xlane.f32.xlu0 %v1279_v24  ;;  %1283 = vadd.xlane.f32.xlu1 %v1278_v25  ;;  %v2814_v24 = vld [vmem:[#allocation5] sm:$0xff]  }
 0x3f6   : > { %v3505_v25 = vld [vmem:[#allocation5 + $0x80] sm:$0xff]  }
 0x3f9   : > { %1287 = vadd.xlane.f32.xlu1 %v1280_v26  ;;  %v2817_v26 = vld [vmem:[#allocation5 + $0x48] sm:$0xff]  }
 0x47e   : > { %v1282_v59 = vpop.xlane.xlu0 %1281 }
 0x47f   : > { %v1289_v60 = vmul.f32 0.0078125, %v1282_v59  ;;  %v2842_v59 = vld [vmem:[#allocation5 + $0x38] sm:$0xff]  }
 0x481   : > { %v1293_v61 = vadd.f32 1e-05, %v1289_v60  ;;  %v3552_v60 = vld [vmem:[#allocation5 + $0xf8] sm:$0xff]  }
 0x482   : > { %v1284_v62 = vpop.xlane.xlu1 %1283  ;;  %v1286_v63 = vpop.xlane.xlu0 %1285 }
 0x483   : > { %2871 = vrsqrt.f32 %v1293_v61  ;;  %v1290_v0 = vmul.f32 0.0078125, %v1284_v62  ;;  %v1291_v1 = vmul.f32 0.0078125, %v1286_v63  ;;  %v3554_v61 = vld [vmem:[#allocation5 + $0xb8] sm:$0xff]   ;;  %v1361_v62 = vld [vmem:[%s3623_s9] sm:$0xf]  ;;  %v1377_v63 = vsub.s32 3, %v3276_v39 }
 0x485   : > { %v1294_v3 = vadd.f32 1e-05, %v1290_v0  ;;  %v1295_v5 = vadd.f32 1e-05, %v1291_v1  ;;  %v1366_v0 = vrot.slane %v1361_v62, %v595_v40  ;;  %v1374_v1 = vrot.slane %v1361_v62, %v603_v52 }
 0x486   : > { %v1288_v7 = vpop.xlane.xlu1 %1287 }
 0x487   : > { %2873 = vrsqrt.f32 %v1294_v3  ;;  %v1292_v8 = vmul.f32 0.0078125, %v1288_v7  ;;  %v1370_v3 = vrot.slane %v1361_v62, %v599_v42 }
 0x488   : > { %2875 = vrsqrt.f32 %v1295_v5  ;;  %v1378_v5 = vrot.slane %v1361_v62, %v1377_v63 }
 0x489   : > { %v1296_v29 = vadd.f32 1e-05, %v1292_v8 }
 0x48b   : > { %2877 = vrsqrt.f32 %v1296_v29 }
 0x48d   : > { %v2872_v11 = vpop.eup %2871 }
 0x48e   : > { %v1301_v10 = vmul.f32 %v2872_v11, %v3398_v6 }
 0x490   : > { %v1312_v15 = vmul.f32 %v2320_v13, %v1301_v10 }
 0x491   : > { %v2874_v14 = vpop.eup %2873 }
 0x492   : > { %v1302_v41 = vmul.f32 %v2874_v14, %v3404_v23  ;;  %v2876_v16 = vpop.eup %2875  ;;  %v3497_v19 = vadd.f32 %v2321_v4, %v1312_v15 }
 0x493   : > { %v1303_v6 = vmul.f32 %v2876_v16, %v3400_v20 }
 0x494   : > { %v1313_v17 = vmul.f32 %v2320_v13, %v1302_v41 }
 0x495   : > { %v2878_v18 = vpop.eup %2877  ;;  %v1314_v28 = vmul.f32 %v2320_v13, %v1303_v6 }
 0x496   : > { %v3499_v21 = vadd.f32 %v2321_v4, %v1313_v17  ;;  %v1304_v22 = vmul.f32 %v2878_v18, %v3406_v12  ;;  %v2818_v12 = vld [vmem:[#allocation5 + $0x8] sm:$0xff]  }
 0x497   : > { %v3519_v33 = vadd.f32 %v2321_v4, %v1314_v28 }
 0x498   : > { %v1327_v9 = vpack.c.bf16 %v3499_v21, %v3497_v19  ;;  %v1315_v23 = vmul.f32 %v2320_v13, %v1304_v22 }
 0x49a   : > { %1576 = vmatmul.mubr.bf16.vlgmr.msra.gmra.mrb[12].mxu1 %v1327_v9  ;;  %1629 = vmatmul.mubr.bf16.vlgmr.msra.gmra.mrb[20].mxu0 %v1327_v9  ;;  %v3511_v20 = vadd.f32 %v2321_v4, %v1315_v23 }
 0x49b   : > { %1585 = vmatprep.mubr.bf16.mxu1 %v2981_v2  ;;  %1638 = vmatprep.mubr.bf16.mxu0 %v2981_v2  ;;  %v2822_v2 = vld [vmem:[#allocation5 + $0x10] sm:$0xff]  }
 0x49c   : > { %2472 = vmatpush3.bf16.msra.mxu1 %v2814_v24  ;;  %2500 = vmatpush3.bf16.msra.mxu0 %v3505_v25  ;;  %v1328_v34 = vpack.c.bf16 %v3511_v20, %v3519_v33 }
 0x49d   : > { %2473 = vmatprep.subr.bf16.mxu1 %v2817_v26  ;;  %2501 = vmatprep.subr.bf16.mxu0 %v3507_v27 }
 0x4a0   : > { %2474 = vmatpush3.bf16.msra.mxu1 %v2818_v12  ;;  %2502 = vmatpush3.bf16.msra.mxu0 %v3514_v30 }
 0x4a1   : > { %2475 = vmatprep.subr.bf16.mxu1 %v2821_v31  ;;  %2503 = vmatprep.subr.bf16.mxu0 %v3517_v32 }
 0x4a2   : > { %1586 = vmatmul.mubr.bf16.gmra.mrb[16].mxu1 %v1328_v34  ;;  %1639 = vmatmul.mubr.bf16.gmra.mrb[24].mxu0 %v1328_v34 }
 0x4a4   : > { %2476 = vmatpush3.bf16.msra.mxu1 %v2822_v2  ;;  %2504 = vmatpush3.bf16.msra.mxu0 %v3524_v35 }
 0x4a5   : > { %2477 = vmatprep.subr.bf16.mxu1 %v2825_v36  ;;  %2505 = vmatprep.subr.bf16.mxu0 %v3527_v37 }
 0x4a8   : > { %2478 = vmatpush3.bf16.msra.mxu1 %v2826_v38  ;;  %2506 = vmatpush3.bf16.msra.mxu0 %v3530_v43 }
 0x4a9   : > { %2479 = vmatprep.subr.bf16.mxu1 %v2829_v44  ;;  %2507 = vmatprep.subr.bf16.mxu0 %v3533_v45 }
 0x4ac   : > { %2480 = vmatpush3.bf16.msra.mxu1 %v2830_v46  ;;  %2508 = vmatpush3.bf16.msra.mxu0 %v3536_v47 }
 0x4ad   : > { %2481 = vmatprep.subr.bf16.mxu1 %v2833_v48  ;;  %2509 = vmatprep.subr.bf16.mxu0 %v3539_v49 }
 0x4b0   : > { %2482 = vmatpush3.bf16.msra.mxu1 %v2834_v50  ;;  %2510 = vmatpush3.bf16.msra.mxu0 %v3543_v51 }
 0x4b1   : > { %2483 = vmatprep.subr.bf16.mxu1 %v2837_v53  ;;  %2511 = vmatprep.subr.bf16.mxu0 %v3546_v55 }
 0x4b4   : > { %2484 = vmatpush3.bf16.msra.mxu1 %v2838_v54  ;;  %2512 = vmatpush3.bf16.msra.mxu0 %v3548_v56 }
 0x4b5   : > { %2485 = vmatprep.subr.bf16.mxu1 %v2841_v57  ;;  %2513 = vmatprep.subr.bf16.mxu0 %v3552_v60 }
 0x4b8   : > { %2486 = vmatpush3.bf16.msra.mxu1 %v2842_v59  ;;  %2514 = vmatpush3.bf16.msra.mxu0 %v3554_v61 }
 0x4b9   : > { %2647 = vmatprep.subr.bf16.mxu1 %v3486_v58 }
 0x56d   : > { %v1577_v7 = vpop.f32.mrb[12].mxu1  ;;  %v1630_v8 = vpop.f32.mrb[20].mxu0 }
 0x56e   : > { %v1578_v29 = vadd.f32 %v1577_v7, %v1366_v0  ;;  %v1631_v58 = vadd.f32 %v1630_v8, %v1374_v1  ;;  %v1579_v11 = vpop.f32.mrb[13].mxu1  ;;  %v1632_v10 = vpop.f32.mrb[21].mxu0 }
 0x56f   : > { %v1580_v13 = vadd.f32 %v1579_v11, %v1370_v3  ;;  %v1633_v14 = vadd.f32 %v1632_v10, %v1378_v5  ;;  %v1581_v41 = vpop.f32.mrb[14].mxu1  ;;  %v1634_v15 = vpop.f32.mrb[22].mxu0 }
 0x570   : > { %v1582_v16 = vadd.f32 %v1581_v41, %v1366_v0  ;;  %v1635_v4 = vadd.f32 %v1634_v15, %v1374_v1  ;;  %v1583_v40 = vpop.f32.mrb[15].mxu1  ;;  %v1636_v17 = vpop.f32.mrb[23].mxu0  ;;  %v1649_v6 = vmax.f32 %v1578_v29, 0.0  ;;  %v1651_v39 = vmax.f32 %v1631_v58, 0.0 }
 0x571   : > { %v1584_v18 = vadd.f32 %v1583_v40, %v1370_v3  ;;  %v1637_v52 = vadd.f32 %v1636_v17, %v1378_v5  ;;  %v1650_v9 = vmax.f32 %v1580_v13, 0.0  ;;  %v1652_v23 = vmax.f32 %v1633_v14, 0.0 }
 0x572   : > { %v1653_v42 = vmax.f32 %v1582_v16, 0.0  ;;  %v1655_v22 = vmax.f32 %v1635_v4, 0.0 }
 0x573   : > { %v1654_v24 = vmax.f32 %v1584_v18, 0.0  ;;  %v1656_v26 = vmax.f32 %v1637_v52, 0.0 }
 0x574   : > { %v1665_v28 = vpack.c.bf16 %v1653_v42, %v1649_v6  ;;  %v1667_v12 = vpack.c.bf16 %v1655_v22, %v1651_v39 }
 0x575   : > { %v1666_v31 = vpack.c.bf16 %v1654_v24, %v1650_v9  ;;  %v1668_v34 = vpack.c.bf16 %v1656_v26, %v1652_v23  ;;  %v1587_v2 = vpop.f32.mrb[16].mxu1  ;;  %v1640_v36 = vpop.f32.mrb[24].mxu0 }
 0x576   : > { %v1588_v38 = vadd.f32 %v1587_v2, %v1366_v0  ;;  %v1641_v44 = vadd.f32 %v1640_v36, %v1374_v1  ;;  %v1589_v46 = vpop.f32.mrb[17].mxu1  ;;  %v1642_v48 = vpop.f32.mrb[25].mxu0 }
 0x577   : > { %v1590_v50 = vadd.f32 %v1589_v46, %v1370_v3  ;;  %v1643_v53 = vadd.f32 %v1642_v48, %v1378_v5  ;;  %v1591_v54 = vpop.f32.mrb[18].mxu1  ;;  %v1644_v57 = vpop.f32.mrb[26].mxu0  ;;  %1968 = vmatprep.mubr.bf16.mxu1 %v1666_v31  ;;  %2017 = vmatprep.mubr.bf16.mxu0 %v1668_v34 }
 0x578   : > { %v1592_v59 = vadd.f32 %v1591_v54, %v1366_v0  ;;  %v1645_v62 = vadd.f32 %v1644_v57, %v1374_v1  ;;  %v1593_v63 = vpop.f32.mrb[19].mxu1  ;;  %v1646_v7 = vpop.f32.mrb[27].mxu0  ;;  %1969 = vmatmul.mubr.bf16.vlgmr.msra.gmra.mrb[20].mxu1 %v1665_v28  ;;  %2018 = vmatmul.mubr.bf16.vlgmr.msra.gmra.mrb[28].mxu0 %v1667_v12  ;;  %v1657_v58 = vmax.f32 %v1588_v38, 0.0  ;;  %v1659_v11 = vmax.f32 %v1641_v44, 0.0 }
 0x579   : > { %v1594_v8 = vadd.f32 %v1593_v63, %v1370_v3  ;;  %v1647_v29 = vadd.f32 %v1646_v7, %v1378_v5  ;;  %2655 = vmatpush3.bf16.msra.mxu1 %v3505_v25  ;;  %v1658_v14 = vmax.f32 %v1590_v50, 0.0  ;;  %v1660_v41 = vmax.f32 %v1643_v53, 0.0 }
 0x57a   : > { %v1661_v10 = vmax.f32 %v1592_v59, 0.0  ;;  %v1663_v13 = vmax.f32 %v1645_v62, 0.0  ;;  %2648 = vmatprep.subr.bf16.mxu1 %v3507_v27 }
 0x57b   : > { %v1662_v15 = vmax.f32 %v1594_v8, 0.0  ;;  %v1664_v16 = vmax.f32 %v1647_v29, 0.0 }
 0x57c   : > { %v1669_v0 = vpack.c.bf16 %v1661_v10, %v1657_v58  ;;  %v1671_v1 = vpack.c.bf16 %v1663_v13, %v1659_v11 }
 0x57d   : > { %v1670_v4 = vpack.c.bf16 %v1662_v15, %v1658_v14  ;;  %v1672_v40 = vpack.c.bf16 %v1664_v16, %v1660_v41  ;;  %2656 = vmatpush3.bf16.msra.mxu1 %v3514_v30  ;;  %v2354_v30 = vld [vmem:[%s3651_s13] ss:$0 sm:$0xff] }
 0x57e   : > { %2649 = vmatprep.subr.bf16.mxu1 %v3517_v32 }
 0x57f   : > { %1976 = vmatprep.mubr.bf16.mxu1 %v1670_v4 }
 0x580   : > { %1977 = vmatmul.mubr.bf16.gmra.mrb[24].mxu1 %v1669_v0  ;;  %v2387_v0 = vld [vmem:[%s3652_s14] ss:$0 sm:$0xff] }
 0x581   : > { %2657 = vmatpush3.bf16.msra.mxu1 %v3524_v35  ;;  %2025 = vmatprep.mubr.bf16.mxu1 %v1672_v40 }
 0x582   : > { %2650 = vmatprep.subr.bf16.mxu1 %v3527_v37 }
 0x585   : > { %2658 = vmatpush3.bf16.msra.mxu1 %v3530_v43 }
 0x586   : > { %2651 = vmatprep.subr.bf16.mxu1 %v3533_v45 }
 0x589   : > { %2659 = vmatpush3.bf16.msra.mxu1 %v3536_v47 }
 0x58a   : > { %2652 = vmatprep.subr.bf16.mxu1 %v3539_v49 }
 0x58d   : > { %2660 = vmatpush3.bf16.msra.mxu1 %v3543_v51 }
 0x58e   : > { %2653 = vmatprep.subr.bf16.mxu1 %v3546_v55 }
 0x591   : > { %2661 = vmatpush3.bf16.msra.mxu1 %v3548_v56 }
 0x592   : > { %2654 = vmatprep.subr.bf16.mxu1 %v3552_v60 }
 0x595   : > { %2662 = vmatpush3.bf16.msra.mxu1 %v3554_v61 }
 0x598   : > { %2026 = vmatmul.mubr.bf16.vlgmr.msra.gmra.mrb[28].mxu1 %v1671_v1 }
 0x64b   : > { %v2487_v25 = vpop.f32.mrb[20].mxu1  ;;  %v2515_v27 = vpop.f32.mrb[28].mxu0 }
 0x64c   : > { %v2488_v32 = vpop.f32.mrb[21].mxu1  ;;  %v2516_v35 = vpop.f32.mrb[29].mxu0 }
 0x64d   : > { %v2489_v37 = vadd.f32 %v2488_v32, %v2487_v25  ;;  %v2517_v43 = vadd.f32 %v2516_v35, %v2515_v27  ;;  %v2490_v45 = vpop.f32.mrb[22].mxu1  ;;  %v2518_v47 = vpop.f32.mrb[30].mxu0  ;;  %v2388_v27 = vld [vmem:[%s3653_s19] ss:$0 sm:$0xff] }
 0x64e   : > { %v2491_v49 = vpop.f32.mrb[23].mxu1  ;;  %v2519_v51 = vpop.f32.mrb[31].mxu0 }
 0x64f   : > { %v1971_v55 = vadd.f32 %v2489_v37, %v2354_v30  ;;  %v2492_v56 = vadd.f32 %v2491_v49, %v2490_v45  ;;  %v2520_v60 = vadd.f32 %v2519_v51, %v2518_v47 }
 0x651   : > { %v2020_v3 = vadd.f32 %v2517_v43, %v1971_v55  ;;  %v1974_v61 = vadd.f32 %v2492_v56, %v2354_v30 }
 0x653   : > { %v2023_v5 = vadd.f32 %v2520_v60, %v1974_v61  ;;  %v2493_v17 = vpop.f32.mrb[24].mxu1  ;;  %v2034_v18 = vadd.f32 %v2020_v3, %v3497_v19 }
 0x654   : > { %v2494_v52 = vpop.f32.mrb[25].mxu1 }
 0x655   : > { %v2495_v6 = vadd.f32 %v2494_v52, %v2493_v17  ;;  %2038 = vadd.xlane.f32.xlu0 %v2034_v18  ;;  %v2496_v39 = vpop.f32.mrb[26].mxu1  ;;  %v2035_v42 = vadd.f32 %v2023_v5, %v3499_v21 }
 0x656   : > { %v2497_v22 = vpop.f32.mrb[27].mxu1 }
 0x657   : > { %v2498_v9 = vadd.f32 %v2497_v22, %v2496_v39  ;;  %2040 = vadd.xlane.f32.xlu1 %v2035_v42  ;;  %v1979_v26 = vadd.f32 %v2495_v6, %v2354_v30 }
 0x659   : > { %v1982_v34 = vadd.f32 %v2498_v9, %v2354_v30 }
 0x66b   : > { %v2521_v23 = vpop.f32.mrb[28].mxu1 }
 0x66c   : > { %v2522_v24 = vpop.f32.mrb[29].mxu1 }
 0x66d   : > { %v2523_v28 = vadd.f32 %v2522_v24, %v2521_v23  ;;  %v2524_v12 = vpop.f32.mrb[30].mxu1 }
 0x66e   : > { %v2525_v31 = vpop.f32.mrb[31].mxu1 }
 0x66f   : > { %v2028_v2 = vadd.f32 %v2523_v28, %v1979_v26  ;;  %v2526_v36 = vadd.f32 %v2525_v31, %v2524_v12 }
 0x671   : > { %v2031_v38 = vadd.f32 %v2526_v36, %v1982_v34  ;;  %v2036_v19 = vadd.f32 %v2028_v2, %v3519_v33 }
 0x673   : > { %2042 = vadd.xlane.f32.xlu0 %v2036_v19  ;;  %v2037_v44 = vadd.f32 %v2031_v38, %v3511_v20 }
 0x675   : > { %2044 = vadd.xlane.f32.xlu1 %v2037_v44 }
 0x6e2   : > { %v2039_v21 = vpop.xlane.xlu0 %2038 }
 0x6e3   : > { %v2046_v46 = vmul.f32 0.0078125, %v2039_v21 }
 0x6e4   : > { %v2041_v48 = vpop.xlane.xlu1 %2040 }
 0x6e5   : > { %v2050_v50 = vsub.f32 %v2034_v18, %v2046_v46  ;;  %v2047_v53 = vmul.f32 0.0078125, %v2041_v48 }
 0x6e7   : > { %v2051_v54 = vsub.f32 %v2035_v42, %v2047_v53  ;;  %v2054_v57 = vmul.f32 %v2050_v50, %v2050_v50 }
 0x6e9   : > { %2058 = vadd.xlane.f32.xlu0 %v2054_v57  ;;  %v2055_v59 = vmul.f32 %v2051_v54, %v2051_v54 }
 0x6eb   : > { %2060 = vadd.xlane.f32.xlu1 %v2055_v59 }
 0x700   : > { %v2043_v62 = vpop.xlane.xlu0 %2042 }
 0x701   : > { %v2048_v63 = vmul.f32 0.0078125, %v2043_v62 }
 0x702   : > { %v2045_v7 = vpop.xlane.xlu1 %2044 }
 0x703   : > { %v2052_v8 = vsub.f32 %v2036_v19, %v2048_v63  ;;  %v2049_v29 = vmul.f32 0.0078125, %v2045_v7 }
 0x705   : > { %v2053_v33 = vsub.f32 %v2037_v44, %v2049_v29  ;;  %v2056_v58 = vmul.f32 %v2052_v8, %v2052_v8 }
 0x707   : > { %2062 = vadd.xlane.f32.xlu0 %v2056_v58  ;;  %v2057_v20 = vmul.f32 %v2053_v33, %v2053_v33 }
 0x709   : > { %2064 = vadd.xlane.f32.xlu1 %v2057_v20 }
 0x776   : > { %v2059_v11 = vpop.xlane.xlu0 %2058 }
 0x777   : > { %v2066_v10 = vmul.f32 0.0078125, %v2059_v11 }
 0x778   : > { %v2061_v13 = vpop.xlane.xlu1 %2060 }
 0x779   : > { %v2070_v14 = vadd.f32 1e-05, %v2066_v10  ;;  %v2067_v41 = vmul.f32 0.0078125, %v2061_v13 }
 0x77b   : > { %2879 = vrsqrt.f32 %v2070_v14  ;;  %v2071_v15 = vadd.f32 1e-05, %v2067_v41 }
 0x77d   : > { %2881 = vrsqrt.f32 %v2071_v15 }
 0x785   : > { %v2880_v16 = vpop.eup %2879 }
 0x786   : > { %v2078_v1 = vmul.f32 %v2880_v16, %v2050_v50 }
 0x787   : > { %v2882_v4 = vpop.eup %2881 }
 0x788   : > { %v2089_v40 = vmul.f32 %v2387_v0, %v2078_v1  ;;  %v2079_v25 = vmul.f32 %v2882_v4, %v2051_v54 }
 0x78a   : > { %v2090_v30 = vmul.f32 %v2387_v0, %v2079_v25  ;;  %v2100_v32 = vadd.f32 %v2388_v27, %v2089_v40 }
 0x78c   : > { %v2101_v35 = vadd.f32 %v2388_v27, %v2090_v30 }
 0x78e   : > { %v2407_v37 = vpack.c.bf16 %v2101_v35, %v2100_v32 }
 0x790   : > { %2408 = vst [vmem:[%s545_s24] sm:$0xff] %v2407_v37  }
 0x794   : > { %v2063_v43 = vpop.xlane.xlu0 %2062 }
 0x795   : > { %v2068_v45 = vmul.f32 0.0078125, %v2063_v43 }
 0x796   : > { %v2065_v47 = vpop.xlane.xlu1 %2064 }
 0x797   : > { %v2072_v49 = vadd.f32 1e-05, %v2068_v45  ;;  %v2069_v51 = vmul.f32 0.0078125, %v2065_v47  ;;  %v2149_v39 = vld [vmem:[%s545_s24] sm:$0xff] (%p3655_p0)  }
 0x798   : > { %2150 = vst [vmem:[%s2133_s23] sm:$0xff] (%p3655_p0), %v2149_v39  }
 0x799   : > { %2883 = vrsqrt.f32 %v2072_v49  ;;  %v2073_v55 = vadd.f32 1e-05, %v2069_v51 }
 0x79b   : > { %2885 = vrsqrt.f32 %v2073_v55 }
 0x7a3   : > { %v2884_v56 = vpop.eup %2883 }
 0x7a4   : > { %v2080_v60 = vmul.f32 %v2884_v56, %v2052_v8 }
 0x7a5   : > { %v2886_v3 = vpop.eup %2885 }
 0x7a6   : > { %v2091_v61 = vmul.f32 %v2387_v0, %v2080_v60  ;;  %v2081_v5 = vmul.f32 %v2886_v3, %v2053_v33 }
 0x7a8   : > { %v2092_v17 = vmul.f32 %v2387_v0, %v2081_v5  ;;  %v2102_v18 = vadd.f32 %v2388_v27, %v2091_v61  ;;  %2130 = sbr.rel (!%p3655_p0) target bundleno = 1975 (0x7b7), region = 129 }
 0x7aa   : > { %v2103_v52 = vadd.f32 %v2388_v27, %v2092_v17 }
 0x7ac   : > { %v2412_v6 = vpack.c.bf16 %v2103_v52, %v2102_v18 }
 0x7ae   : > { %2414 = vst [vmem:[%s545_s24 + $0x8] sm:$0xff] %v2412_v6  }
 0x7b5   : > { %v2153_v42 = vld [vmem:[%s545_s24 + $0x8] sm:$0xff]  }
 0x7b6   : > { %2154 = vst [vmem:[%s2133_s23 + $0x10] sm:$0xff] %v2153_v42  }
 0x7b7 PF: > { %s3657_s15 = sld [smem:[#allocation10_spill]]  ;;  %s3658_s27 = sld [smem:[#allocation11_spill]] }
 0x7b8   : > { %s3659_s29 = smov %s2969_s30 }
 0x7bd   : > { %p23_p1 = scmp.ge.s32.totalorder %s3657_s15, 4   ;;  %s3660_s30 = smov %s3658_s27 }
 0x7bf   :  { %25 = sbr.rel (!%p23_p1) target bundleno = 8 (0x8), region = 202 }
 0x7c6   :  { %2197 = vsyncpa [#allocation4], 1 }
 0x7c7   :  { %2199 = vsyncpa [#allocation4 + $0x1], 1 }
 0x7c8   :  { %2200 = vsyncpa [#allocation6], 1 }

// kernel: simple_qa_forward.3
= control target key start
LH: loop header
LB: loop body
LE: loop exit
PB: predicated region body
PF: predicated region fallthrough
CT: control target
= control target key end

     0   :  { %s4940_s0 = inlined_call_operand.vmem [shape: bf16[16,128], index: 0, kind: input, shape index: {}]   ;;  %s4941_s1 = inlined_call_operand.vmem [shape: bf16[32,128], index: 1, kind: input, shape index: {}]   ;;  %s4942_s2 = inlined_call_operand.vmem [shape: bf16[128,128], index: 2, kind: input, shape index: {}]   ;;  %s4943_s3 = inlined_call_operand.vmem [shape: f32[1,128], index: 3, kind: input, shape index: {}]   ;;  %s4944_s4 = inlined_call_operand.vmem [shape: bf16[128,256], index: 4, kind: input, shape index: {}]   ;;  %s4945_s5 = inlined_call_operand.vmem [shape: f32[1,256], index: 5, kind: input, shape index: {}]   ;;  %s4946_s6 = inlined_call_operand.vmem [shape: bf16[128,128], index: 6, kind: input, shape index: {}]   ;;  %s4947_s7 = inlined_call_operand.vmem [shape: f32[1,128], index: 7, kind: input, shape index: {}]   ;;  %s4948_s8 = inlined_call_operand.vmem [shape: bf16[128,512], index: 8, kind: input, shape index: {}]   ;;  %s4949_s9 = inlined_call_operand.vmem [shape: f32[1,512], index: 9, kind: input, shape index: {}]   ;;  %s4950_s10 = inlined_call_operand.hbm [shape: f32[16,512], index: 10, kind: output, shape index: {0}]   ;;  %s4951_s11 = inlined_call_operand.hbm [shape: f32[2,8,16], index: 11, kind: output, shape index: {1}]  }
   0x1   :  { %4955 = sst [smem:[#allocation13_spill]] %s4948_s8 }
   0x2   :  { %17 = vsyncpa [#allocation5], 0 }
   0x3   :  { %19 = vsyncpa [#allocation5 + $0x1], 0 }
   0x4   :  { %20 = vsyncpa [#allocation7], 0  ;;  %s4161_s17 = smov 0   ;;  %s4163_s18 = smov 0  }
   0x5   :  { %s4165_s19 = smov 0   ;;  %s4167_s20 = smov 0  }
   0x6 LB: > { %4956 = sst [smem:[#allocation10_spill]] %s4073_s18  ;;  %s4182_s21 = sadd.s32 4294967295, %s4081_s20   ;;  %s4081_s20 = sphi %s4167_s20, %s4967_s20   ;;  %s4077_s19 = sphi %s4165_s19, %s4966_s19   ;;  %s4073_s18 = sphi %s4163_s18, %s4965_s18   ;;  %s4069_s17 = sphi %s4161_s17, %s4964_s17  }
   0x7   : > { %4957 = sst [smem:[#allocation11_spill]] %s4077_s19  ;;  %s3167_s22 = sadd.s32 4294967294, %s4081_s20  }
   0x8   : > { %s4186_s23 = sadd.s32 1, %s4081_s20   ;;  %s201_s24 = sadd.s32 1, %s4077_s19 }
   0x9   : > { %s198_s25 = ssub.s32 %s4081_s20, %s4186_s23  ;;  %p208_p0 = scmp.ne.s32.totalorder %s4077_s19, %s4073_s18 }
   0xa   : > { %p199_p1 = scmp.eq.s32.totalorder %s198_s25, 0  ;;  %p209_p2 = scmp.eq.s32.totalorder %s4081_s20, 0 }
   0xb   : > { %p264_p3 = scmp.eq.s32.totalorder %s4182_s21, 1  ;;  %p269_p4 = scmp.ne.s32.totalorder %s4073_s18, %s4069_s17 }
   0xc   : > { %s4198_s26 = scalar_select %p199_p1, %s4077_s19, %s201_s24  }
   0xd   : > { %p210_p5 = por %p209_p2, %p208_p0  ;;  %p4202_p6 = por %p264_p3, %p208_p0 }
   0xe   : > { %4958 = sst [smem:[#allocation12_spill]] %s4198_s26  ;;  %p270_p7 = scmp.eq.s32.totalorder %s3167_s22, 1 }
   0xf   : > { %p3169_p9 = scmp.ge.s32.totalorder %s4081_s20, 2 }
  0x10   : > { %p4206_p8 = por %p270_p7, %p269_p4 }
  0x11   : > { %331 = sbr.rel (%p3169_p9) target bundleno = 42 (0x2a), region = 48 }
  0x18   : > { %334 = sbr.rel (!%p210_p5) target bundleno = 42 (0x2a), region = 52  ;;  %s336_s29 = sand.u32 (%p210_p5), 1, %s4077_s19  }
  0x19   : > { %s3270_s30 = sshll.u32 (%p210_p5), %s4081_s20, 3  ;;  %s3170_s12 = sshll.u32 (%p210_p5), %s336_s29, 7 }
  0x1a   : > { %s4961_s8 = sld [smem:[#allocation13_spill]] (%p210_p5)  ;;  %s338_s16 = scalar_lea.vmem (%p210_p5), [#allocation3], %s3170_s12 }
  0x20   : > { %s4218_s15 = scalar_lea.vmem %s4961_s8, %s3270_s30 }
  0x21   : > { %v399_v0 = vld [vmem:[%s4218_s15] sm:$0xff]  ;;  %v401_v1 = vld [vmem:[%s4218_s15 + $0x10] sm:$0xff] }
  0x22   : > { %v403_v2 = vld [vmem:[%s4218_s15 + $0x20] sm:$0xff]  ;;  %400 = vst [vmem:[%s338_s16] sm:$0xff] %v399_v0  ;;  %402 = vst [vmem:[%s338_s16 + $0x8] sm:$0xff] %v401_v1  ;;  %v405_v3 = vld [vmem:[%s4218_s15 + $0x30] sm:$0xff] }
  0x23   : > { %404 = vst [vmem:[%s338_s16 + $0x10] sm:$0xff] %v403_v2  ;;  %v407_v4 = vld [vmem:[%s4218_s15 + $0x40] sm:$0xff]  ;;  %v409_v5 = vld [vmem:[%s4218_s15 + $0x50] sm:$0xff]  ;;  %406 = vst [vmem:[%s338_s16 + $0x18] sm:$0xff] %v405_v3 }
  0x24   : > { %408 = vst [vmem:[%s338_s16 + $0x20] sm:$0xff] %v407_v4  ;;  %410 = vst [vmem:[%s338_s16 + $0x28] sm:$0xff] %v409_v5  ;;  %v411_v6 = vld [vmem:[%s4218_s15 + $0x60] sm:$0xff]  ;;  %v413_v7 = vld [vmem:[%s4218_s15 + $0x70] sm:$0xff] }
  0x25   : > { %v415_v8 = vld [vmem:[%s4218_s15 + $0x80] sm:$0xff]  ;;  %412 = vst [vmem:[%s338_s16 + $0x30] sm:$0xff] %v411_v6  ;;  %414 = vst [vmem:[%s338_s16 + $0x38] sm:$0xff] %v413_v7  ;;  %v417_v9 = vld [vmem:[%s4218_s15 + $0x90] sm:$0xff] }
  0x26   : > { %416 = vst [vmem:[%s338_s16 + $0x40] sm:$0xff] %v415_v8  ;;  %v419_v10 = vld [vmem:[%s4218_s15 + $0xa0] sm:$0xff]  ;;  %v421_v11 = vld [vmem:[%s4218_s15 + $0xb0] sm:$0xff]  ;;  %418 = vst [vmem:[%s338_s16 + $0x48] sm:$0xff] %v417_v9 }
  0x27   : > { %420 = vst [vmem:[%s338_s16 + $0x50] sm:$0xff] %v419_v10  ;;  %422 = vst [vmem:[%s338_s16 + $0x58] sm:$0xff] %v421_v11  ;;  %v423_v12 = vld [vmem:[%s4218_s15 + $0xc0] sm:$0xff]  ;;  %v425_v13 = vld [vmem:[%s4218_s15 + $0xd0] sm:$0xff] }
  0x28   : > { %v427_v14 = vld [vmem:[%s4218_s15 + $0xe0] sm:$0xff]  ;;  %424 = vst [vmem:[%s338_s16 + $0x60] sm:$0xff] %v423_v12  ;;  %426 = vst [vmem:[%s338_s16 + $0x68] sm:$0xff] %v425_v13  ;;  %v429_v15 = vld [vmem:[%s4218_s15 + $0xf0] sm:$0xff] }
  0x29   : > { %428 = vst [vmem:[%s338_s16 + $0x70] sm:$0xff] %v427_v14  ;;  %430 = vst [vmem:[%s338_s16 + $0x78] sm:$0xff] %v429_v15 }
  0x2a PF: > { %p3173_p10 = scmp.ge.s32.totalorder %s4081_s20, 1  ;;  %p443_p11 = scmp.lt.s32.totalorder %s4081_s20, 3 }
  0x2c   : > { %p444_p12 = pnand %p3173_p10, %p443_p11 }
  0x2d   : > { %s4239_s22 = sand.u32 (!%p444_p12), 1, %s4073_s18   ;;  %s3176_s24 = sshll.u32 (!%p444_p12), %s4182_s21, 1 }
  0x2e   : > { %447 = sbr.rel (%p444_p12) target bundleno = 1883 (0x75b), region = 94  ;;  %s3174_s25 = sshll.u32 (!%p444_p12), %s4239_s22, 7 }
  0x2f   : > { %s3175_s29 = sshll.u32 (!%p444_p12), %s4239_s22, 5  ;;  %p495_p13 = scmp.lt.s32.totalorder (!%p444_p12), %s3176_s24, 3 }
  0x30   : > { %s4250_s14 = scalar_lea.vmem (!%p444_p12), [#allocation3], %s3174_s25  ;;  %s4252_s15 = scalar_lea.vmem (!%p444_p12), [#allocation4], %s3175_s29 }
  0x31   : > { %p3177_p0 = scmp.ne.s32.totalorder (!%p444_p12), %s4182_s21, 0 }
  0x35   : > { %s4969_s24 = smov (!%p495_p13, %s3176_s24), 3  ;;  %504 = sbr.rel (%p3177_p0) target bundleno = 1615 (0x64f), region = 102 }
  0x36   : > { %v3858_v16 = vld [vmem:[%s4944_s4 + $0x4] ss:$8 sps:$4 sm:$0xff] (!%p3177_p0)   ;;  %v3860_v17 = vld [vmem:[%s4944_s4] ss:$8 sps:$4 sm:$0xff] (!%p3177_p0)   ;;  %v4083_v18 = vmov (!%p3177_p0), 0.0   ;;  %v4084_v19 = vmov (!%p3177_p0), 0   ;;  %v647_v45 = vlaneseq (!%p3177_p0) }
  0x37   : > { %3354 = vmatprep.subr.bf16.mxu0 (!%p3177_p0), %v4083_v18  ;;  %781 = vmatprep.mubr.bf16.mxu1 (!%p3177_p0), %v4084_v19  ;;  %v3861_v20 = vld [vmem:[%s4944_s4 + $0x14] ss:$8 sps:$4 sm:$0xff] (!%p3177_p0)   ;;  %v3863_v21 = vld [vmem:[%s4944_s4 + $0x10] ss:$8 sps:$4 sm:$0xff] (!%p3177_p0)   ;;  %vm4085_vm0 = vmmov (!%p3177_p0), 0   ;;  %v3864_v22 = vld [vmem:[%s4942_s2] sm:$0xff] (!%p3177_p0)  }
  0x38   : > { %749 = vmatprep.subr.bf16.mxu1 (!%p3177_p0), %v3858_v16  ;;  %3370 = vmatprep.mubr.msk.bf16.mxu0 (!%p3177_p0), %vm4085_vm0, %v4083_v18  ;;  %v3865_v23 = vld [vmem:[%s4944_s4 + $0x24] ss:$8 sps:$4 sm:$0xff] (!%p3177_p0)   ;;  %v3867_v25 = vld [vmem:[%s4944_s4 + $0x20] ss:$8 sps:$4 sm:$0xff] (!%p3177_p0)   ;;  %v3869_v26 = vld [vmem:[%s4944_s4 + $0x34] ss:$8 sps:$4 sm:$0xff] (!%p3177_p0)  }
  0x39   : > { %750 = vmatpush1.bf16.msra.mxu1 (!%p3177_p0), %v3860_v17  ;;  %3355 = vmatpush3.bf16.msra.mxu0 (!%p3177_p0), %v3864_v22  ;;  %v3868_v24 = vld [vmem:[%s4942_s2 + $0x8] sm:$0xff] (!%p3177_p0)   ;;  %v3872_v27 = vld [vmem:[%s4942_s2 + $0x10] sm:$0xff] (!%p3177_p0)   ;;  %v3876_v30 = vld [vmem:[%s4942_s2 + $0x18] sm:$0xff] (!%p3177_p0)   ;;  %v648_v46 = vshrl.u32 (!%p3177_p0), %v647_v45, 7  ;;  %vm1070_vm1 = vcmask (!%p3177_p0), 130048   ;;  %s4954_s18 = smov (!%p3177_p0), 112  }
  0x3a   : > { %751 = vmatprep.subr.bf16.mxu1 (!%p3177_p0), %v3861_v20  ;;  %3356 = vmatprep.subr.bf16.mxu0 (!%p3177_p0), %v4083_v18  ;;  %v3871_v28 = vld [vmem:[%s4944_s4 + $0x30] ss:$8 sps:$4 sm:$0xff] (!%p3177_p0)   ;;  %v3873_v29 = vld [vmem:[%s4944_s4 + $0x44] ss:$8 sps:$4 sm:$0xff] (!%p3177_p0)   ;;  %v3875_v31 = vld [vmem:[%s4944_s4 + $0x40] ss:$8 sps:$4 sm:$0xff] (!%p3177_p0)  }
  0x3b   : > { %v3877_v32 = vld [vmem:[%s4944_s4 + $0x54] ss:$8 sps:$4 sm:$0xff] (!%p3177_p0)   ;;  %v3880_v33 = vld [vmem:[%s4942_s2 + $0x20] sm:$0xff] (!%p3177_p0)   ;;  %v3879_v34 = vld [vmem:[%s4944_s4 + $0x50] ss:$8 sps:$4 sm:$0xff] (!%p3177_p0)   ;;  %v649_v47 = vsub.s32 (!%p3177_p0), 0, %v648_v46 }
  0x3c   : > { %v3881_v35 = vld [vmem:[%s4944_s4 + $0x64] ss:$8 sps:$4 sm:$0xff]   ;;  %v3883_v36 = vld [vmem:[%s4944_s4 + $0x60] ss:$8 sps:$4 sm:$0xff]   ;;  %v3885_v38 = vld [vmem:[%s4944_s4 + $0x74] ss:$8 sps:$4 sm:$0xff]  }
  0x3d   : > { %752 = vmatpush1.bf16.msra.mxu1 %v3863_v21  ;;  %3357 = vmatpush3.bf16.msra.mxu0 %v3868_v24  ;;  %v3884_v37 = vld [vmem:[%s4942_s2 + $0x28] sm:$0xff]   ;;  %v3888_v39 = vld [vmem:[%s4942_s2 + $0x30] sm:$0xff]   ;;  %v3890_v41 = vld [vmem:[%s4942_s2 + $0x38] sm:$0xff]   ;;  %v653_v50 = vsub.s32 1, %v648_v46  ;;  %s4087_s29 = smov 96   ;;  %s4088_s30 = smov 80  }
  0x3e   : > { %753 = vmatprep.subr.bf16.mxu1 %v3865_v23  ;;  %3358 = vmatprep.subr.bf16.mxu0 %v4083_v18  ;;  %v3887_v40 = vld [vmem:[%s4944_s4 + $0x70] ss:$8 sps:$4 sm:$0xff]   ;;  %v3889_v42 = vld [vmem:[%s4941_s1] sm:$0xff]   ;;  %v3892_v44 = vld [vmem:[%s4941_s1 + $0x8] sm:$0xff]   ;;  %s4089_s12 = smov 64   ;;  %s4090_s8 = smov 48  }
  0x3f   : > { %v3891_v43 = vld [vmem:[%s4940_s0] sm:$0xff]   ;;  %s4091_s19 = smov 32   ;;  %s4092_s26 = smov 16   ;;  %vm2745_vm2 = vcmask 261120   ;;  %vm2748_vm3 = vcmask 392192   ;;  %vm2751_vm4 = vcmask 523264  }
  0x40   : > { %v645_v48 = vld [vmem:[%s4945_s5] sm:$0x3]  ;;  %vm2754_vm5 = vcmask 654336   ;;  %vm2757_vm6 = vcmask 785408   ;;  %vm2760_vm7 = vcmask 916480  }
  0x41   : > { %754 = vmatpush1.bf16.msra.mxu1 %v3867_v25  ;;  %3359 = vmatpush3.bf16.msra.mxu0 %v3872_v27  ;;  %v650_v49 = vrot.slane %v645_v48, %v649_v47  ;;  %v3178_v52 = vld [vmem:[%s4943_s3] ss:$0 sm:$0xff]  ;;  %v654_v57 = vrot.slane %v645_v48, %v653_v50 }
  0x42   : > { %755 = vmatprep.subr.bf16.mxu1 %v3869_v26  ;;  %3360 = vmatprep.subr.bf16.mxu0 %v4083_v18 }
  0x45   : > { %756 = vmatpush1.bf16.msra.mxu1 %v3871_v28  ;;  %3361 = vmatpush3.bf16.msra.mxu0 %v3876_v30 }
  0x46   : > { %757 = vmatprep.subr.bf16.mxu1 %v3873_v29  ;;  %3362 = vmatprep.subr.bf16.mxu0 %v4083_v18 }
  0x49   : > { %758 = vmatpush1.bf16.msra.mxu1 %v3875_v31  ;;  %3363 = vmatpush3.bf16.msra.mxu0 %v3880_v33 }
  0x4a   : > { %759 = vmatprep.subr.bf16.mxu1 %v3877_v32  ;;  %3364 = vmatprep.subr.bf16.mxu0 %v4083_v18 }
  0x4d   : > { %760 = vmatpush1.bf16.msra.mxu1 %v3879_v34  ;;  %3365 = vmatpush3.bf16.msra.mxu0 %v3884_v37 }
  0x4e   : > { %761 = vmatprep.subr.bf16.mxu1 %v3881_v35  ;;  %3366 = vmatprep.subr.bf16.mxu0 %v4083_v18 }
  0x51   : > { %762 = vmatpush1.bf16.msra.mxu1 %v3883_v36  ;;  %3367 = vmatpush3.bf16.msra.mxu0 %v3888_v39 }
  0x52   : > { %763 = vmatprep.subr.bf16.mxu1 %v3885_v38  ;;  %3368 = vmatprep.subr.bf16.mxu0 %v4083_v18 }
  0x55   : > { %764 = vmatpush1.bf16.msra.mxu1 %v3887_v40  ;;  %3369 = vmatpush3.bf16.msra.mxu0 %v3890_v41 }
  0x56   : > { %3398 = vmatprep.subr.bf16.mxu1 %v4083_v18  ;;  %3374 = vmatprep.subr.bf16.mxu0 %v4083_v18 }
  0x58   : > { %782 = vmatmul.mubr.bf16.vlgmr.msra.gmra.mrb[0].mxu1 %v3889_v42  ;;  %3371 = vmatmul.mubr.bf16.vlgmr.msra.gmra.mrb[0].mxu0 %v3891_v43 }
  0x59   : > { %791 = vmatprep.mubr.bf16.mxu1 %v4084_v19  ;;  %3376 = vmatprep.mubr.msk.bf16.mxu0 %vm4085_vm0, %v4083_v18 }
  0x60   : > { %792 = vmatmul.mubr.bf16.gmra.mrb[4].mxu1 %v3892_v44 }
  0x61   : > { %3400 = vmatprep.mubr.msk.bf16.mxu1 %vm4085_vm0, %v4083_v18 }
 0x12b   : > { %v783_v51 = vpop.f32.mrb[0].mxu1  ;;  %v618_v55 = vpop.f32.mrb[0].mxu0 }
 0x12c   : > { %v785_v53 = vpop.f32.mrb[1].mxu1  ;;  %v784_v56 = vadd.f32 %v783_v51, %v650_v49  ;;  %v619_v60 = vadd.f32 %v3178_v52, %v618_v55  ;;  %v3372_v61 = vpop.f32.mrb[1].mxu0 }
 0x12d   : > { %v787_v54 = vpop.f32.mrb[2].mxu1  ;;  %v621_v62 = vpop.f32.mrb[2].mxu0  ;;  %v4360_v4 = vadd.f32 %v785_v53, %v654_v57 }
 0x12e   : > { %v788_v58 = vadd.f32 %v787_v54, %v650_v49  ;;  %v789_v59 = vpop.f32.mrb[3].mxu1  ;;  %v622_v1 = vadd.f32 %v3178_v52, %v621_v62  ;;  %v3373_v2 = vpop.f32.mrb[3].mxu0  ;;  %v846_v12 = vpack.c.bf16 %v619_v60, %v619_v60 }
 0x12f   : > { %v4358_v63 = vadd.f32 %v789_v59, %v654_v57 }
 0x130   : > { %v3648_v0 = vpack.i.bf16 %v788_v58, %v784_v56  ;;  %v950_v3 = vpack.c.bf16 %v788_v58, %v784_v56  ;;  %v3673_v6 = vpack.i.bf16 %v622_v1, %v619_v60  ;;  %v847_v26 = vpack.c.bf16 %v622_v1, %v622_v1 }
 0x131   : > { %v4367_v10 = vpack.i.bf16 %v4358_v63, %v4360_v4  ;;  %v1054_v16 = vpack.c.bf16 %v4358_v63, %v4360_v4 }
 0x132   : > { %3649 = vrot.lane.b32.xlu0 %v3648_v0, %s4954_s18  ;;  %v1075_v5 = vsel %vm1070_vm1, %v950_v3, 0 }
 0x133   : > { %v793_v7 = vpop.f32.mrb[4].mxu1  ;;  %3375 = vmatpush3.bf16.xpose.msra.mxu0 %v1075_v5 }
 0x134   : > { %v794_v8 = vadd.f32 %v793_v7, %v650_v49  ;;  %v795_v9 = vpop.f32.mrb[5].mxu1  ;;  %3380 = vmatprep.subr.bf16.mxu0 %v4083_v18 }
 0x135   : > { %v797_v11 = vpop.f32.mrb[6].mxu1  ;;  %v4371_v17 = vadd.f32 %v795_v9, %v654_v57 }
 0x136   : > { %v798_v13 = vadd.f32 %v797_v11, %v650_v49  ;;  %v799_v14 = vpop.f32.mrb[7].mxu1  ;;  %v3653_v15 = vpack.i.bf16 %v794_v8, %v619_v60 }
 0x137   : > { %v4373_v19 = vadd.f32 %v799_v14, %v654_v57 }
 0x138   : > { %3654 = vrot.lane.b32.xlu0 %v3653_v15, %s4954_s18  ;;  %v3658_v20 = vpack.i.bf16 %v622_v1, %v798_v13  ;;  %v951_v21 = vpack.c.bf16 %v798_v13, %v794_v8  ;;  %v3668_v22 = vpack.i.bf16 %v798_v13, %v794_v8 }
 0x139   : > { %v4381_v24 = vpack.i.bf16 %v4373_v19, %v4371_v17  ;;  %v1055_v25 = vpack.c.bf16 %v4373_v19, %v4371_v17 }
 0x13a   : > { %3377 = vmatmul.mubr.msk.bf16.vlgmr.msra.gmra.mrb[4].mxu0 %vm1070_vm1, %v846_v12  ;;  %3659 = vrot.lane.b32.xlu1 %v3658_v20, %s4954_s18  ;;  %v1121_v23 = vsel %vm1070_vm1, %v951_v21, 0 }
 0x13b   : > { %3381 = vmatpush3.bf16.xpose.msra.mxu0 %v1121_v23  ;;  %3382 = vmatprep.mubr.msk.bf16.mxu0 %vm4085_vm0, %v4083_v18 }
 0x13c   : > { %3669 = vrot.lane.b32.xlu0 %v3668_v22, %s4087_s29  ;;  %3386 = vmatprep.subr.bf16.mxu0 %v4083_v18 }
 0x13e   : > { %3664 = vrot.lane.b32.xlu1 %v3648_v0, %s4087_s29 }
 0x140   : > { %3679 = vrot.lane.b32.xlu0 %v3648_v0, %s4088_s30 }
 0x142   : > { %3674 = vrot.lane.b32.xlu1 %v3673_v6, %s4087_s29  ;;  %3383 = vmatmul.mubr.msk.bf16.vlgmr.msra.gmra.mrb[8].mxu0 %vm1070_vm1, %v847_v26 }
 0x143   : > { %3388 = vmatprep.mubr.msk.bf16.mxu0 %vm4085_vm0, %v4083_v18 }
 0x144   : > { %3689 = vrot.lane.b32.xlu0 %v3673_v6, %s4088_s30 }
 0x146   : > { %3684 = vrot.lane.b32.xlu1 %v3668_v22, %s4088_s30 }
 0x148   : > { %3699 = vrot.lane.b32.xlu0 %v3668_v22, %s4089_s12 }
 0x14a   : > { %3694 = vrot.lane.b32.xlu1 %v3648_v0, %s4089_s12 }
 0x14c   : > { %3709 = vrot.lane.b32.xlu0 %v3648_v0, %s4090_s8 }
 0x14e   : > { %3704 = vrot.lane.b32.xlu1 %v3673_v6, %s4089_s12 }
 0x150   : > { %3719 = vrot.lane.b32.xlu0 %v3673_v6, %s4090_s8 }
 0x152   : > { %3714 = vrot.lane.b32.xlu1 %v3668_v22, %s4090_s8 }
 0x154   : > { %3729 = vrot.lane.b32.xlu0 %v3668_v22, %s4091_s19 }
 0x156   : > { %3724 = vrot.lane.b32.xlu1 %v3648_v0, %s4091_s19 }
 0x158   : > { %3739 = vrot.lane.b32.xlu0 %v3648_v0, %s4092_s26 }
 0x15a   : > { %3734 = vrot.lane.b32.xlu1 %v3673_v6, %s4091_s19 }
 0x15c   : > { %3749 = vrot.lane.b32.xlu0 %v3673_v6, %s4092_s26 }
 0x15e   : > { %3744 = vrot.lane.b32.xlu1 %v3668_v22, %s4092_s26 }
 0x160   : > { %3754 = vrot.lane.b32.xlu0 %v4367_v10, %s4954_s18 }
 0x162   : > { %3774 = vrot.lane.b32.xlu1 %v4381_v24, %s4954_s18 }
 0x164   : > { %3759 = vrot.lane.b32.xlu0 %v4367_v10, %s4087_s29 }
 0x166   : > { %3779 = vrot.lane.b32.xlu1 %v4381_v24, %s4087_s29 }
 0x168   : > { %3764 = vrot.lane.b32.xlu0 %v4367_v10, %s4088_s30 }
 0x16a   : > { %3784 = vrot.lane.b32.xlu1 %v4381_v24, %s4088_s30 }
 0x16c   : > { %3769 = vrot.lane.b32.xlu0 %v4367_v10, %s4089_s12 }
 0x16e   : > { %3789 = vrot.lane.b32.xlu1 %v4381_v24, %s4089_s12 }
 0x1a4   : > { %v3650_v27 = vpop.permute.xlu0 %3649 }
 0x1a5   : > { %v3652_v28 = vunpack.i.h.bf16 %v3650_v27  ;;  %v3651_v29 = vunpack.i.l.bf16 %v3650_v27 }
 0x1a7   : > { %v952_v30 = vpack.c.bf16 %v3652_v28, %v3651_v29 }
 0x1a9   : > { %v1167_v31 = vsel %vm1070_vm1, %v952_v30, 0 }
 0x1aa   : > { %v3655_v32 = vpop.permute.xlu0 %3654  ;;  %3387 = vmatpush3.bf16.xpose.msra.mxu0 %v1167_v31 }
 0x1ab   : > { %v3656_v33 = vunpack.i.l.bf16 %v3655_v32  ;;  %3392 = vmatprep.subr.bf16.mxu0 %v4083_v18  ;;  %v3657_v35 = vunpack.i.h.bf16 %v3655_v32 }
 0x1ac   : > { %v3660_v34 = vpop.permute.xlu1 %3659 }
 0x1ad   : > { %v3661_v36 = vunpack.i.l.bf16 %v3660_v34  ;;  %v848_v38 = vpack.c.bf16 %v3656_v33, %v3656_v33  ;;  %v3662_v47 = vunpack.i.h.bf16 %v3660_v34 }
 0x1ae   : > { %v3670_v37 = vpop.permute.xlu0 %3669 }
 0x1af   : > { %v953_v39 = vpack.c.bf16 %v3661_v36, %v3657_v35  ;;  %v3672_v40 = vunpack.i.h.bf16 %v3670_v37  ;;  %v3671_v42 = vunpack.i.l.bf16 %v3670_v37  ;;  %v849_v55 = vpack.c.bf16 %v3662_v47, %v3662_v47 }
 0x1b0   : > { %v3665_v41 = vpop.permute.xlu1 %3664 }
 0x1b1   : > { %v3667_v43 = vunpack.i.h.bf16 %v3665_v41  ;;  %v3666_v44 = vunpack.i.l.bf16 %v3665_v41  ;;  %3389 = vmatmul.mubr.msk.bf16.vlgmr.msra.gmra.mrb[12].mxu0 %vm1070_vm1, %v848_v38  ;;  %v1213_v45 = vsel %vm1070_vm1, %v953_v39, 0  ;;  %v955_v50 = vpack.c.bf16 %v3672_v40, %v3671_v42 }
 0x1b2   : > { %v3680_v46 = vpop.permute.xlu0 %3679  ;;  %3393 = vmatpush3.bf16.xpose.msra.mxu0 %v1213_v45  ;;  %3394 = vmatprep.mubr.msk.bf16.mxu0 %vm4085_vm0, %v4083_v18 }
 0x1b3   : > { %v954_v48 = vpack.c.bf16 %v3667_v43, %v3666_v44  ;;  %3404 = vmatprep.subr.bf16.mxu0 %v4083_v18  ;;  %v3682_v51 = vunpack.i.h.bf16 %v3680_v46  ;;  %v3681_v52 = vunpack.i.l.bf16 %v3680_v46  ;;  %v1305_v61 = vsel %vm1070_vm1, %v955_v50, 0 }
 0x1b4   : > { %v3675_v49 = vpop.permute.xlu1 %3674 }
 0x1b5   : > { %v1259_v53 = vsel %vm1070_vm1, %v954_v48, 0  ;;  %v3676_v56 = vunpack.i.l.bf16 %v3675_v49  ;;  %v956_v58 = vpack.c.bf16 %v3682_v51, %v3681_v52  ;;  %v3677_v0 = vunpack.i.h.bf16 %v3675_v49 }
 0x1b6   : > { %v3690_v54 = vpop.permute.xlu0 %3689  ;;  %3399 = vmatpush3.bf16.xpose.msra.mxu1 %v1259_v53 }
 0x1b7   : > { %3410 = vmatprep.subr.bf16.mxu1 %v4083_v18  ;;  %v850_v1 = vpack.c.bf16 %v3676_v56, %v3676_v56  ;;  %v1351_v7 = vsel %vm1070_vm1, %v956_v58, 0  ;;  %v851_v8 = vpack.c.bf16 %v3677_v0, %v3677_v0  ;;  %v3691_v9 = vunpack.i.l.bf16 %v3690_v54 }
 0x1b8   : > { %v3685_v57 = vpop.permute.xlu1 %3684  ;;  %v3692_v21 = vunpack.i.h.bf16 %v3690_v54 }
 0x1b9   : > { %v3687_v59 = vunpack.i.h.bf16 %v3685_v57  ;;  %v3686_v60 = vunpack.i.l.bf16 %v3685_v57  ;;  %3395 = vmatmul.mubr.msk.bf16.vlgmr.msra.gmra.mrb[16].mxu0 %vm1070_vm1, %v849_v55  ;;  %v852_v22 = vpack.c.bf16 %v3691_v9, %v3691_v9 }
 0x1ba   : > { %v3700_v62 = vpop.permute.xlu0 %3699  ;;  %3405 = vmatpush3.bf16.xpose.msra.mxu0 %v1305_v61  ;;  %3406 = vmatprep.mubr.msk.bf16.mxu0 %vm4085_vm0, %v4083_v18  ;;  %v853_v31 = vpack.c.bf16 %v3692_v21, %v3692_v21 }
 0x1bb   : > { %3416 = vmatprep.subr.bf16.mxu0 %v4083_v18  ;;  %v957_v3 = vpack.c.bf16 %v3687_v59, %v3686_v60  ;;  %v3702_v13 = vunpack.i.h.bf16 %v3700_v62  ;;  %v3701_v14 = vunpack.i.l.bf16 %v3700_v62 }
 0x1bc   : > { %v3695_v2 = vpop.permute.xlu1 %3694 }
 0x1bd   : > { %v3697_v5 = vunpack.i.h.bf16 %v3695_v2  ;;  %v3696_v6 = vunpack.i.l.bf16 %v3695_v2  ;;  %3401 = vmatmul.mubr.msk.bf16.vlgmr.msra.gmra.mrb[8].mxu1 %vm1070_vm1, %v850_v1  ;;  %v1397_v20 = vsel %vm1070_vm1, %v957_v3, 0  ;;  %v959_v26 = vpack.c.bf16 %v3702_v13, %v3701_v14 }
 0x1be   : > { %3411 = vmatpush3.bf16.xpose.msra.mxu1 %v1351_v7  ;;  %3412 = vmatprep.mubr.msk.bf16.mxu1 %vm4085_vm0, %v4083_v18  ;;  %v3710_v11 = vpop.permute.xlu0 %3709 }
 0x1bf   : > { %3422 = vmatprep.subr.bf16.mxu1 %v4083_v18  ;;  %v958_v15 = vpack.c.bf16 %v3697_v5, %v3696_v6  ;;  %v3712_v27 = vunpack.i.h.bf16 %v3710_v11  ;;  %v3711_v28 = vunpack.i.l.bf16 %v3710_v11  ;;  %v1489_v36 = vsel %vm1070_vm1, %v959_v26, 0 }
 0x1c0   : > { %v3705_v12 = vpop.permute.xlu1 %3704 }
 0x1c1   : > { %3407 = vmatmul.mubr.msk.bf16.vlgmr.msra.gmra.mrb[20].mxu0 %vm1070_vm1, %v851_v8  ;;  %v1443_v29 = vsel %vm1070_vm1, %v958_v15, 0  ;;  %v3706_v32 = vunpack.i.l.bf16 %v3705_v12  ;;  %v960_v33 = vpack.c.bf16 %v3712_v27, %v3711_v28  ;;  %v3707_v38 = vunpack.i.h.bf16 %v3705_v12 }
 0x1c2   : > { %3417 = vmatpush3.bf16.xpose.msra.mxu0 %v1397_v20  ;;  %3418 = vmatprep.mubr.msk.bf16.mxu0 %vm4085_vm0, %v4083_v18  ;;  %v3720_v30 = vpop.permute.xlu0 %3719 }
 0x1c3   : > { %3428 = vmatprep.subr.bf16.mxu0 %v4083_v18  ;;  %v854_v39 = vpack.c.bf16 %v3706_v32, %v3706_v32  ;;  %v1535_v44 = vsel %vm1070_vm1, %v960_v33, 0  ;;  %v855_v45 = vpack.c.bf16 %v3707_v38, %v3707_v38  ;;  %v3721_v46 = vunpack.i.l.bf16 %v3720_v30 }
 0x1c4   : > { %v3715_v23 = vpop.permute.xlu1 %3714  ;;  %v3722_v53 = vunpack.i.h.bf16 %v3720_v30 }
 0x1c5   : > { %3413 = vmatmul.mubr.msk.bf16.vlgmr.msra.gmra.mrb[12].mxu1 %vm1070_vm1, %v852_v22  ;;  %v3717_v34 = vunpack.i.h.bf16 %v3715_v23  ;;  %v3716_v35 = vunpack.i.l.bf16 %v3715_v23  ;;  %v856_v54 = vpack.c.bf16 %v3721_v46, %v3721_v46 }
 0x1c6   : > { %3423 = vmatpush3.bf16.xpose.msra.mxu1 %v1443_v29  ;;  %3424 = vmatprep.mubr.msk.bf16.mxu1 %vm4085_vm0, %v4083_v18  ;;  %v3730_v40 = vpop.permute.xlu0 %3729  ;;  %v857_v60 = vpack.c.bf16 %v3722_v53, %v3722_v53 }
 0x1c7   : > { %3434 = vmatprep.subr.bf16.mxu1 %v4083_v18  ;;  %v961_v41 = vpack.c.bf16 %v3717_v34, %v3716_v35  ;;  %v3732_v48 = vunpack.i.h.bf16 %v3730_v40  ;;  %v3731_v49 = vunpack.i.l.bf16 %v3730_v40 }
 0x1c8   : > { %v3725_v37 = vpop.permute.xlu1 %3724 }
 0x1c9   : > { %3419 = vmatmul.mubr.msk.bf16.vlgmr.msra.gmra.mrb[24].mxu0 %vm1070_vm1, %v853_v31  ;;  %v3727_v42 = vunpack.i.h.bf16 %v3725_v37  ;;  %v3726_v43 = vunpack.i.l.bf16 %v3725_v37  ;;  %v1581_v51 = vsel %vm1070_vm1, %v961_v41, 0  ;;  %v963_v55 = vpack.c.bf16 %v3732_v48, %v3731_v49 }
 0x1ca   : > { %3429 = vmatpush3.bf16.xpose.msra.mxu0 %v1489_v36  ;;  %3430 = vmatprep.mubr.msk.bf16.mxu0 %vm4085_vm0, %v4083_v18  ;;  %v3740_v52 = vpop.permute.xlu0 %3739 }
 0x1cb   : > { %3440 = vmatprep.subr.bf16.mxu0 %v4083_v18  ;;  %v962_v50 = vpack.c.bf16 %v3727_v42, %v3726_v43  ;;  %v3742_v56 = vunpack.i.h.bf16 %v3740_v52  ;;  %v3741_v57 = vunpack.i.l.bf16 %v3740_v52  ;;  %v1673_v2 = vsel %vm1070_vm1, %v963_v55, 0 }
 0x1cc   : > { %v3735_v47 = vpop.permute.xlu1 %3734 }
 0x1cd   : > { %3425 = vmatmul.mubr.msk.bf16.vlgmr.msra.gmra.mrb[16].mxu1 %vm1070_vm1, %v854_v39  ;;  %v1627_v58 = vsel %vm1070_vm1, %v962_v50, 0  ;;  %v3736_v61 = vunpack.i.l.bf16 %v3735_v47  ;;  %v964_v62 = vpack.c.bf16 %v3742_v56, %v3741_v57  ;;  %v3737_v3 = vunpack.i.h.bf16 %v3735_v47 }
 0x1ce   : > { %3435 = vmatpush3.bf16.xpose.msra.mxu1 %v1535_v44  ;;  %3436 = vmatprep.mubr.msk.bf16.mxu1 %vm4085_vm0, %v4083_v18  ;;  %v3750_v6 = vpop.permute.xlu0 %3749 }
 0x1cf   : > { %3446 = vmatprep.subr.bf16.mxu1 %v4083_v18  ;;  %v858_v5 = vpack.c.bf16 %v3736_v61, %v3736_v61  ;;  %v1719_v8 = vsel %vm1070_vm1, %v964_v62, 0  ;;  %v859_v9 = vpack.c.bf16 %v3737_v3, %v3737_v3  ;;  %v3751_v11 = vunpack.i.l.bf16 %v3750_v6 }
 0x1d0   : > { %v3745_v59 = vpop.permute.xlu1 %3744  ;;  %v3752_v13 = vunpack.i.h.bf16 %v3750_v6 }
 0x1d1   : > { %3431 = vmatmul.mubr.msk.bf16.vlgmr.msra.gmra.mrb[28].mxu0 %vm1070_vm1, %v855_v45  ;;  %v3747_v0 = vunpack.i.h.bf16 %v3745_v59  ;;  %v3746_v1 = vunpack.i.l.bf16 %v3745_v59  ;;  %v860_v14 = vpack.c.bf16 %v3751_v11, %v3751_v11 }
 0x1d2   : > { %3441 = vmatpush3.bf16.xpose.msra.mxu0 %v1581_v51  ;;  %3442 = vmatprep.mubr.msk.bf16.mxu0 %vm4085_vm0, %v4083_v18  ;;  %v861_v15 = vpack.c.bf16 %v3752_v13, %v3752_v13 }
 0x1d3   : > { %3452 = vmatprep.subr.bf16.mxu0 %v4083_v18  ;;  %v965_v7 = vpack.c.bf16 %v3747_v0, %v3746_v1 }
 0x1d5   : > { %3437 = vmatmul.mubr.msk.bf16.vlgmr.msra.gmra.mrb[20].mxu1 %vm1070_vm1, %v856_v54  ;;  %v1765_v12 = vsel %vm1070_vm1, %v965_v7, 0 }
 0x1d6   : > { %3447 = vmatpush3.bf16.xpose.msra.mxu1 %v1627_v58  ;;  %3448 = vmatprep.mubr.msk.bf16.mxu1 %vm4085_vm0, %v4083_v18 }
 0x1d7   : > { %3458 = vmatprep.subr.bf16.mxu1 %v4083_v18 }
 0x1d9   : > { %3443 = vmatmul.mubr.msk.bf16.vlgmr.msra.gmra.mrb[32].mxu0 %vm1070_vm1, %v857_v60 }
 0x1da   : > { %3453 = vmatpush3.bf16.xpose.msra.mxu0 %v1673_v2  ;;  %3454 = vmatprep.mubr.msk.bf16.mxu0 %vm4085_vm0, %v4083_v18 }
 0x1db   : > { %3464 = vmatprep.subr.bf16.mxu0 %v4083_v18 }
 0x1dd   : > { %3449 = vmatmul.mubr.msk.bf16.vlgmr.msra.gmra.mrb[24].mxu1 %vm1070_vm1, %v858_v5 }
 0x1de   : > { %3459 = vmatpush3.bf16.xpose.msra.mxu1 %v1719_v8  ;;  %3460 = vmatprep.mubr.msk.bf16.mxu1 %vm4085_vm0, %v4083_v18 }
 0x1df   : > { %3470 = vmatprep.subr.bf16.mxu1 %v4083_v18 }
 0x1e1   : > { %3455 = vmatmul.mubr.msk.bf16.vlgmr.msra.gmra.mrb[36].mxu0 %vm1070_vm1, %v859_v9 }
 0x1e2   : > { %3465 = vmatpush3.bf16.xpose.msra.mxu0 %v1765_v12  ;;  %3466 = vmatprep.mubr.msk.bf16.mxu0 %vm4085_vm0, %v4083_v18 }
 0x1e3   : > { %3476 = vmatprep.subr.bf16.mxu0 %v4083_v18 }
 0x1e5   : > { %3461 = vmatmul.mubr.msk.bf16.vlgmr.msra.gmra.mrb[28].mxu1 %vm1070_vm1, %v860_v14 }
 0x1e6   : > { %3471 = vmatpush3.bf16.msra.mxu1 %v1054_v16  ;;  %3472 = vmatprep.mubr.msk.bf16.mxu1 %vm4085_vm0, %v4083_v18 }
 0x1e7   : > { %3482 = vmatprep.subr.bf16.mxu1 %v4083_v18 }
 0x1e9   : > { %3467 = vmatmul.mubr.msk.bf16.vlgmr.msra.gmra.mrb[40].mxu0 %vm1070_vm1, %v861_v15 }
 0x1ea   : > { %3477 = vmatpush3.bf16.msra.mxu0 %v1055_v25  ;;  %3478 = vmatprep.mubr.msk.bf16.mxu0 %vm4085_vm0, %v4083_v18 }
 0x1eb   : > { %3488 = vmatprep.subr.bf16.mxu0 %v4083_v18 }
 0x20d   : > { %v4503_v20 = vpop.f32.mrb[4].mxu0 }
 0x20e   : > { %v3378_v63 = vpop.f32.mrb[5].mxu0  ;;  %v1807_v4 = vsel %vm1070_vm1, %v4503_v20, -inf }
 0x20f   : > { %1808 = vmax.xlane.f32.xlu1 %v1807_v4  ;;  %v1114_v16 = vpop.f32.mrb[6].mxu0 }
 0x210   : > { %v3379_v21 = vpop.f32.mrb[7].mxu0 }
 0x215   : > { %v4507_v22 = vpop.f32.mrb[8].mxu0 }
 0x216   : > { %v3384_v23 = vpop.f32.mrb[9].mxu0  ;;  %v1810_v17 = vsel %vm1070_vm1, %v4507_v22, -inf }
 0x217   : > { %1811 = vmax.xlane.f32.xlu0 %v1810_v17  ;;  %v1160_v19 = vpop.f32.mrb[10].mxu0 }
 0x218   : > { %v3385_v25 = vpop.f32.mrb[11].mxu0 }
 0x284   : > { %v4511_v26 = vpop.f32.mrb[12].mxu0 }
 0x285   : > { %v3390_v27 = vpop.f32.mrb[13].mxu0  ;;  %v1813_v28 = vsel %vm1070_vm1, %v4511_v26, -inf }
 0x286   : > { %1814 = vmax.xlane.f32.xlu0 %v1813_v28  ;;  %v1206_v29 = vpop.f32.mrb[14].mxu0  ;;  %v4557_v27 = vpop.permute.xlu0 %3754 }
 0x287   : > { %v3391_v30 = vpop.f32.mrb[15].mxu0 }
 0x28c   : > { %v4515_v31 = vpop.f32.mrb[16].mxu0 }
 0x28d   : > { %v3396_v32 = vpop.f32.mrb[17].mxu0  ;;  %v1816_v33 = vsel %vm1070_vm1, %v4515_v31, -inf }
 0x28e   : > { %1817 = vmax.xlane.f32.xlu1 %v1816_v33  ;;  %v1252_v34 = vpop.f32.mrb[18].mxu0  ;;  %v4561_v33 = vpop.permute.xlu1 %3774 }
 0x28f   : > { %v3397_v35 = vpop.f32.mrb[19].mxu0 }
 0x290   : > { %v4519_v36 = vpop.f32.mrb[8].mxu1 }
 0x291   : > { %v3402_v37 = vpop.f32.mrb[9].mxu1  ;;  %v1819_v38 = vsel %vm1070_vm1, %v4519_v36, -inf }
 0x292   : > { %v1298_v39 = vpop.f32.mrb[10].mxu1  ;;  %1820 = vmax.xlane.f32.xlu0 %v1819_v38  ;;  %v4565_v37 = vpop.permute.xlu0 %3759 }
 0x293   : > { %v3403_v40 = vpop.f32.mrb[11].mxu1 }
 0x294   : > { %v4523_v41 = vpop.f32.mrb[20].mxu0  ;;  %v4569_v40 = vpop.permute.xlu1 %3779 }
 0x295   : > { %v3408_v42 = vpop.f32.mrb[21].mxu0  ;;  %v1822_v43 = vsel %vm1070_vm1, %v4523_v41, -inf }
 0x296   : > { %1823 = vmax.xlane.f32.xlu1 %v1822_v43  ;;  %v1344_v44 = vpop.f32.mrb[22].mxu0  ;;  %v4571_v42 = vpop.permute.xlu0 %3764 }
 0x297   : > { %v3409_v45 = vpop.f32.mrb[23].mxu0 }
 0x298   : > { %v4527_v46 = vpop.f32.mrb[12].mxu1  ;;  %v4573_v43 = vpop.permute.xlu1 %3784 }
 0x299   : > { %v3414_v47 = vpop.f32.mrb[13].mxu1  ;;  %v1825_v48 = vsel %vm1070_vm1, %v4527_v46, -inf }
 0x29a   : > { %v1390_v49 = vpop.f32.mrb[14].mxu1  ;;  %1826 = vmax.xlane.f32.xlu0 %v1825_v48  ;;  %v4577_v44 = vpop.permute.xlu0 %3769 }
 0x29b   : > { %v3415_v50 = vpop.f32.mrb[15].mxu1 }
 0x29c   : > { %v4531_v51 = vpop.f32.mrb[24].mxu0  ;;  %v4579_v45 = vpop.permute.xlu1 %3789 }
 0x29d   : > { %v3420_v52 = vpop.f32.mrb[25].mxu0  ;;  %v1828_v53 = vsel %vm1070_vm1, %v4531_v51, -inf }
 0x29e   : > { %1829 = vmax.xlane.f32.xlu1 %v1828_v53  ;;  %v1436_v54 = vpop.f32.mrb[26].mxu0 }
 0x29f   : > { %v3421_v55 = vpop.f32.mrb[27].mxu0 }
 0x2a0   : > { %v4535_v56 = vpop.f32.mrb[16].mxu1  ;;  %v1809_v49 = vpop.xlane.xlu1 %1808 }
 0x2a1   : > { %v3426_v57 = vpop.f32.mrb[17].mxu1  ;;  %v1831_v58 = vsel %vm1070_vm1, %v4535_v56, -inf  ;;  %v1855_v50 = vsub.f32 %v4503_v20, %v1809_v49 }
 0x2a2   : > { %v1482_v59 = vpop.f32.mrb[18].mxu1  ;;  %1832 = vmax.xlane.f32.xlu0 %v1831_v58 }
 0x2a3   : > { %v3427_v60 = vpop.f32.mrb[19].mxu1  ;;  %v1871_v53 = vmul.f32 1.442695, %v1855_v50 }
 0x2a4   : > { %v4539_v61 = vpop.f32.mrb[28].mxu0  ;;  %v1812_v47 = vpop.xlane.xlu0 %1811 }
 0x2a5   : > { %v3432_v62 = vpop.f32.mrb[29].mxu0  ;;  %v1834_v0 = vsel %vm1070_vm1, %v4539_v61, -inf  ;;  %v1856_v48 = vsub.f32 %v4507_v22, %v1812_v47 }
 0x2a6   : > { %1835 = vmax.xlane.f32.xlu1 %v1834_v0  ;;  %v1528_v1 = vpop.f32.mrb[30].mxu0 }
 0x2a7   : > { %v3433_v2 = vpop.f32.mrb[31].mxu0  ;;  %v1873_v52 = vmul.f32 1.442695, %v1856_v48 }
 0x2a8   : > { %v4543_v3 = vpop.f32.mrb[20].mxu1 }
 0x2a9   : > { %v3438_v5 = vpop.f32.mrb[21].mxu1  ;;  %v1837_v6 = vsel %vm1070_vm1, %v4543_v3, -inf  ;;  %3901 = vpow2.f32 %v1873_v52 }
 0x2aa   : > { %v1574_v7 = vpop.f32.mrb[22].mxu1  ;;  %1838 = vmax.xlane.f32.xlu0 %v1837_v6  ;;  %3903 = vpow2.f32 %v1871_v53 }
 0x2ab   : > { %v3439_v8 = vpop.f32.mrb[23].mxu1 }
 0x2ac   : > { %v4547_v9 = vpop.f32.mrb[32].mxu0 }
 0x2ad   : > { %v3444_v11 = vpop.f32.mrb[33].mxu0  ;;  %v1840_v12 = vsel %vm1070_vm1, %v4547_v9, -inf }
 0x2ae   : > { %1841 = vmax.xlane.f32.xlu1 %v1840_v12  ;;  %v1620_v13 = vpop.f32.mrb[34].mxu0 }
 0x2af   : > { %v3445_v14 = vpop.f32.mrb[35].mxu0 }
 0x2b0   : > { %v4551_v15 = vpop.f32.mrb[24].mxu1 }
 0x2b1   : > { %v3450_v63 = vpop.f32.mrb[25].mxu1  ;;  %v1843_v4 = vsel %vm1070_vm1, %v4551_v15, -inf }
 0x2b2   : > { %v1666_v16 = vpop.f32.mrb[26].mxu1  ;;  %1844 = vmax.xlane.f32.xlu0 %v1843_v4 }
 0x2b3   : > { %v3451_v21 = vpop.f32.mrb[27].mxu1  ;;  %v4585_v55 = vpop.eup %3901 }
 0x2b4   : > { %v4555_v23 = vpop.f32.mrb[36].mxu0  ;;  %v1906_v58 = vsel %vm1070_vm1, %v4585_v55, 0.0  ;;  %v4591_v22 = vpop.eup %3903 }
 0x2b5   : > { %v3456_v17 = vpop.f32.mrb[37].mxu0  ;;  %v1846_v54 = vsel %vm1070_vm1, %v4555_v23, -inf  ;;  %v1903_v20 = vsel %vm1070_vm1, %v4591_v22, 0.0 }
 0x2b6   : > { %v1712_v19 = vpop.f32.mrb[38].mxu0 }
 0x2b7   : > { %v3457_v25 = vpop.f32.mrb[39].mxu0 }
 0x2b8   : > { %v4559_v28 = vpop.f32.mrb[28].mxu1 }
 0x2b9   : > { %v3462_v29 = vpop.f32.mrb[29].mxu1  ;;  %v1849_v57 = vsel %vm1070_vm1, %v4559_v28, -inf }
 0x2ba   : > { %v1758_v30 = vpop.f32.mrb[30].mxu1 }
 0x2bb   : > { %v3463_v32 = vpop.f32.mrb[31].mxu1 }
 0x2bc   : > { %v4563_v34 = vpop.f32.mrb[40].mxu0 }
 0x2bd   : > { %v3468_v35 = vpop.f32.mrb[41].mxu0  ;;  %v1852_v59 = vsel %vm1070_vm1, %v4563_v34, -inf }
 0x2be   : > { %v1804_v38 = vpop.f32.mrb[42].mxu0 }
 0x2bf   : > { %3799 = vrot.lane.b32.xlu1 %v4381_v24, %s4090_s8  ;;  %v3469_v39 = vpop.f32.mrb[43].mxu0 }
 0x2c8   : > { %3794 = vrot.lane.b32.xlu0 %v4367_v10, %s4090_s8 }
 0x2e3   : > { %1847 = vmax.xlane.f32.xlu1 %v1846_v54 }
 0x2e7   : > { %1850 = vmax.xlane.f32.xlu0 %v1849_v57  ;;  %1907 = vadd.xlane.f32.xlu1 %v1906_v58 }
 0x2eb   : > { %1904 = vadd.xlane.f32.xlu0 %v1903_v20  ;;  %1853 = vmax.xlane.f32.xlu1 %v1852_v59 }
 0x313   : > { %v1815_v60 = vpop.xlane.xlu0 %1814 }
 0x314   : > { %v1857_v62 = vsub.f32 %v4511_v26, %v1815_v60 }
 0x316   : > { %v1875_v0 = vmul.f32 1.442695, %v1857_v62 }
 0x318   : > { %3905 = vpow2.f32 %v1875_v0 }
 0x31b   : > { %v1818_v1 = vpop.xlane.xlu1 %1817 }
 0x31c   : > { %v1858_v2 = vsub.f32 %v4515_v31, %v1818_v1 }
 0x31e   : > { %v1877_v5 = vmul.f32 1.442695, %v1858_v2 }
 0x31f   : > { %v1821_v6 = vpop.xlane.xlu0 %1820 }
 0x320   : > { %3907 = vpow2.f32 %v1877_v5  ;;  %v1859_v7 = vsub.f32 %v4519_v36, %v1821_v6 }
 0x322   : > { %v4600_v8 = vpop.eup %3905  ;;  %v1879_v11 = vmul.f32 1.442695, %v1859_v7 }
 0x323   : > { %v1824_v12 = vpop.xlane.xlu1 %1823  ;;  %v1909_v13 = vsel %vm1070_vm1, %v4600_v8, 0.0 }
 0x324   : > { %3909 = vpow2.f32 %v1879_v11  ;;  %v1860_v26 = vsub.f32 %v4523_v41, %v1824_v12  ;;  %1910 = vadd.xlane.f32.xlu0 %v1909_v13 }
 0x326   : > { %v1881_v14 = vmul.f32 1.442695, %v1860_v26 }
 0x327   : > { %v1827_v63 = vpop.xlane.xlu0 %1826 }
 0x328   : > { %3911 = vpow2.f32 %v1881_v14  ;;  %v1861_v31 = vsub.f32 %v4527_v46, %v1827_v63 }
 0x32a   : > { %v4606_v4 = vpop.eup %3907  ;;  %v1883_v16 = vmul.f32 1.442695, %v1861_v31 }
 0x32b   : > { %v1830_v36 = vpop.xlane.xlu1 %1829  ;;  %v1912_v21 = vsel %vm1070_vm1, %v4606_v4, 0.0 }
 0x32c   : > { %3913 = vpow2.f32 %v1883_v16  ;;  %1913 = vadd.xlane.f32.xlu1 %v1912_v21  ;;  %v1862_v19 = vsub.f32 %v4531_v51, %v1830_v36 }
 0x32e   : > { %v4610_v17 = vpop.eup %3909  ;;  %v1885_v30 = vmul.f32 1.442695, %v1862_v19 }
 0x32f   : > { %v1833_v41 = vpop.xlane.xlu0 %1832  ;;  %v1915_v25 = vsel %vm1070_vm1, %v4610_v17, 0.0 }
 0x330   : > { %v1863_v29 = vsub.f32 %v4535_v56, %v1833_v41  ;;  %1916 = vadd.xlane.f32.xlu0 %v1915_v25  ;;  %v3777_v25 = vunpack.i.h.bf16 %v4561_v33 }
 0x332   : > { %v4616_v46 = vpop.eup %3911  ;;  %v1887_v32 = vmul.f32 1.442695, %v1863_v29  ;;  %v3776_v29 = vunpack.i.l.bf16 %v4561_v33 }
 0x333   : > { %v1836_v35 = vpop.xlane.xlu1 %1835  ;;  %v1918_v38 = vsel %vm1070_vm1, %v4616_v46, 0.0 }
 0x334   : > { %3915 = vpow2.f32 %v1887_v32  ;;  %v1864_v39 = vsub.f32 %v4539_v61, %v1836_v35  ;;  %1919 = vadd.xlane.f32.xlu1 %v1918_v38 }
 0x335   : > { %3917 = vpow2.f32 %v1885_v30 }
 0x336   : > { %v4621_v51 = vpop.eup %3913  ;;  %v1889_v47 = vmul.f32 1.442695, %v1864_v39  ;;  %v3757_v39 = vunpack.i.h.bf16 %v4557_v27 }
 0x337   : > { %v1921_v56 = vsel %vm1070_vm1, %v4621_v51, 0.0  ;;  %v1839_v59 = vpop.xlane.xlu0 %1838 }
 0x338   : > { %3919 = vpow2.f32 %v1889_v47  ;;  %1922 = vadd.xlane.f32.xlu0 %v1921_v56  ;;  %v1865_v60 = vsub.f32 %v4543_v3, %v1839_v59  ;;  %v3756_v47 = vunpack.i.l.bf16 %v4557_v27  ;;  %v1057_v56 = vpack.c.bf16 %v3777_v25, %v3776_v29 }
 0x33a   : > { %v1891_v0 = vmul.f32 1.442695, %v1865_v60 }
 0x33b   : > { %v1842_v48 = vpop.xlane.xlu1 %1841 }
 0x33c   : > { %v1866_v49 = vsub.f32 %v4547_v9, %v1842_v48 }
 0x33e   : > { %v4626_v50 = vpop.eup %3915  ;;  %v1893_v52 = vmul.f32 1.442695, %v1866_v49 }
 0x33f   : > { %v1927_v53 = vsel %vm1070_vm1, %v4626_v50, 0.0  ;;  %v4630_v61 = vpop.eup %3917  ;;  %v1845_v62 = vpop.xlane.xlu0 %1844 }
 0x340   : > { %3921 = vpow2.f32 %v1893_v52  ;;  %1928 = vadd.xlane.f32.xlu1 %v1927_v53  ;;  %v1924_v58 = vsel %vm1070_vm1, %v4630_v61, 0.0  ;;  %v1867_v1 = vsub.f32 %v4551_v15, %v1845_v62  ;;  %v4648_v5 = vpop.permute.xlu1 %3799  ;;  %v1056_v52 = vpack.c.bf16 %v3757_v39, %v3756_v47 }
 0x341   : > { %3923 = vpow2.f32 %v1891_v0 }
 0x342   : > { %v4632_v54 = vpop.eup %3919  ;;  %v1895_v2 = vmul.f32 1.442695, %v1867_v1 }
 0x343   : > { %v1930_v57 = vsel %vm1070_vm1, %v4632_v54, 0.0  ;;  %v4650_v6 = vpop.permute.xlu0 %3794 }
 0x344   : > { %1931 = vadd.xlane.f32.xlu0 %v1930_v57  ;;  %1925 = vadd.xlane.f32.xlu1 %v1924_v58  ;;  %3925 = vpow2.f32 %v1895_v2  ;;  %v3762_v58 = vunpack.i.h.bf16 %v4565_v37 }
 0x34a   : > { %v4638_v9 = vpop.eup %3921 }
 0x34b   : > { %v1936_v20 = vsel %vm1070_vm1, %v4638_v9, 0.0  ;;  %v4653_v14 = vpop.eup %3923 }
 0x34c   : > { %1937 = vadd.xlane.f32.xlu0 %v1936_v20  ;;  %v1933_v16 = vsel %vm1070_vm1, %v4653_v14, 0.0  ;;  %v3761_v20 = vunpack.i.l.bf16 %v4565_v37  ;;  %v3782_v37 = vunpack.i.h.bf16 %v4569_v40 }
 0x34e   : > { %v4658_v36 = vpop.eup %3925  ;;  %v1058_v1 = vpack.c.bf16 %v3762_v58, %v3761_v20 }
 0x34f   : > { %v1939_v19 = vsel %vm1070_vm1, %v4658_v36, 0.0 }
 0x355   : > { %3804 = vrot.lane.b32.xlu1 %v4367_v10, %s4091_s19 }
 0x362   : > { %3809 = vrot.lane.b32.xlu0 %v4381_v24, %s4091_s19 }
 0x370   : > { %v1848_v7 = vpop.xlane.xlu1 %1847 }
 0x371   : > { %v1868_v11 = vsub.f32 %v4555_v23, %v1848_v7 }
 0x373   : > { %v1897_v12 = vmul.f32 1.442695, %v1868_v11 }
 0x374   : > { %v1851_v13 = vpop.xlane.xlu0 %1850  ;;  %v1908_v26 = vpop.xlane.xlu1 %1907 }
 0x375   : > { %3927 = vpow2.f32 %v1897_v12  ;;  %v1869_v3 = vsub.f32 %v4559_v28, %v1851_v13 }
 0x376   : > { %3929 = vrcp.f32 %v1908_v26  ;;  %v3767_v26 = vunpack.i.h.bf16 %v4571_v42 }
 0x377   : > { %v1899_v15 = vmul.f32 1.442695, %v1869_v3  ;;  %v3766_v3 = vunpack.i.l.bf16 %v4571_v42 }
 0x378   : > { %v1905_v63 = vpop.xlane.xlu0 %1904  ;;  %v1854_v31 = vpop.xlane.xlu1 %1853 }
 0x379   : > { %3931 = vpow2.f32 %v1899_v15  ;;  %v1870_v23 = vsub.f32 %v4563_v34, %v1854_v31  ;;  %1934 = vadd.xlane.f32.xlu1 %v1933_v16  ;;  %v1060_v31 = vpack.c.bf16 %v3767_v26, %v3766_v3  ;;  %v3787_v16 = vunpack.i.h.bf16 %v4573_v43 }
 0x37a   : > { %3933 = vrcp.f32 %v1905_v63 }
 0x37b   : > { %v1901_v21 = vmul.f32 1.442695, %v1870_v23  ;;  %v3786_v23 = vunpack.i.l.bf16 %v4573_v43  ;;  %v3772_v43 = vunpack.i.h.bf16 %v4577_v44 }
 0x37d   : > { %3935 = vpow2.f32 %v1901_v21  ;;  %1940 = vadd.xlane.f32.xlu1 %v1939_v19  ;;  %v1061_v29 = vpack.c.bf16 %v3787_v16, %v3786_v23 }
 0x37f   : > { %v4663_v28 = vpop.eup %3927 }
 0x380   : > { %v3930_v41 = vpop.eup %3929  ;;  %v1942_v30 = vsel %vm1070_vm1, %v4663_v28, 0.0 }
 0x381   : > { %v4670_v34 = vmul.f32 %v3930_v41, %v4585_v55  ;;  %1943 = vadd.xlane.f32.xlu0 %v1942_v30  ;;  %v3771_v30 = vunpack.i.l.bf16 %v4577_v44 }
 0x383   : > { %v4672_v32 = vpop.eup %3931  ;;  %v1984_v35 = vpack.c.bf16 %v4670_v34, %v4670_v34  ;;  %v1062_v39 = vpack.c.bf16 %v3772_v43, %v3771_v30 }
 0x384   : > { %v3934_v38 = vpop.eup %3933  ;;  %v1945_v33 = vsel %vm1070_vm1, %v4672_v32, 0.0 }
 0x385   : > { %v1952_v48 = vmul.f32 %v3934_v38, %v4591_v22  ;;  %3479 = vmatmul.mubr.msk.bf16.vlgmr.msra.gmra.mrb[44].mxu0 %vm1070_vm1, %v1984_v35  ;;  %1946 = vadd.xlane.f32.xlu1 %v1945_v33 }
 0x386   : > { %3489 = vmatpush3.bf16.msra.mxu0 %v1057_v56  ;;  %3490 = vmatprep.mubr.msk.bf16.mxu0 %vm4085_vm0, %v4083_v18  ;;  %v3796_v56 = vunpack.i.l.bf16 %v4650_v6 }
 0x387   : > { %v4684_v55 = vpop.eup %3935  ;;  %v1983_v49 = vpack.c.bf16 %v1952_v48, %v1952_v48  ;;  %3500 = vmatprep.subr.bf16.mxu0 %v4083_v18 }
 0x388   : > { %v1948_v27 = vsel %vm1070_vm1, %v4684_v55, 0.0 }
 0x389   : > { %3473 = vmatmul.mubr.msk.bf16.vlgmr.msra.gmra.mrb[32].mxu1 %vm1070_vm1, %v1983_v49  ;;  %1949 = vadd.xlane.f32.xlu0 %v1948_v27 }
 0x38a   : > { %3483 = vmatpush3.bf16.msra.mxu1 %v1056_v52  ;;  %3484 = vmatprep.mubr.msk.bf16.mxu1 %vm4085_vm0, %v4083_v18 }
 0x38b   : > { %3494 = vmatprep.subr.bf16.mxu1 %v4083_v18 }
 0x396   : > { %3814 = vrot.lane.b32.xlu1 %v4367_v10, %s4092_s26 }
 0x39f   : > { %3819 = vrot.lane.b32.xlu0 %v4381_v24, %s4092_s26 }
 0x3b1   : > { %v1911_v22 = vpop.xlane.xlu0 %1910 }
 0x3b2   : > { %3937 = vrcp.f32 %v1911_v22 }
 0x3b9   : > { %v1914_v53 = vpop.xlane.xlu1 %1913 }
 0x3ba   : > { %3939 = vrcp.f32 %v1914_v53  ;;  %v3792_v53 = vunpack.i.h.bf16 %v4579_v45 }
 0x3bc   : > { %v3938_v57 = vpop.eup %3937 }
 0x3bd   : > { %v1956_v59 = vmul.f32 %v3938_v57, %v4600_v8  ;;  %v1917_v60 = vpop.xlane.xlu0 %1916  ;;  %v3781_v8 = vunpack.i.l.bf16 %v4569_v40  ;;  %v3791_v57 = vunpack.i.l.bf16 %v4579_v45 }
 0x3be   : > { %3941 = vrcp.f32 %v1917_v60 }
 0x3bf   : > { %v2878_v62 = vadd.f32 %v1956_v59, %v1952_v48  ;;  %v1985_v0 = vpack.c.bf16 %v1956_v59, %v1956_v59  ;;  %v1059_v13 = vpack.c.bf16 %v3782_v37, %v3781_v8  ;;  %v1063_v20 = vpack.c.bf16 %v3792_v53, %v3791_v57 }
 0x3c0   : > { %v3801_v59 = vunpack.i.l.bf16 %v4648_v5 }
 0x3c1   : > { %3485 = vmatmul.mubr.msk.bf16.vlgmr.msra.gmra.mrb[36].mxu1 %vm1070_vm1, %v1985_v0  ;;  %v1920_v10 = vpop.xlane.xlu1 %1919 }
 0x3c2   : > { %3495 = vmatpush3.bf16.msra.mxu1 %v1058_v1  ;;  %3943 = vrcp.f32 %v1920_v10  ;;  %3496 = vmatprep.mubr.msk.bf16.mxu1 %vm4085_vm0, %v4083_v18 }
 0x3c3   : > { %3506 = vmatprep.subr.bf16.mxu1 %v4083_v18 }
 0x3c4   : > { %v3940_v24 = vpop.eup %3939 }
 0x3c5   : > { %v1958_v2 = vmul.f32 %v3940_v24, %v4606_v4  ;;  %v1923_v7 = vpop.xlane.xlu0 %1922 }
 0x3c6   : > { %3945 = vrcp.f32 %v1923_v7 }
 0x3c7   : > { %v1986_v11 = vpack.c.bf16 %v1958_v2, %v1958_v2  ;;  %v2879_v42 = vadd.f32 %v1958_v2, %v4670_v34 }
 0x3c8   : > { %v3942_v12 = vpop.eup %3941 }
 0x3c9   : > { %v1960_v15 = vmul.f32 %v3942_v12, %v4610_v17  ;;  %3491 = vmatmul.mubr.msk.bf16.vlgmr.msra.gmra.mrb[48].mxu0 %vm1070_vm1, %v1986_v11 }
 0x3ca   : > { %3501 = vmatpush3.bf16.msra.mxu0 %v1059_v13  ;;  %3502 = vmatprep.mubr.msk.bf16.mxu0 %vm4085_vm0, %v4083_v18 }
 0x3cb   : > { %v2880_v40 = vadd.f32 %v2878_v62, %v1960_v15  ;;  %v1987_v63 = vpack.c.bf16 %v1960_v15, %v1960_v15  ;;  %3512 = vmatprep.subr.bf16.mxu0 %v4083_v18 }
 0x3cc   : > { %v3944_v4 = vpop.eup %3943 }
 0x3cd   : > { %v1962_v17 = vmul.f32 %v3944_v4, %v4616_v46  ;;  %3497 = vmatmul.mubr.msk.bf16.vlgmr.msra.gmra.mrb[40].mxu1 %vm1070_vm1, %v1987_v63  ;;  %v1929_v21 = vpop.xlane.xlu1 %1928 }
 0x3ce   : > { %3507 = vmatpush3.bf16.msra.mxu1 %v1060_v31  ;;  %3947 = vrcp.f32 %v1929_v21  ;;  %3508 = vmatprep.mubr.msk.bf16.mxu1 %vm4085_vm0, %v4083_v18 }
 0x3cf   : > { %v4721_v19 = vadd.f32 %v2879_v42, %v1962_v17  ;;  %v1988_v41 = vpack.c.bf16 %v1962_v17, %v1962_v17  ;;  %3518 = vmatprep.subr.bf16.mxu1 %v4083_v18 }
 0x3d0   : > { %v3946_v25 = vpop.eup %3945 }
 0x3d1   : > { %v1964_v46 = vmul.f32 %v3946_v25, %v4621_v51  ;;  %3503 = vmatmul.mubr.msk.bf16.vlgmr.msra.gmra.mrb[52].mxu0 %vm1070_vm1, %v1988_v41  ;;  %v1926_v34 = vpop.xlane.xlu1 %1925  ;;  %v1932_v47 = vpop.xlane.xlu0 %1931  ;;  %v3797_v51 = vunpack.i.h.bf16 %v4650_v6 }
 0x3d2   : > { %3513 = vmatpush3.bf16.msra.mxu0 %v1061_v29  ;;  %3514 = vmatprep.mubr.msk.bf16.mxu0 %vm4085_vm0, %v4083_v18  ;;  %3949 = vrcp.f32 %v1926_v34 }
 0x3d3   : > { %v2882_v35 = vadd.f32 %v2880_v40, %v1964_v46  ;;  %v1989_v38 = vpack.c.bf16 %v1964_v46, %v1964_v46  ;;  %3524 = vmatprep.subr.bf16.mxu0 %v4083_v18  ;;  %3951 = vrcp.f32 %v1932_v47  ;;  %v1064_v52 = vpack.c.bf16 %v3797_v51, %v3796_v56 }
 0x3d5   : > { %3509 = vmatmul.mubr.msk.bf16.vlgmr.msra.gmra.mrb[44].mxu1 %vm1070_vm1, %v1989_v38 }
 0x3d6   : > { %3519 = vmatpush3.bf16.msra.mxu1 %v1062_v39  ;;  %3520 = vmatprep.mubr.msk.bf16.mxu1 %vm4085_vm0, %v4083_v18 }
 0x3d7   : > { %3530 = vmatprep.subr.bf16.mxu1 %v4083_v18 }
 0x3d8   : > { %v3948_v44 = vpop.eup %3947 }
 0x3d9   : > { %v1968_v33 = vmul.f32 %v3948_v44, %v4626_v50  ;;  %v1938_v27 = vpop.xlane.xlu0 %1937 }
 0x3da   : > { %3953 = vrcp.f32 %v1938_v27 }
 0x3db   : > { %v4738_v48 = vadd.f32 %v2882_v35, %v1968_v33  ;;  %v1991_v49 = vpack.c.bf16 %v1968_v33, %v1968_v33 }
 0x3dc   : > { %v3950_v22 = vpop.eup %3949 }
 0x3dd   : > { %3521 = vmatmul.mubr.msk.bf16.vlgmr.msra.gmra.mrb[48].mxu1 %vm1070_vm1, %v1991_v49  ;;  %v1966_v58 = vmul.f32 %v3950_v22, %v4630_v61  ;;  %v3952_v6 = vpop.eup %3951  ;;  %v3802_v61 = vunpack.i.h.bf16 %v4648_v5  ;;  %v3810_v1 = vpop.permute.xlu0 %3809 }
 0x3de   : > { %3531 = vmatpush3.bf16.msra.mxu1 %v1064_v52  ;;  %3532 = vmatprep.mubr.msk.bf16.mxu1 %vm4085_vm0, %v4083_v18  ;;  %v1970_v45 = vmul.f32 %v3952_v6, %v4632_v54  ;;  %v3812_v54 = vunpack.i.h.bf16 %v3810_v1  ;;  %v3811_v24 = vunpack.i.l.bf16 %v3810_v1  ;;  %v3805_v5 = vpop.permute.xlu1 %3804 }
 0x3df   : > { %3542 = vmatprep.subr.bf16.mxu1 %v4083_v18  ;;  %v1990_v50 = vpack.c.bf16 %v1966_v58, %v1966_v58  ;;  %v1065_v0 = vpack.c.bf16 %v3802_v61, %v3801_v59  ;;  %v3807_v12 = vunpack.i.h.bf16 %v3805_v5  ;;  %v3806_v13 = vunpack.i.l.bf16 %v3805_v5 }
 0x3e0   : > { %v1992_v60 = vpack.c.bf16 %v1970_v45, %v1970_v45  ;;  %v1067_v8 = vpack.c.bf16 %v3812_v54, %v3811_v24  ;;  %v2883_v17 = vadd.f32 %v4721_v19, %v1966_v58 }
 0x3e1   : > { %3515 = vmatmul.mubr.msk.bf16.vlgmr.msra.gmra.mrb[56].mxu0 %vm1070_vm1, %v1990_v50  ;;  %v1066_v63 = vpack.c.bf16 %v3807_v12, %v3806_v13 }
 0x3e2   : > { %3525 = vmatpush3.bf16.msra.mxu0 %v1063_v20  ;;  %3526 = vmatprep.mubr.msk.bf16.mxu0 %vm4085_vm0, %v4083_v18 }
 0x3e3   : > { %3536 = vmatprep.subr.bf16.mxu0 %v4083_v18 }
 0x3e4   : > { %v3954_v62 = vpop.eup %3953 }
 0x3e5   : > { %v1974_v10 = vmul.f32 %v3954_v62, %v4638_v9 }
 0x3e7   : > { %v1994_v37 = vpack.c.bf16 %v1974_v10, %v1974_v10 }
 0x3e9   : > { %3527 = vmatmul.mubr.msk.bf16.vlgmr.msra.gmra.mrb[60].mxu0 %vm1070_vm1, %v1992_v60 }
 0x3ea   : > { %3537 = vmatpush3.bf16.msra.mxu0 %v1065_v0  ;;  %3538 = vmatprep.mubr.msk.bf16.mxu0 %vm4085_vm0, %v4083_v18 }
 0x3eb   : > { %3548 = vmatprep.subr.bf16.mxu0 %v4083_v18 }
 0x3f1   : > { %3539 = vmatmul.mubr.msk.bf16.vlgmr.msra.gmra.mrb[64].mxu0 %vm1070_vm1, %v1994_v37 }
 0x3f2   : > { %3549 = vmatpush3.bf16.msra.mxu0 %v1067_v8  ;;  %3550 = vmatprep.mubr.msk.bf16.mxu0 %vm4085_vm0, %v4083_v18 }
 0x3f3   : > { %3560 = vmatprep.subr.bf16.mxu0 %v4083_v18 }
 0x406   : > { %v1935_v2 = vpop.xlane.xlu1 %1934 }
 0x407   : > { %3955 = vrcp.f32 %v1935_v2 }
 0x40a   : > { %v1941_v7 = vpop.xlane.xlu1 %1940 }
 0x40b   : > { %3957 = vrcp.f32 %v1941_v7 }
 0x40e   : > { %v1944_v9 = vpop.xlane.xlu0 %1943 }
 0x40f   : > { %3959 = vrcp.f32 %v1944_v9 }
 0x411   : > { %v3956_v11 = vpop.eup %3955 }
 0x412   : > { %v1972_v26 = vmul.f32 %v3956_v11, %v4653_v14  ;;  %v1947_v3 = vpop.xlane.xlu1 %1946 }
 0x413   : > { %3961 = vrcp.f32 %v1947_v3 }
 0x414   : > { %v1993_v15 = vpack.c.bf16 %v1972_v26, %v1972_v26  ;;  %v2886_v43 = vadd.f32 %v4738_v48, %v1972_v26 }
 0x415   : > { %v3958_v40 = vpop.eup %3957 }
 0x416   : > { %v1950_v4 = vpop.xlane.xlu0 %1949  ;;  %3533 = vmatmul.mubr.msk.bf16.vlgmr.msra.gmra.mrb[52].mxu1 %vm1070_vm1, %v1993_v15  ;;  %v3815_v31 = vpop.permute.xlu1 %3814  ;;  %v1976_v16 = vmul.f32 %v3958_v40, %v4658_v36  ;;  %v2885_v36 = vadd.f32 %v2883_v17, %v1970_v45  ;;  %v3894_v17 = vld [vmem:[%s4946_s6 + $0x8] sm:$0xff]  }
 0x417   : > { %3963 = vrcp.f32 %v1950_v4  ;;  %3543 = vmatpush3.bf16.msra.mxu1 %v1066_v63  ;;  %3544 = vmatprep.mubr.msk.bf16.mxu1 %vm4085_vm0, %v4083_v18  ;;  %v3817_v14 = vunpack.i.h.bf16 %v3815_v31  ;;  %v3816_v42 = vunpack.i.l.bf16 %v3815_v31 }
 0x418   : > { %3554 = vmatprep.subr.bf16.mxu1 %v4083_v18  ;;  %v1995_v30 = vpack.c.bf16 %v1976_v16, %v1976_v16  ;;  %v2888_v39 = vadd.f32 %v2886_v43, %v1976_v16  ;;  %v3893_v16 = vld [vmem:[%s4946_s6] sm:$0xff]  }
 0x419   : > { %v3960_v23 = vpop.eup %3959  ;;  %v1068_v35 = vpack.c.bf16 %v3817_v14, %v3816_v42 }
 0x41a   : > { %v1978_v21 = vmul.f32 %v3960_v23, %v4663_v28  ;;  %v3820_v41 = vpop.permute.xlu0 %3819  ;;  %v2887_v28 = vadd.f32 %v2885_v36, %v1974_v10 }
 0x41b   : > { %v3822_v25 = vunpack.i.h.bf16 %v3820_v41  ;;  %v3821_v29 = vunpack.i.l.bf16 %v3820_v41  ;;  %v3895_v41 = vld [vmem:[%s4946_s6 + $0x10] sm:$0xff]  }
 0x41c   : > { %v1996_v46 = vpack.c.bf16 %v1978_v21, %v1978_v21  ;;  %v2889_v51 = vadd.f32 %v2887_v28, %v1978_v21 }
 0x41d   : > { %v3962_v34 = vpop.eup %3961  ;;  %v1069_v38 = vpack.c.bf16 %v3822_v25, %v3821_v29 }
 0x41e   : > { %v1980_v47 = vmul.f32 %v3962_v34, %v4672_v32  ;;  %3545 = vmatmul.mubr.msk.bf16.vlgmr.msra.gmra.mrb[56].mxu1 %vm1070_vm1, %v1995_v30  ;;  %3551 = vmatmul.mubr.msk.bf16.vlgmr.msra.gmra.mrb[68].mxu0 %vm1070_vm1, %v1996_v46 }
 0x41f   : > { %3555 = vmatpush3.bf16.msra.mxu1 %v1068_v35  ;;  %3561 = vmatpush3.bf16.msra.mxu0 %v1069_v38 }
 0x420   : > { %v2890_v19 = vadd.f32 %v2888_v39, %v1980_v47  ;;  %3556 = vmatprep.mubr.msk.bf16.mxu1 %vm4085_vm0, %v4083_v18  ;;  %3562 = vmatprep.mubr.msk.bf16.mxu0 %vm4085_vm0, %v4083_v18  ;;  %v1997_v48 = vpack.c.bf16 %v1980_v47, %v1980_v47  ;;  %v3896_v39 = vld [vmem:[%s4946_s6 + $0x18] sm:$0xff]   ;;  %v3897_v47 = vld [vmem:[%s4946_s6 + $0x20] sm:$0xff]  }
 0x421   : > { %v3964_v44 = vpop.eup %3963  ;;  %3566 = vmatprep.subr.bf16.mxu1 %v4083_v18 }
 0x422   : > { %v2892_v56 = vmul.f32 0.125, %v2890_v19  ;;  %v1982_v32 = vmul.f32 %v3964_v44, %v4684_v55  ;;  %v3898_v19 = vld [vmem:[%s4946_s6 + $0x28] sm:$0xff]  }
 0x424   : > { %2894 = vst.msk [vmem:[#allocation6] sm:$0xff] %vm1070_vm1, %v2892_v56  ;;  %v2891_v33 = vadd.f32 %v2889_v51, %v1982_v32  ;;  %v1998_v49 = vpack.c.bf16 %v1982_v32, %v1982_v32  ;;  %v3899_v32 = vld [vmem:[%s4946_s6 + $0x30] sm:$0xff]  }
 0x426   : > { %v2893_v52 = vmul.f32 0.125, %v2891_v33  ;;  %3557 = vmatmul.mubr.msk.bf16.vlgmr.msra.gmra.mrb[60].mxu1 %vm1070_vm1, %v1997_v48  ;;  %3563 = vmatmul.mubr.msk.bf16.vlgmr.msra.gmra.mrb[72].mxu0 %vm1070_vm1, %v1998_v49 }
 0x427   : > { %3582 = vmatprep.mubr.msk.bf16.mxu1 %vm4085_vm0, %v4083_v18  ;;  %3567 = vmatpush3.bf16.msra.mxu1 %v3893_v16 }
 0x428   : > { %2895 = vst.msk [vmem:[#allocation6 + $0x8] sm:$0xff] %vm1070_vm1, %v2893_v52  ;;  %3568 = vmatprep.subr.bf16.mxu1 %v4083_v18 }
 0x42b   : > { %3569 = vmatpush3.bf16.msra.mxu1 %v3894_v17 }
 0x42c   : > { %3570 = vmatprep.subr.bf16.mxu1 %v4083_v18 }
 0x42f   : > { %3571 = vmatpush3.bf16.msra.mxu1 %v3895_v41 }
 0x430   : > { %3572 = vmatprep.subr.bf16.mxu1 %v4083_v18 }
 0x433   : > { %3573 = vmatpush3.bf16.msra.mxu1 %v3896_v39  ;;  %v3238_v39 = vld [vmem:[%s4947_s7] ss:$0 sm:$0xff] }
 0x434   : > { %3574 = vmatprep.subr.bf16.mxu1 %v4083_v18 }
 0x437   : > { %3575 = vmatpush3.bf16.msra.mxu1 %v3897_v47 }
 0x438   : > { %3576 = vmatprep.subr.bf16.mxu1 %v4083_v18 }
 0x43b   : > { %3577 = vmatpush3.bf16.msra.mxu1 %v3898_v19 }
 0x43c   : > { %3578 = vmatprep.subr.bf16.mxu1 %v4083_v18 }
 0x43f   : > { %3579 = vmatpush3.bf16.msra.mxu1 %v3899_v32 }
 0x440   : > { %3580 = vmatprep.subr.bf16.mxu1 %v4083_v18 }
 0x458   : > { %v4787_v27 = vpop.f32.mrb[44].mxu0 }
 0x459   : > { %v3480_v22 = vpop.f32.mrb[45].mxu0 }
 0x45a   : > { %v2082_v53 = vpop.f32.mrb[46].mxu0 }
 0x45b   : > { %v3481_v55 = vpop.f32.mrb[47].mxu0 }
 0x45c   : > { %v4789_v57 = vpop.f32.mrb[32].mxu1  ;;  %v3900_v55 = vld [vmem:[%s4946_s6 + $0x38] sm:$0xff]  }
 0x45d   : > { %v3474_v58 = vpop.f32.mrb[33].mxu1  ;;  %3581 = vmatpush3.bf16.msra.mxu1 %v3900_v55 }
 0x45e   : > { %v2039_v50 = vpop.f32.mrb[34].mxu1 }
 0x45f   : > { %v3475_v6 = vpop.f32.mrb[35].mxu1 }
 0x494   : > { %v2122_v20 = vpop.f32.mrb[36].mxu1 }
 0x495   : > { %v3486_v45 = vpop.f32.mrb[37].mxu1 }
 0x496   : > { %v2125_v61 = vpop.f32.mrb[38].mxu1 }
 0x497   : > { %v3487_v59 = vpop.f32.mrb[39].mxu1 }
 0x49c   : > { %v2165_v60 = vpop.f32.mrb[48].mxu0 }
 0x49d   : > { %v3823_v62 = vpack.i.bf16 %v2165_v60, %v2122_v20  ;;  %v3492_v0 = vpop.f32.mrb[49].mxu0 }
 0x49e   : > { %v2168_v1 = vpop.f32.mrb[50].mxu0 }
 0x49f   : > { %3824 = vrot.lane.b32.xlu1 %v3823_v62, %s4092_s26  ;;  %v3493_v10 = vpop.f32.mrb[51].mxu0 }
 0x4a0   : > { %v2208_v54 = vpop.f32.mrb[40].mxu1 }
 0x4a1   : > { %v3498_v24 = vpop.f32.mrb[41].mxu1 }
 0x4a2   : > { %v2211_v37 = vpop.f32.mrb[42].mxu1 }
 0x4a3   : > { %v3499_v8 = vpop.f32.mrb[43].mxu1 }
 0x4a4   : > { %v2251_v5 = vpop.f32.mrb[52].mxu0 }
 0x4a5   : > { %v3828_v2 = vpack.i.bf16 %v2251_v5, %v2208_v54  ;;  %v3504_v7 = vpop.f32.mrb[53].mxu0 }
 0x4a6   : > { %v2254_v9 = vpop.f32.mrb[54].mxu0 }
 0x4a7   : > { %3829 = vrot.lane.b32.xlu0 %v3828_v2, %s4091_s19  ;;  %v3505_v11 = vpop.f32.mrb[55].mxu0 }
 0x4a8   : > { %v2294_v12 = vpop.f32.mrb[44].mxu1 }
 0x4a9   : > { %v3510_v13 = vpop.f32.mrb[45].mxu1 }
 0x4aa   : > { %v2297_v26 = vpop.f32.mrb[46].mxu1 }
 0x4ab   : > { %v3511_v3 = vpop.f32.mrb[47].mxu1 }
 0x4b0   : > { %v2380_v15 = vpop.f32.mrb[48].mxu1 }
 0x4b1   : > { %v3522_v40 = vpop.f32.mrb[49].mxu1 }
 0x4b2   : > { %v2383_v63 = vpop.f32.mrb[50].mxu1 }
 0x4b3   : > { %v3523_v4 = vpop.f32.mrb[51].mxu1 }
 0x4b4   : > { %v2337_v31 = vpop.f32.mrb[56].mxu0 }
 0x4b5   : > { %v3833_v23 = vpack.i.bf16 %v2337_v31, %v2294_v12  ;;  %v3516_v14 = vpop.f32.mrb[57].mxu0 }
 0x4b6   : > { %v2340_v42 = vpop.f32.mrb[58].mxu0 }
 0x4b7   : > { %3834 = vrot.lane.b32.xlu1 %v3833_v23, %s4090_s8  ;;  %v3517_v21 = vpop.f32.mrb[59].mxu0 }
 0x4bc   : > { %v2423_v25 = vpop.f32.mrb[60].mxu0 }
 0x4bd   : > { %v3838_v29 = vpack.i.bf16 %v2423_v25, %v2380_v15  ;;  %v3528_v43 = vpop.f32.mrb[61].mxu0 }
 0x4be   : > { %v2426_v30 = vpop.f32.mrb[62].mxu0 }
 0x4bf   : > { %3839 = vrot.lane.b32.xlu0 %v3838_v29, %s4089_s12  ;;  %v3529_v46 = vpop.f32.mrb[63].mxu0 }
 0x4c4   : > { %v2509_v34 = vpop.f32.mrb[64].mxu0 }
 0x4c5   : > { %v3540_v35 = vpop.f32.mrb[65].mxu0 }
 0x4c6   : > { %v2512_v38 = vpop.f32.mrb[66].mxu0 }
 0x4c7   : > { %v3541_v36 = vpop.f32.mrb[67].mxu0 }
 0x4e9   : > { %v2466_v28 = vpop.f32.mrb[52].mxu1 }
 0x4ea   : > { %v3843_v44 = vpack.i.bf16 %v2509_v34, %v2466_v28  ;;  %v3534_v51 = vpop.f32.mrb[53].mxu1 }
 0x4eb   : > { %v2469_v56 = vpop.f32.mrb[54].mxu1 }
 0x4ec   : > { %v3535_v33 = vpop.f32.mrb[55].mxu1  ;;  %3844 = vrot.lane.b32.xlu1 %v3843_v44, %s4088_s30  ;;  %s4962_s30 = smov 112  }
 0x4f1   : > { %v2552_v48 = vpop.f32.mrb[56].mxu1  ;;  %v2595_v49 = vpop.f32.mrb[68].mxu0 }
 0x4f2   : > { %v3848_v52 = vpack.i.bf16 %v2595_v49, %v2552_v48  ;;  %v3546_v22 = vpop.f32.mrb[57].mxu1  ;;  %v3552_v53 = vpop.f32.mrb[69].mxu0 }
 0x4f3   : > { %v2555_v58 = vpop.f32.mrb[58].mxu1  ;;  %v2598_v50 = vpop.f32.mrb[70].mxu0 }
 0x4f4   : > { %v3547_v6 = vpop.f32.mrb[59].mxu1  ;;  %3849 = vrot.lane.b32.xlu0 %v3848_v52, %s4087_s29  ;;  %v3553_v20 = vpop.f32.mrb[71].mxu0 }
 0x4f9   : > { %v2638_v45 = vpop.f32.mrb[60].mxu1  ;;  %v2681_v61 = vpop.f32.mrb[72].mxu0 }
 0x4fa   : > { %v3853_v59 = vpack.i.bf16 %v2681_v61, %v2638_v45  ;;  %v3558_v18 = vpop.f32.mrb[61].mxu1  ;;  %v3564_v60 = vpop.f32.mrb[73].mxu0 }
 0x4fb   : > { %v2641_v62 = vpop.f32.mrb[62].mxu1  ;;  %v2684_v0 = vpop.f32.mrb[74].mxu0 }
 0x4fc   : > { %v3559_v1 = vpop.f32.mrb[63].mxu1  ;;  %3854 = vrot.lane.b32.xlu1 %v3853_v59, %s4962_s30  ;;  %v3565_v10 = vpop.f32.mrb[75].mxu0 }
 0x511   : > { %v3825_v54 = vpop.permute.xlu1 %3824 }
 0x512   : > { %v3827_v5 = vunpack.i.h.bf16 %v3825_v54  ;;  %v3826_v2 = vunpack.i.l.bf16 %v3825_v54 }
 0x514   : > { %v2744_v40 = vsel %vm1070_vm1, %v4787_v27, %v3827_v5  ;;  %v2743_v63 = vsel %vm1070_vm1, %v4789_v57, %v3826_v2 }
 0x519   : > { %v3830_v24 = vpop.permute.xlu0 %3829 }
 0x51a   : > { %v3832_v7 = vunpack.i.h.bf16 %v3830_v24  ;;  %v3831_v9 = vunpack.i.l.bf16 %v3830_v24 }
 0x51c   : > { %v2747_v16 = vsel %vm2745_vm2, %v2744_v40, %v3832_v7  ;;  %v2746_v23 = vsel %vm2745_vm2, %v2743_v63, %v3831_v9 }
 0x529   : > { %v3835_v37 = vpop.permute.xlu1 %3834 }
 0x52a   : > { %v3837_v12 = vunpack.i.h.bf16 %v3835_v37  ;;  %v3836_v13 = vunpack.i.l.bf16 %v3835_v37 }
 0x52c   : > { %v2750_v17 = vsel %vm2748_vm3, %v2747_v16, %v3837_v12  ;;  %v2749_v21 = vsel %vm2748_vm3, %v2746_v23, %v3836_v13 }
 0x531   : > { %v3840_v8 = vpop.permute.xlu0 %3839 }
 0x532   : > { %v3842_v3 = vunpack.i.h.bf16 %v3840_v8  ;;  %v3841_v15 = vunpack.i.l.bf16 %v3840_v8 }
 0x534   : > { %v2753_v41 = vsel %vm2751_vm4, %v2750_v17, %v3842_v3  ;;  %v2752_v25 = vsel %vm2751_vm4, %v2749_v21, %v3841_v15 }
 0x55e   : > { %v3845_v11 = vpop.permute.xlu1 %3844 }
 0x55f   : > { %v3847_v4 = vunpack.i.h.bf16 %v3845_v11  ;;  %v3846_v31 = vunpack.i.l.bf16 %v3845_v11 }
 0x561   : > { %v2756_v29 = vsel %vm2754_vm5, %v2753_v41, %v3847_v4  ;;  %v2755_v57 = vsel %vm2754_vm5, %v2752_v25, %v3846_v31 }
 0x566   : > { %v3850_v26 = vpop.permute.xlu0 %3849 }
 0x567   : > { %v3852_v14 = vunpack.i.h.bf16 %v3850_v26  ;;  %v3851_v42 = vunpack.i.l.bf16 %v3850_v26 }
 0x569   : > { %v2759_v46 = vsel %vm2757_vm6, %v2756_v29, %v3852_v14  ;;  %v2758_v34 = vsel %vm2757_vm6, %v2755_v57, %v3851_v42 }
 0x56e   : > { %v3855_v27 = vpop.permute.xlu1 %3854 }
 0x56f   : > { %v3857_v43 = vunpack.i.h.bf16 %v3855_v27  ;;  %v3856_v30 = vunpack.i.l.bf16 %v3855_v27 }
 0x571   : > { %v2762_v35 = vsel %vm2760_vm7, %v2759_v46, %v3857_v43  ;;  %v2761_v38 = vsel %vm2760_vm7, %v2758_v34, %v3856_v30 }
 0x572   : > { %v2763_v36 = vpack.c.bf16 %v2762_v35, %v2761_v38 }
 0x574   : > { %3583 = vmatmul.mubr.bf16.vlgmr.msra.gmra.mrb[64].mxu1 %v2763_v36 }
 0x647   : > { %v2869_v47 = vpop.f32.mrb[64].mxu1 }
 0x648   : > { %v3584_v28 = vpop.f32.mrb[65].mxu1  ;;  %v2870_v44 = vadd.f32 %v3238_v39, %v2869_v47 }
 0x649   : > { %v2872_v19 = vpop.f32.mrb[66].mxu1 }
 0x64a   : > { %v2873_v51 = vadd.f32 %v3238_v39, %v2872_v19  ;;  %v3585_v56 = vpop.f32.mrb[67].mxu1 }
 0x64c   : > { %v2876_v32 = vpack.c.bf16 %v2873_v51, %v2870_v44 }
 0x64e   : > { %2877 = vst [vmem:[#allocation2] sm:$0xff] %v2876_v32 }
 0x64f PF: > { %v3965_v33 = vld [vmem:[%s4250_s14 + $0x4] ss:$8 sps:$4 sm:$0xff]   ;;  %v3967_v48 = vld [vmem:[%s4250_s14] ss:$8 sps:$4 sm:$0xff]   ;;  %v4093_v49 = vmov 0   ;;  %s4094_s13 = smov [#allocation6]  }
 0x650   : > { %3037 = vmatprep.mubr.bf16.mxu0 %v4093_v49  ;;  %3005 = vmatprep.subr.bf16.mxu0 %v3965_v33  ;;  %v3968_v52 = vld [vmem:[%s4250_s14 + $0x14] ss:$8 sps:$4 sm:$0xff]   ;;  %v3970_v22 = vld [vmem:[%s4250_s14 + $0x10] ss:$8 sps:$4 sm:$0xff]   ;;  %v3971_v53 = vld [vmem:[%s4250_s14 + $0x24] ss:$8 sps:$4 sm:$0xff]  }
 0x651   : > { %3006 = vmatpush1.bf16.msra.mxu0 %v3967_v48  ;;  %v3973_v55 = vld [vmem:[%s4250_s14 + $0x20] ss:$8 sps:$4 sm:$0xff]   ;;  %v3974_v58 = vld [vmem:[%s4250_s14 + $0x34] ss:$8 sps:$4 sm:$0xff]   ;;  %v3976_v50 = vld [vmem:[%s4250_s14 + $0x30] ss:$8 sps:$4 sm:$0xff]  }
 0x652   : > { %3007 = vmatprep.subr.bf16.mxu0 %v3968_v52  ;;  %v3977_v6 = vld [vmem:[%s4250_s14 + $0x44] ss:$8 sps:$4 sm:$0xff]   ;;  %v3979_v20 = vld [vmem:[%s4250_s14 + $0x40] ss:$8 sps:$4 sm:$0xff]   ;;  %v3980_v45 = vld [vmem:[%s4250_s14 + $0x54] ss:$8 sps:$4 sm:$0xff]  }
 0x653   : > { %v3982_v61 = vld [vmem:[%s4250_s14 + $0x50] ss:$8 sps:$4 sm:$0xff]   ;;  %v3983_v59 = vld [vmem:[%s4250_s14 + $0x64] ss:$8 sps:$4 sm:$0xff]   ;;  %v3985_v18 = vld [vmem:[%s4250_s14 + $0x60] ss:$8 sps:$4 sm:$0xff]  }
 0x654   : > { %v3986_v60 = vld [vmem:[%s4250_s14 + $0x74] ss:$8 sps:$4 sm:$0xff]   ;;  %v3988_v62 = vld [vmem:[%s4250_s14 + $0x70] ss:$8 sps:$4 sm:$0xff]   ;;  %s3079_s12 = sshll.u32 %s4094_s13, 4  ;;  %s3080_s12 = int_to_ptr.vmem [resolvable:$true] %s3079_s12 }
 0x655   : > { %3008 = vmatpush1.bf16.msra.mxu0 %v3970_v22  ;;  %v2896_v0 = vld [vmem:[#allocation2] sm:$0xff]  ;;  %s3989_s25 = scalar_lea.vmem %s3080_s12, 256  ;;  %p3996_p5 = scmp.lt.s32.totalorder %s3080_s12, %s3080_s12 }
 0x656   : > { %3009 = vmatprep.subr.bf16.mxu0 %v3971_v53  ;;  %p3990_p1 = scmp.ne.s32.totalorder %s3080_s12, %s3989_s25  ;;  %p3997_p7 = scmp.lt.s32.totalorder %s3989_s25, %s3989_s25 }
 0x658   : > { %p3991_p2 = pnand %p3990_p1, %p264_p3  ;;  %p3998_p10 = por %p3997_p7, %p3996_p5 }
 0x659   : > { %3010 = vmatpush1.bf16.msra.mxu0 %v3973_v55 }
 0x65a   : > { %3011 = vmatprep.subr.bf16.mxu0 %v3974_v58  ;;  %p3992_p4 = pneg %p3991_p2 }
 0x65c   : > { %p3999_p11 = pnand %p3998_p10, %p3992_p4 }
 0x65d   : > { %3012 = vmatpush1.bf16.msra.mxu0 %v3976_v50 }
 0x65e   : > { %3013 = vmatprep.subr.bf16.mxu0 %v3977_v6 }
 0x661   : > { %3014 = vmatpush1.bf16.msra.mxu0 %v3979_v20 }
 0x662   : > { %3015 = vmatprep.subr.bf16.mxu0 %v3980_v45 }
 0x665   : > { %3016 = vmatpush1.bf16.msra.mxu0 %v3982_v61 }
 0x666   : > { %3017 = vmatprep.subr.bf16.mxu0 %v3983_v59 }
 0x669   : > { %3018 = vmatpush1.bf16.msra.mxu0 %v3985_v18 }
 0x66a   : > { %3019 = vmatprep.subr.bf16.mxu0 %v3986_v60 }
 0x66d   : > { %3020 = vmatpush1.bf16.msra.mxu0 %v3988_v62 }
 0x670   : > { %3038 = vmatmul.mubr.bf16.vlgmr.msra.gmra.mrb[0].mxu0 %v2896_v0 }
 0x671   : > { %4002 = shalt.err (!%p3999_p11)
}
 0x672   : > { %s4003_s14 = scalar_lea.hbm %s4951_s11, 256 }
 0x673   : > { %p4004_p12 = scmp.ne.s32.totalorder %s4951_s11, %s4003_s14  ;;  %p4009_p1 = scmp.lt.u32.totalorder %s4003_s14, %s4951_s11 }
 0x675   : > { %p4005_p13 = pnand %p4004_p12, %p264_p3 }
 0x677   : > { %p4006_p0 = pneg %p4005_p13 }
 0x679   : > { %p4011_p2 = pnand %p4009_p1, %p4006_p0 }
 0x67b   : > { %4014 = shalt.err (!%p4011_p2)
}
 0x67c   : > { %s4095_s18 = smov 128   ;;  %s4096_s13 = smov 8   ;;  %v2915_v1 = vlaneseq }
 0x67d   : > { %3588 = dma.vmem_to_hbm [thread:$0]  (%p264_p3), %s3080_s12, 256, %s4951_s11, [#allocation7], %s4095_s18, %s4095_s18, %s4096_s13  }
 0x67e   : > { %v2916_v10 = vshrl.u32 %v2915_v1, 7  ;;  %s4963_s14 = scalar_lea.vmem %s4949_s9, %s4969_s24  ;;  %s3271_s16 = sshll.u32 %s4182_s21, 8 }
 0x67f   : > { %v2913_v24 = vld [vmem:[%s4963_s14] sm:$0x3]  ;;  %s3066_s30 = sshll.u32 %s4252_s15, 4  ;;  %s4886_s24 = scalar_lea.hbm %s4950_s10, %s3271_s16  ;;  %s4889_s30 = int_to_ptr.vmem [resolvable:$true] %s3066_s30 }
 0x680   : > { %v2917_v54 = vsub.s32 0, %v2916_v10  ;;  %v2921_v37 = vsub.s32 1, %v2916_v10  ;;  %s3053_s18 = scalar_lea.sflag [#allocation5], %s4239_s22  ;;  %s4015_s13 = scalar_lea.vmem %s4889_s30, 512 }
 0x681   : > { %p4016_p4 = scmp.ne.s32.totalorder %s4889_s30, %s4015_s13  ;;  %s4097_s25 = smov [#allocation4]  }
 0x682   : > { %v2918_v8 = vrot.slane %v2913_v24, %v2917_v54  ;;  %v2922_v5 = vrot.slane %v2913_v24, %v2921_v37  ;;  %s4019_s19 = sshll.u32 %s4097_s25, 4  ;;  %s4020_s19 = int_to_ptr.vmem [resolvable:$false] %s4019_s19 }
 0x683   : > { %p4017_p5 = pnand %p4016_p4, %p4202_p6  ;;  %s4021_s26 = scalar_lea.vmem %s4020_s19, 1024 }
 0x684   : > { %p4022_p10 = scmp.lt.s32.totalorder %s4889_s30, %s4020_s19  ;;  %p4023_p11 = scmp.lt.s32.totalorder %s4021_s26, %s4015_s13 }
 0x685   : > { %p4018_p7 = pneg %p4017_p5 }
 0x686   : > { %p4024_p12 = por %p4023_p11, %p4022_p10 }
 0x688   : > { %p4025_p13 = pnand %p4024_p12, %p4018_p7 }
 0x743   : > { %v3039_v2 = vpop.f32.mrb[0].mxu0 }
 0x744   : > { %v3040_v7 = vadd.f32 %v3039_v2, %v2918_v8  ;;  %v3041_v9 = vpop.f32.mrb[1].mxu0 }
 0x745   : > { %v3042_v11 = vadd.f32 %v3041_v9, %v2922_v5  ;;  %v3043_v12 = vpop.f32.mrb[2].mxu0 }
 0x746   : > { %3048 = vst [vmem:[%s4252_s15] sm:$0xff] %v3040_v7  ;;  %v3044_v13 = vadd.f32 %v3043_v12, %v2918_v8  ;;  %v3045_v26 = vpop.f32.mrb[3].mxu0 }
 0x747   : > { %3049 = vst [vmem:[%s4252_s15 + $0x8] sm:$0xff] %v3042_v11  ;;  %v3046_v3 = vadd.f32 %v3045_v26, %v2922_v5 }
 0x748   : > { %3050 = vst [vmem:[%s4252_s15 + $0x10] sm:$0xff] %v3044_v13 }
 0x749   : > { %3051 = vst [vmem:[%s4252_s15 + $0x18] sm:$0xff] %v3046_v3 }
 0x74a   : > { %4028 = shalt.err (!%p4025_p13)
}
 0x74b   : > { %s4029_s15 = scalar_lea.hbm %s4886_s24, 512  ;;  %s4033_s16 = scalar_lea.hbm %s4950_s10, 1024 }
 0x74c   : > { %p4030_p0 = scmp.ne.s32.totalorder %s4886_s24, %s4029_s15  ;;  %p4034_p4 = scmp.lt.u32.totalorder %s4886_s24, %s4950_s10 }
 0x74d   : > { %p4035_p5 = scmp.lt.u32.totalorder %s4033_s16, %s4029_s15  ;;  %p4037_p10 = scmp.lt.u32.totalorder %s4029_s15, %s4886_s24 }
 0x74e   : > { %p4031_p1 = pnand %p4030_p0, %p4202_p6 }
 0x74f   : > { %p4036_p7 = por %p4035_p5, %p4034_p4 }
 0x750   : > { %p4032_p2 = pneg %p4031_p1 }
 0x751   : > { %p4038_p11 = por %p4037_p10, %p4036_p7 }
 0x753   : > { %p4039_p12 = pnand %p4038_p11, %p4032_p2 }
 0x755   : > { %4042 = shalt.err (!%p4039_p12)
}
 0x756   : > { %s4098_s13 = smov 256   ;;  %s4099_s25 = smov 512  }
 0x757   : > { %s4100_s19 = smov 16  }
 0x758   : > { %3586 = dma.vmem_to_hbm [thread:$0]  (%p4202_p6), %s4889_s30, 512, %s4886_s24, %s3053_s18, %s4098_s13, %s4099_s25, %s4100_s19  }
 0x759   : > { %4060 = dma.done.wait (%p264_p3), [#allocation7], 256  }
 0x75a   : > { %4062 = vsyncadd (%p264_p3), [#allocation7], 4294967040 }
 0x75b PF: > { %s3098_s26 = sand.u32 1, %s4069_s17   ;;  %p3593_p13 = pnand %p3169_p9, %p4206_p8 }
 0x75c   : > { %s3099_s15 = scalar_lea.sflag [#allocation5], %s3098_s26 }
 0x75d   : > { %4064 = dma.done.wait (!%p3593_p13), %s3099_s15, 512  }
 0x75e   : > { %4066 = vsyncadd (!%p3593_p13), %s3099_s15, 4294966784  ;;  %s4964_s17 = sld [smem:[#allocation10_spill]]  ;;  %s4965_s18 = sld [smem:[#allocation11_spill]] }
 0x75f   : > { %s4966_s19 = sld [smem:[#allocation12_spill]]  ;;  %p23_p6 = scmp.ge.s32.totalorder %s4186_s23, 4  }
 0x760   : > { %s4967_s20 = smov %s4186_s23 }
 0x761   :  { %25 = sbr.rel (!%p23_p6) target bundleno = 6 (0x6), region = 153 }
 0x768   :  { %3104 = vsyncpa [#allocation5], 1 }
 0x769   :  { %3106 = vsyncpa [#allocation5 + $0x1], 1 }
 0x76a   :  { %3107 = vsyncpa [#allocation7], 1 }

</bundles_post_ra>
